<compile_context>
chip_gen: v5e
topology: v5e:2x2
jax: 0.10.0
libtpu: 0.0.40
codegen_flags: <defaults>
</compile_context>

<pallas_src>
import numpy as np
import jax
import jax.numpy as jnp
from jax.experimental import pallas as pl
from jax.experimental.pallas import tpu as pltpu


# ----------------------------- Pallas kernel --------------------------------
def bigru_encoder_kernel(lens_ref, x_ref,
                         wihc0_ref, whh0_ref, bgic0_ref, bhn0_ref,
                         wihc1_ref, whh1_ref, bgic1_ref, bhn1_ref,
                         out_ref):
    """Fused 2-layer bidirectional GRU with packed-sequence masking.

    lens_ref  : (BP, 1)       f32   sequence lengths (0 for padded batch rows)
    x_ref     : (T*BP, Din)   f32   time-major flattened input (row = t*BP + b)
    wihc*_ref : (Din, 6H)     f32   both directions' input weights, [fwd r|z|n | bwd r|z|n]
    whh*_ref  : (2, H, 3H)    f32   per-direction hidden weights, gates [r|z|n]
    bgic*_ref : (1, 6H)       f32   b_ih (+ b_hh for r,z) folded, both directions
    bhn*_ref  : (2, 1, H)     f32   b_hn (stays inside r * (.)), per direction
    out_ref   : (T*BP, 2H)    f32   concat(fwd, bwd) of layer-1 outputs
    """
    TB = x_ref.shape[0]
    BP = lens_ref.shape[0]
    T = TB // BP
    H = whh0_ref.shape[1]

    lens = lens_ref[...]                                   # (BP, 1), read once
    # Hoisted per-step validity masks, shared by both layers & directions.
    masks = [jnp.broadcast_to(lens > float(t), (BP, H)) for t in range(T)]

    def run_layer(x_val, wihc_ref, whh_ref, bgic_ref, bhn_ref):
        # One fused input projection GEMM for both directions.
        gi = jnp.dot(x_val, wihc_ref[...],
                     preferred_element_type=jnp.float32) + bgic_ref[...]   # (TB, 6H)
        whh_f = whh_ref[0]                                 # (H, 3H) hoisted reads
        whh_b = whh_ref[1]
        bhn_f = bhn_ref[0]                                 # (1, H)
        bhn_b = bhn_ref[1]

        hf = jnp.zeros((BP, H), jnp.float32)
        hb = jnp.zeros((BP, H), jnp.float32)
        outs_f = [None] * T
        outs_b = [None] * T

        for s in range(T):                                 # fully unrolled (T static)
            tf, tb = s, T - 1 - s
            # Independent recurrence chains issued back-to-back (interleaved).
            gh_f = jnp.dot(hf, whh_f, preferred_element_type=jnp.float32)  # (BP, 3H)
            gh_b = jnp.dot(hb, whh_b, preferred_element_type=jnp.float32)  # (BP, 3H)

            gi_f = gi[tf * BP:(tf + 1) * BP, 0:3 * H]      # tile-aligned row slices
            gi_b = gi[tb * BP:(tb + 1) * BP, 3 * H:6 * H]

            # forward direction
            rz_f = jax.nn.sigmoid(gi_f[:, 0:2 * H] + gh_f[:, 0:2 * H])
            n_f = jnp.tanh(gi_f[:, 2 * H:3 * H]
                           + rz_f[:, 0:H] * (gh_f[:, 2 * H:3 * H] + bhn_f))
            z_f = rz_f[:, H:2 * H]
            hf_new = (1.0 - z_f) * n_f + z_f * hf

            # backward direction
            rz_b = jax.nn.sigmoid(gi_b[:, 0:2 * H] + gh_b[:, 0:2 * H])
            n_b = jnp.tanh(gi_b[:, 2 * H:3 * H]
                           + rz_b[:, 0:H] * (gh_b[:, 2 * H:3 * H] + bhn_b))
            z_b = rz_b[:, H:2 * H]
            hb_new = (1.0 - z_b) * n_b + z_b * hb

            # packed-sequence masking: freeze h past seq end, zeros in output.
            mf, mb = masks[tf], masks[tb]
            hf = jnp.where(mf, hf_new, hf)
            hb = jnp.where(mb, hb_new, hb)
            outs_f[tf] = jnp.where(mf, hf_new, 0.0)
            outs_b[tb] = jnp.where(mb, hb_new, 0.0)

        # Assemble one lane-dense (TB, 2H) slab (off the recurrence chain).
        return jnp.concatenate(
            [jnp.concatenate([outs_f[t], outs_b[t]], axis=1) for t in range(T)],
            axis=0)

    # ---------------- layer 0 ----------------
    s0 = run_layer(x_ref[...], wihc0_ref, whh0_ref, bgic0_ref, bhn0_ref)
    # ---------------- layer 1 ----------------
    out_ref[...] = run_layer(s0, wihc1_ref, whh1_ref, bgic1_ref, bhn1_ref)


# ----------------------------- wrapper ---------------------------------------
def encoder_forward(input_states, input_len, params):
    """Equivalent of Encoder.forward: (B, T, Din), (B,) -> (B, T, 2H)."""
    B, T, D = input_states.shape
    H = params['whh0'].shape[1]
    BP = max(8, ((B + 7) // 8) * 8)                 # pad batch to sublane tile

    x_p = jnp.pad(input_states.astype(jnp.float32), ((0, BP - B), (0, 0), (0, 0)))
    lens_p = jnp.pad(input_len.astype(jnp.float32), ((0, BP - B),)).reshape(BP, 1)

    # time-major flatten (row = t*BP + b); padded rows have len=0 -> masked out.
    x_tm = jnp.transpose(x_p, (1, 0, 2)).reshape(T * BP, D)

    # host-side packing: fuse both directions' input weights/biases per layer.
    wihc0 = jnp.concatenate([params['wih0'][0], params['wih0'][1]], axis=-1)  # (Din, 6H)
    bgic0 = jnp.concatenate([params['bgi0'][0], params['bgi0'][1]], axis=-1)  # (1, 6H)
    wihc1 = jnp.concatenate([params['wih1'][0], params['wih1'][1]], axis=-1)  # (2H, 6H)
    bgic1 = jnp.concatenate([params['bgi1'][0], params['bgi1'][1]], axis=-1)  # (1, 6H)

    vmem = pl.BlockSpec(memory_space=pltpu.MemorySpace.VMEM)
    out = pl.pallas_call(
        bigru_encoder_kernel,
        out_shape=jax.ShapeDtypeStruct((T * BP, 2 * H), jnp.float32),
        in_specs=[vmem] * 10,
        out_specs=vmem,
    )(lens_p, x_tm,
      wihc0, params['whh0'], bgic0, params['bhn0'],
      wihc1, params['whh1'], bgic1, params['bhn1'])

    out = jnp.transpose(out.reshape(T, BP, 2 * H), (1, 0, 2))   # (BP, T, 2H)
    return out[:B]


# ----------------------------- parameter init --------------------------------
def init_encoder_params(key, input_size, hidden):
    H = hidden

    def one_layer(k, in_dim):
        bound = 1.0 / np.sqrt(H)
        ks = jax.random.split(k, 4)
        u = lambda kk, shape: jax.random.uniform(kk, shape, jnp.float32, -bound, bound)
        wih = u(ks[0], (2, in_dim, 3 * H))     # (dir, in, [r|z|n])
        whh = u(ks[1], (2, H, 3 * H))
        bih = u(ks[2], (2, 1, 3 * H))
        bhh = u(ks[3], (2, 1, 3 * H))
        # fold biases: b_ih (all gates) + b_hh for r,z; keep b_hn separate.
        bgi = bih + jnp.concatenate(
            [bhh[..., :2 * H], jnp.zeros((2, 1, H), jnp.float32)], axis=-1)
        bhn = bhh[..., 2 * H:].reshape(2, 1, H)
        return wih, whh, bgi, bhn

    k0, k1 = jax.random.split(key)
    wih0, whh0, bgi0, bhn0 = one_layer(k0, input_size)
    wih1, whh1, bgi1, bhn1 = one_layer(k1, 2 * H)
    return dict(wih0=wih0, whh0=whh0, bgi0=bgi0, bhn0=bhn0,
                wih1=wih1, whh1=whh1, bgi1=bgi1, bhn1=bhn1)


# ----------------------------- pure-JAX reference ----------------------------
def reference_encoder(input_states, input_len, params):
    B, T, _ = input_states.shape
    H = params['whh0'].shape[1]
    hp = jax.lax.Precision.HIGHEST

    def run_layer(x, wih, whh, bgi, bhn):
        outs = []
        for d, reverse in ((0, False), (1, True)):
            gi_all = jnp.einsum('btd,dg->btg', x, wih[d], precision=hp) + bgi[d]
            h = jnp.zeros((B, H), jnp.float32)
            out = jnp.zeros((B, T, H), jnp.float32)
            order = range(T - 1, -1, -1) if reverse else range(T)
            for t in order:
                gi = gi_all[:, t]
                gh = jnp.dot(h, whh[d], precision=hp)
                r = jax.nn.sigmoid(gi[:, :H] + gh[:, :H])
                z = jax.nn.sigmoid(gi[:, H:2 * H] + gh[:, H:2 * H])
                n = jnp.tanh(gi[:, 2 * H:] + r * (gh[:, 2 * H:] + bhn[d]))
                h_new = (1.0 - z) * n + z * h
                valid = (t < input_len)[:, None]
                h = jnp.where(valid, h_new, h)
                out = out.at[:, t].set(jnp.where(valid, h_new, 0.0))
            outs.append(out)
        return jnp.concatenate(outs, axis=-1)

    y = run_layer(input_states.astype(jnp.float32),
                  params['wih0'], params['whh0'], params['bgi0'], params['bhn0'])
    y = run_layer(y, params['wih1'], params['whh1'], params['bgi1'], params['bhn1'])
    return y


# ----------------------------- main ------------------------------------------
if __name__ == "__main__":
    INPUT_SIZE = 300
    HIDDEN = 32
    B, T = 2, 8

    key = jax.random.PRNGKey(0)
    k_par, k_x = jax.random.split(key)
    params = init_encoder_params(k_par, INPUT_SIZE, HIDDEN)

    input_states = jax.random.normal(k_x, (B, T, INPUT_SIZE), jnp.float32)
    input_len = jnp.array([T, 5], dtype=jnp.int32)   # variable lengths (tail padding)

    fwd = jax.jit(encoder_forward)
    out = fwd(input_states, input_len, params)
    jax.block_until_ready(out)

    assert out.shape == (B, T, 2 * HIDDEN), out.shape
    assert bool(jnp.all(jnp.isfinite(out)))

    ref = reference_encoder(input_states, input_len, params)
    np.testing.assert_allclose(np.asarray(out), np.asarray(ref), atol=5e-2, rtol=0)

    print("KERNEL_OK")
</pallas_src>

<mosaic_0001>
module attributes {stable_mosaic.version = 11 : i64} {
  func.func @bigru_encoder_kernel(%arg0: memref<8x1xf32, #tpu.memory_space<vmem>>, %arg1: memref<64x300xf32, #tpu.memory_space<vmem>>, %arg2: memref<300x192xf32, #tpu.memory_space<vmem>>, %arg3: memref<2x32x96xf32, #tpu.memory_space<vmem>>, %arg4: memref<1x192xf32, #tpu.memory_space<vmem>>, %arg5: memref<2x1x32xf32, #tpu.memory_space<vmem>>, %arg6: memref<64x192xf32, #tpu.memory_space<vmem>>, %arg7: memref<2x32x96xf32, #tpu.memory_space<vmem>>, %arg8: memref<1x192xf32, #tpu.memory_space<vmem>>, %arg9: memref<2x1x32xf32, #tpu.memory_space<vmem>>, %arg10: memref<64x64xf32, #tpu.memory_space<vmem>>) attributes {dimension_semantics = [], scalar_prefetch = 0 : i64, scratch_operands = 0 : i64, tpu.core_type = #tpu.core_type<tc>} {
    %c0 = arith.constant 0 : index
    %c0_0 = arith.constant 0 : index
    %0 = vector.load %arg0[%c0, %c0_0] : memref<8x1xf32, #tpu.memory_space<vmem>>, vector<8x1xf32>
    %cst = arith.constant 0.000000e+00 : f32
    %1 = vector.broadcast %cst : f32 to vector<8x1xf32>
    %2 = arith.cmpf ogt, %0, %1 : vector<8x1xf32>
    %3 = vector.shape_cast %2 : vector<8x1xi1> to vector<8x1xi1>
    %4 = vector.broadcast %3 : vector<8x1xi1> to vector<8x32xi1>
    %cst_1 = arith.constant 1.000000e+00 : f32
    %5 = vector.broadcast %cst_1 : f32 to vector<8x1xf32>
    %6 = arith.cmpf ogt, %0, %5 : vector<8x1xf32>
    %7 = vector.shape_cast %6 : vector<8x1xi1> to vector<8x1xi1>
    %8 = vector.broadcast %7 : vector<8x1xi1> to vector<8x32xi1>
    %cst_2 = arith.constant 2.000000e+00 : f32
    %9 = vector.broadcast %cst_2 : f32 to vector<8x1xf32>
    %10 = arith.cmpf ogt, %0, %9 : vector<8x1xf32>
    %11 = vector.shape_cast %10 : vector<8x1xi1> to vector<8x1xi1>
    %12 = vector.broadcast %11 : vector<8x1xi1> to vector<8x32xi1>
    %cst_3 = arith.constant 3.000000e+00 : f32
    %13 = vector.broadcast %cst_3 : f32 to vector<8x1xf32>
    %14 = arith.cmpf ogt, %0, %13 : vector<8x1xf32>
    %15 = vector.shape_cast %14 : vector<8x1xi1> to vector<8x1xi1>
    %16 = vector.broadcast %15 : vector<8x1xi1> to vector<8x32xi1>
    %cst_4 = arith.constant 4.000000e+00 : f32
    %17 = vector.broadcast %cst_4 : f32 to vector<8x1xf32>
    %18 = arith.cmpf ogt, %0, %17 : vector<8x1xf32>
    %19 = vector.shape_cast %18 : vector<8x1xi1> to vector<8x1xi1>
    %20 = vector.broadcast %19 : vector<8x1xi1> to vector<8x32xi1>
    %cst_5 = arith.constant 5.000000e+00 : f32
    %21 = vector.broadcast %cst_5 : f32 to vector<8x1xf32>
    %22 = arith.cmpf ogt, %0, %21 : vector<8x1xf32>
    %23 = vector.shape_cast %22 : vector<8x1xi1> to vector<8x1xi1>
    %24 = vector.broadcast %23 : vector<8x1xi1> to vector<8x32xi1>
    %cst_6 = arith.constant 6.000000e+00 : f32
    %25 = vector.broadcast %cst_6 : f32 to vector<8x1xf32>
    %26 = arith.cmpf ogt, %0, %25 : vector<8x1xf32>
    %27 = vector.shape_cast %26 : vector<8x1xi1> to vector<8x1xi1>
    %28 = vector.broadcast %27 : vector<8x1xi1> to vector<8x32xi1>
    %cst_7 = arith.constant 7.000000e+00 : f32
    %29 = vector.broadcast %cst_7 : f32 to vector<8x1xf32>
    %30 = arith.cmpf ogt, %0, %29 : vector<8x1xf32>
    %31 = vector.shape_cast %30 : vector<8x1xi1> to vector<8x1xi1>
    %32 = vector.broadcast %31 : vector<8x1xi1> to vector<8x32xi1>
    %c0_8 = arith.constant 0 : index
    %c0_9 = arith.constant 0 : index
    %33 = vector.load %arg1[%c0_8, %c0_9] : memref<64x300xf32, #tpu.memory_space<vmem>>, vector<64x300xf32>
    %c0_10 = arith.constant 0 : index
    %c0_11 = arith.constant 0 : index
    %34 = vector.load %arg2[%c0_10, %c0_11] : memref<300x192xf32, #tpu.memory_space<vmem>>, vector<300x192xf32>
    %cst_12 = arith.constant dense<0.000000e+00> : vector<64x192xf32>
    %35 = tpu.matmul %33, %34, %cst_12 {dimension_numbers = #tpu.dot_dimension_numbers<[1], [0], [0], [1], [0, 0, 1, 1], [], []>} : vector<64x300xf32>, vector<300x192xf32>, vector<64x192xf32> -> vector<64x192xf32>
    %c0_13 = arith.constant 0 : index
    %c0_14 = arith.constant 0 : index
    %36 = vector.load %arg4[%c0_13, %c0_14] : memref<1x192xf32, #tpu.memory_space<vmem>>, vector<1x192xf32>
    %37 = vector.broadcast %36 : vector<1x192xf32> to vector<64x192xf32>
    %38 = arith.addf %35, %37 : vector<64x192xf32>
    %c0_15 = arith.constant 0 : index
    %c0_16 = arith.constant 0 : index
    %c0_17 = arith.constant 0 : index
    %39 = vector.load %arg3[%c0_15, %c0_16, %c0_17] : memref<2x32x96xf32, #tpu.memory_space<vmem>>, vector<1x32x96xf32>
    %40 = vector.shape_cast %39 : vector<1x32x96xf32> to vector<32x96xf32>
    %c1 = arith.constant 1 : index
    %c0_18 = arith.constant 0 : index
    %c0_19 = arith.constant 0 : index
    %41 = vector.load %arg3[%c1, %c0_18, %c0_19] : memref<2x32x96xf32, #tpu.memory_space<vmem>>, vector<1x32x96xf32>
    %42 = vector.shape_cast %41 : vector<1x32x96xf32> to vector<32x96xf32>
    %c0_20 = arith.constant 0 : index
    %c0_21 = arith.constant 0 : index
    %c0_22 = arith.constant 0 : index
    %43 = vector.load %arg5[%c0_20, %c0_21, %c0_22] : memref<2x1x32xf32, #tpu.memory_space<vmem>>, vector<1x1x32xf32>
    %44 = vector.shape_cast %43 : vector<1x1x32xf32> to vector<1x32xf32>
    %c1_23 = arith.constant 1 : index
    %c0_24 = arith.constant 0 : index
    %c0_25 = arith.constant 0 : index
    %45 = vector.load %arg5[%c1_23, %c0_24, %c0_25] : memref<2x1x32xf32, #tpu.memory_space<vmem>>, vector<1x1x32xf32>
    %46 = vector.shape_cast %45 : vector<1x1x32xf32> to vector<1x32xf32>
    %cst_26 = arith.constant 0.000000e+00 : f32
    %47 = vector.broadcast %cst_26 : f32 to vector<8x32xf32>
    %cst_27 = arith.constant 0.000000e+00 : f32
    %48 = vector.broadcast %cst_27 : f32 to vector<8x32xf32>
    %cst_28 = arith.constant dense<0.000000e+00> : vector<8x96xf32>
    %49 = tpu.matmul %47, %40, %cst_28 {dimension_numbers = #tpu.dot_dimension_numbers<[1], [0], [0], [1], [0, 0, 1, 1], [], []>} : vector<8x32xf32>, vector<32x96xf32>, vector<8x96xf32> -> vector<8x96xf32>
    %cst_29 = arith.constant dense<0.000000e+00> : vector<8x96xf32>
    %50 = tpu.matmul %48, %42, %cst_29 {dimension_numbers = #tpu.dot_dimension_numbers<[1], [0], [0], [1], [0, 0, 1, 1], [], []>} : vector<8x32xf32>, vector<32x96xf32>, vector<8x96xf32> -> vector<8x96xf32>
    %51 = vector.extract_strided_slice %38 {offsets = [0, 0], sizes = [8, 96], strides = [1, 1]} : vector<64x192xf32> to vector<8x96xf32>
    %52 = vector.extract_strided_slice %38 {offsets = [56, 96], sizes = [8, 96], strides = [1, 1]} : vector<64x192xf32> to vector<8x96xf32>
    %53 = vector.extract_strided_slice %51 {offsets = [0, 0], sizes = [8, 64], strides = [1, 1]} : vector<8x96xf32> to vector<8x64xf32>
    %54 = vector.extract_strided_slice %49 {offsets = [0, 0], sizes = [8, 64], strides = [1, 1]} : vector<8x96xf32> to vector<8x64xf32>
    %55 = arith.addf %53, %54 : vector<8x64xf32>
    %56 = arith.negf %55 : vector<8x64xf32>
    %57 = math.exp %56 : vector<8x64xf32>
    %cst_30 = arith.constant 1.000000e+00 : f32
    %58 = vector.broadcast %cst_30 : f32 to vector<8x64xf32>
    %59 = arith.addf %58, %57 : vector<8x64xf32>
    %60 = arith.divf %58, %59 : vector<8x64xf32>
    %61 = vector.extract_strided_slice %51 {offsets = [0, 64], sizes = [8, 32], strides = [1, 1]} : vector<8x96xf32> to vector<8x32xf32>
    %62 = vector.extract_strided_slice %60 {offsets = [0, 0], sizes = [8, 32], strides = [1, 1]} : vector<8x64xf32> to vector<8x32xf32>
    %63 = vector.extract_strided_slice %49 {offsets = [0, 64], sizes = [8, 32], strides = [1, 1]} : vector<8x96xf32> to vector<8x32xf32>
    %64 = vector.broadcast %44 : vector<1x32xf32> to vector<8x32xf32>
    %65 = arith.addf %63, %64 : vector<8x32xf32>
    %66 = arith.mulf %62, %65 : vector<8x32xf32>
    %67 = arith.addf %61, %66 : vector<8x32xf32>
    %68 = math.tanh %67 : vector<8x32xf32>
    %69 = vector.extract_strided_slice %60 {offsets = [0, 32], sizes = [8, 32], strides = [1, 1]} : vector<8x64xf32> to vector<8x32xf32>
    %cst_31 = arith.constant 1.000000e+00 : f32
    %70 = vector.broadcast %cst_31 : f32 to vector<8x32xf32>
    %71 = arith.subf %70, %69 : vector<8x32xf32>
    %72 = arith.mulf %71, %68 : vector<8x32xf32>
    %73 = arith.mulf %69, %47 : vector<8x32xf32>
    %74 = arith.addf %72, %73 : vector<8x32xf32>
    %75 = vector.extract_strided_slice %52 {offsets = [0, 0], sizes = [8, 64], strides = [1, 1]} : vector<8x96xf32> to vector<8x64xf32>
    %76 = vector.extract_strided_slice %50 {offsets = [0, 0], sizes = [8, 64], strides = [1, 1]} : vector<8x96xf32> to vector<8x64xf32>
    %77 = arith.addf %75, %76 : vector<8x64xf32>
    %78 = arith.negf %77 : vector<8x64xf32>
    %79 = math.exp %78 : vector<8x64xf32>
    %cst_32 = arith.constant 1.000000e+00 : f32
    %80 = vector.broadcast %cst_32 : f32 to vector<8x64xf32>
    %81 = arith.addf %80, %79 : vector<8x64xf32>
    %82 = arith.divf %80, %81 : vector<8x64xf32>
    %83 = vector.extract_strided_slice %52 {offsets = [0, 64], sizes = [8, 32], strides = [1, 1]} : vector<8x96xf32> to vector<8x32xf32>
    %84 = vector.extract_strided_slice %82 {offsets = [0, 0], sizes = [8, 32], strides = [1, 1]} : vector<8x64xf32> to vector<8x32xf32>
    %85 = vector.extract_strided_slice %50 {offsets = [0, 64], sizes = [8, 32], strides = [1, 1]} : vector<8x96xf32> to vector<8x32xf32>
    %86 = vector.broadcast %46 : vector<1x32xf32> to vector<8x32xf32>
    %87 = arith.addf %85, %86 : vector<8x32xf32>
    %88 = arith.mulf %84, %87 : vector<8x32xf32>
    %89 = arith.addf %83, %88 : vector<8x32xf32>
    %90 = math.tanh %89 : vector<8x32xf32>
    %91 = vector.extract_strided_slice %82 {offsets = [0, 32], sizes = [8, 32], strides = [1, 1]} : vector<8x64xf32> to vector<8x32xf32>
    %cst_33 = arith.constant 1.000000e+00 : f32
    %92 = vector.broadcast %cst_33 : f32 to vector<8x32xf32>
    %93 = arith.subf %92, %91 : vector<8x32xf32>
    %94 = arith.mulf %93, %90 : vector<8x32xf32>
    %95 = arith.mulf %91, %48 : vector<8x32xf32>
    %96 = arith.addf %94, %95 : vector<8x32xf32>
    %97 = arith.select %4, %74, %47 : vector<8x32xi1>, vector<8x32xf32>
    %98 = arith.select %32, %96, %48 : vector<8x32xi1>, vector<8x32xf32>
    %cst_34 = arith.constant 0.000000e+00 : f32
    %99 = vector.broadcast %cst_34 : f32 to vector<8x32xf32>
    %100 = arith.select %4, %74, %99 : vector<8x32xi1>, vector<8x32xf32>
    %cst_35 = arith.constant 0.000000e+00 : f32
    %101 = vector.broadcast %cst_35 : f32 to vector<8x32xf32>
    %102 = arith.select %32, %96, %101 : vector<8x32xi1>, vector<8x32xf32>
    %cst_36 = arith.constant dense<0.000000e+00> : vector<8x96xf32>
    %103 = tpu.matmul %97, %40, %cst_36 {dimension_numbers = #tpu.dot_dimension_numbers<[1], [0], [0], [1], [0, 0, 1, 1], [], []>} : vector<8x32xf32>, vector<32x96xf32>, vector<8x96xf32> -> vector<8x96xf32>
    %cst_37 = arith.constant dense<0.000000e+00> : vector<8x96xf32>
    %104 = tpu.matmul %98, %42, %cst_37 {dimension_numbers = #tpu.dot_dimension_numbers<[1], [0], [0], [1], [0, 0, 1, 1], [], []>} : vector<8x32xf32>, vector<32x96xf32>, vector<8x96xf32> -> vector<8x96xf32>
    %105 = vector.extract_strided_slice %38 {offsets = [8, 0], sizes = [8, 96], strides = [1, 1]} : vector<64x192xf32> to vector<8x96xf32>
    %106 = vector.extract_strided_slice %38 {offsets = [48, 96], sizes = [8, 96], strides = [1, 1]} : vector<64x192xf32> to vector<8x96xf32>
    %107 = vector.extract_strided_slice %105 {offsets = [0, 0], sizes = [8, 64], strides = [1, 1]} : vector<8x96xf32> to vector<8x64xf32>
    %108 = vector.extract_strided_slice %103 {offsets = [0, 0], sizes = [8, 64], strides = [1, 1]} : vector<8x96xf32> to vector<8x64xf32>
    %109 = arith.addf %107, %108 : vector<8x64xf32>
    %110 = arith.negf %109 : vector<8x64xf32>
    %111 = math.exp %110 : vector<8x64xf32>
    %cst_38 = arith.constant 1.000000e+00 : f32
    %112 = vector.broadcast %cst_38 : f32 to vector<8x64xf32>
    %113 = arith.addf %112, %111 : vector<8x64xf32>
    %114 = arith.divf %112, %113 : vector<8x64xf32>
    %115 = vector.extract_strided_slice %105 {offsets = [0, 64], sizes = [8, 32], strides = [1, 1]} : vector<8x96xf32> to vector<8x32xf32>
    %116 = vector.extract_strided_slice %114 {offsets = [0, 0], sizes = [8, 32], strides = [1, 1]} : vector<8x64xf32> to vector<8x32xf32>
    %117 = vector.extract_strided_slice %103 {offsets = [0, 64], sizes = [8, 32], strides = [1, 1]} : vector<8x96xf32> to vector<8x32xf32>
    %118 = vector.broadcast %44 : vector<1x32xf32> to vector<8x32xf32>
    %119 = arith.addf %117, %118 : vector<8x32xf32>
    %120 = arith.mulf %116, %119 : vector<8x32xf32>
    %121 = arith.addf %115, %120 : vector<8x32xf32>
    %122 = math.tanh %121 : vector<8x32xf32>
    %123 = vector.extract_strided_slice %114 {offsets = [0, 32], sizes = [8, 32], strides = [1, 1]} : vector<8x64xf32> to vector<8x32xf32>
    %cst_39 = arith.constant 1.000000e+00 : f32
    %124 = vector.broadcast %cst_39 : f32 to vector<8x32xf32>
    %125 = arith.subf %124, %123 : vector<8x32xf32>
    %126 = arith.mulf %125, %122 : vector<8x32xf32>
    %127 = arith.mulf %123, %97 : vector<8x32xf32>
    %128 = arith.addf %126, %127 : vector<8x32xf32>
    %129 = vector.extract_strided_slice %106 {offsets = [0, 0], sizes = [8, 64], strides = [1, 1]} : vector<8x96xf32> to vector<8x64xf32>
    %130 = vector.extract_strided_slice %104 {offsets = [0, 0], sizes = [8, 64], strides = [1, 1]} : vector<8x96xf32> to vector<8x64xf32>
    %131 = arith.addf %129, %130 : vector<8x64xf32>
    %132 = arith.negf %131 : vector<8x64xf32>
    %133 = math.exp %132 : vector<8x64xf32>
    %cst_40 = arith.constant 1.000000e+00 : f32
    %134 = vector.broadcast %cst_40 : f32 to vector<8x64xf32>
    %135 = arith.addf %134, %133 : vector<8x64xf32>
    %136 = arith.divf %134, %135 : vector<8x64xf32>
    %137 = vector.extract_strided_slice %106 {offsets = [0, 64], sizes = [8, 32], strides = [1, 1]} : vector<8x96xf32> to vector<8x32xf32>
    %138 = vector.extract_strided_slice %136 {offsets = [0, 0], sizes = [8, 32], strides = [1, 1]} : vector<8x64xf32> to vector<8x32xf32>
    %139 = vector.extract_strided_slice %104 {offsets = [0, 64], sizes = [8, 32], strides = [1, 1]} : vector<8x96xf32> to vector<8x32xf32>
    %140 = vector.broadcast %46 : vector<1x32xf32> to vector<8x32xf32>
    %141 = arith.addf %139, %140 : vector<8x32xf32>
    %142 = arith.mulf %138, %141 : vector<8x32xf32>
    %143 = arith.addf %137, %142 : vector<8x32xf32>
    %144 = math.tanh %143 : vector<8x32xf32>
    %145 = vector.extract_strided_slice %136 {offsets = [0, 32], sizes = [8, 32], strides = [1, 1]} : vector<8x64xf32> to vector<8x32xf32>
    %cst_41 = arith.constant 1.000000e+00 : f32
    %146 = vector.broadcast %cst_41 : f32 to vector<8x32xf32>
    %147 = arith.subf %146, %145 : vector<8x32xf32>
    %148 = arith.mulf %147, %144 : vector<8x32xf32>
    %149 = arith.mulf %145, %98 : vector<8x32xf32>
    %150 = arith.addf %148, %149 : vector<8x32xf32>
    %151 = arith.select %8, %128, %97 : vector<8x32xi1>, vector<8x32xf32>
    %152 = arith.select %28, %150, %98 : vector<8x32xi1>, vector<8x32xf32>
    %cst_42 = arith.constant 0.000000e+00 : f32
    %153 = vector.broadcast %cst_42 : f32 to vector<8x32xf32>
    %154 = arith.select %8, %128, %153 : vector<8x32xi1>, vector<8x32xf32>
    %cst_43 = arith.constant 0.000000e+00 : f32
    %155 = vector.broadcast %cst_43 : f32 to vector<8x32xf32>
    %156 = arith.select %28, %150, %155 : vector<8x32xi1>, vector<8x32xf32>
    %cst_44 = arith.constant dense<0.000000e+00> : vector<8x96xf32>
    %157 = tpu.matmul %151, %40, %cst_44 {dimension_numbers = #tpu.dot_dimension_numbers<[1], [0], [0], [1], [0, 0, 1, 1], [], []>} : vector<8x32xf32>, vector<32x96xf32>, vector<8x96xf32> -> vector<8x96xf32>
    %cst_45 = arith.constant dense<0.000000e+00> : vector<8x96xf32>
    %158 = tpu.matmul %152, %42, %cst_45 {dimension_numbers = #tpu.dot_dimension_numbers<[1], [0], [0], [1], [0, 0, 1, 1], [], []>} : vector<8x32xf32>, vector<32x96xf32>, vector<8x96xf32> -> vector<8x96xf32>
    %159 = vector.extract_strided_slice %38 {offsets = [16, 0], sizes = [8, 96], strides = [1, 1]} : vector<64x192xf32> to vector<8x96xf32>
    %160 = vector.extract_strided_slice %38 {offsets = [40, 96], sizes = [8, 96], strides = [1, 1]} : vector<64x192xf32> to vector<8x96xf32>
    %161 = vector.extract_strided_slice %159 {offsets = [0, 0], sizes = [8, 64], strides = [1, 1]} : vector<8x96xf32> to vector<8x64xf32>
    %162 = vector.extract_strided_slice %157 {offsets = [0, 0], sizes = [8, 64], strides = [1, 1]} : vector<8x96xf32> to vector<8x64xf32>
    %163 = arith.addf %161, %162 : vector<8x64xf32>
    %164 = arith.negf %163 : vector<8x64xf32>
    %165 = math.exp %164 : vector<8x64xf32>
    %cst_46 = arith.constant 1.000000e+00 : f32
    %166 = vector.broadcast %cst_46 : f32 to vector<8x64xf32>
    %167 = arith.addf %166, %165 : vector<8x64xf32>
    %168 = arith.divf %166, %167 : vector<8x64xf32>
    %169 = vector.extract_strided_slice %159 {offsets = [0, 64], sizes = [8, 32], strides = [1, 1]} : vector<8x96xf32> to vector<8x32xf32>
    %170 = vector.extract_strided_slice %168 {offsets = [0, 0], sizes = [8, 32], strides = [1, 1]} : vector<8x64xf32> to vector<8x32xf32>
    %171 = vector.extract_strided_slice %157 {offsets = [0, 64], sizes = [8, 32], strides = [1, 1]} : vector<8x96xf32> to vector<8x32xf32>
    %172 = vector.broadcast %44 : vector<1x32xf32> to vector<8x32xf32>
    %173 = arith.addf %171, %172 : vector<8x32xf32>
    %174 = arith.mulf %170, %173 : vector<8x32xf32>
    %175 = arith.addf %169, %174 : vector<8x32xf32>
    %176 = math.tanh %175 : vector<8x32xf32>
    %177 = vector.extract_strided_slice %168 {offsets = [0, 32], sizes = [8, 32], strides = [1, 1]} : vector<8x64xf32> to vector<8x32xf32>
    %cst_47 = arith.constant 1.000000e+00 : f32
    %178 = vector.broadcast %cst_47 : f32 to vector<8x32xf32>
    %179 = arith.subf %178, %177 : vector<8x32xf32>
    %180 = arith.mulf %179, %176 : vector<8x32xf32>
    %181 = arith.mulf %177, %151 : vector<8x32xf32>
    %182 = arith.addf %180, %181 : vector<8x32xf32>
    %183 = vector.extract_strided_slice %160 {offsets = [0, 0], sizes = [8, 64], strides = [1, 1]} : vector<8x96xf32> to vector<8x64xf32>
    %184 = vector.extract_strided_slice %158 {offsets = [0, 0], sizes = [8, 64], strides = [1, 1]} : vector<8x96xf32> to vector<8x64xf32>
    %185 = arith.addf %183, %184 : vector<8x64xf32>
    %186 = arith.negf %185 : vector<8x64xf32>
    %187 = math.exp %186 : vector<8x64xf32>
    %cst_48 = arith.constant 1.000000e+00 : f32
    %188 = vector.broadcast %cst_48 : f32 to vector<8x64xf32>
    %189 = arith.addf %188, %187 : vector<8x64xf32>
    %190 = arith.divf %188, %189 : vector<8x64xf32>
    %191 = vector.extract_strided_slice %160 {offsets = [0, 64], sizes = [8, 32], strides = [1, 1]} : vector<8x96xf32> to vector<8x32xf32>
    %192 = vector.extract_strided_slice %190 {offsets = [0, 0], sizes = [8, 32], strides = [1, 1]} : vector<8x64xf32> to vector<8x32xf32>
    %193 = vector.extract_strided_slice %158 {offsets = [0, 64], sizes = [8, 32], strides = [1, 1]} : vector<8x96xf32> to vector<8x32xf32>
    %194 = vector.broadcast %46 : vector<1x32xf32> to vector<8x32xf32>
    %195 = arith.addf %193, %194 : vector<8x32xf32>
    %196 = arith.mulf %192, %195 : vector<8x32xf32>
    %197 = arith.addf %191, %196 : vector<8x32xf32>
    %198 = math.tanh %197 : vector<8x32xf32>
    %199 = vector.extract_strided_slice %190 {offsets = [0, 32], sizes = [8, 32], strides = [1, 1]} : vector<8x64xf32> to vector<8x32xf32>
    %cst_49 = arith.constant 1.000000e+00 : f32
    %200 = vector.broadcast %cst_49 : f32 to vector<8x32xf32>
    %201 = arith.subf %200, %199 : vector<8x32xf32>
    %202 = arith.mulf %201, %198 : vector<8x32xf32>
    %203 = arith.mulf %199, %152 : vector<8x32xf32>
    %204 = arith.addf %202, %203 : vector<8x32xf32>
    %205 = arith.select %12, %182, %151 : vector<8x32xi1>, vector<8x32xf32>
    %206 = arith.select %24, %204, %152 : vector<8x32xi1>, vector<8x32xf32>
    %cst_50 = arith.constant 0.000000e+00 : f32
    %207 = vector.broadcast %cst_50 : f32 to vector<8x32xf32>
    %208 = arith.select %12, %182, %207 : vector<8x32xi1>, vector<8x32xf32>
    %cst_51 = arith.constant 0.000000e+00 : f32
    %209 = vector.broadcast %cst_51 : f32 to vector<8x32xf32>
    %210 = arith.select %24, %204, %209 : vector<8x32xi1>, vector<8x32xf32>
    %cst_52 = arith.constant dense<0.000000e+00> : vector<8x96xf32>
    %211 = tpu.matmul %205, %40, %cst_52 {dimension_numbers = #tpu.dot_dimension_numbers<[1], [0], [0], [1], [0, 0, 1, 1], [], []>} : vector<8x32xf32>, vector<32x96xf32>, vector<8x96xf32> -> vector<8x96xf32>
    %cst_53 = arith.constant dense<0.000000e+00> : vector<8x96xf32>
    %212 = tpu.matmul %206, %42, %cst_53 {dimension_numbers = #tpu.dot_dimension_numbers<[1], [0], [0], [1], [0, 0, 1, 1], [], []>} : vector<8x32xf32>, vector<32x96xf32>, vector<8x96xf32> -> vector<8x96xf32>
    %213 = vector.extract_strided_slice %38 {offsets = [24, 0], sizes = [8, 96], strides = [1, 1]} : vector<64x192xf32> to vector<8x96xf32>
    %214 = vector.extract_strided_slice %38 {offsets = [32, 96], sizes = [8, 96], strides = [1, 1]} : vector<64x192xf32> to vector<8x96xf32>
    %215 = vector.extract_strided_slice %213 {offsets = [0, 0], sizes = [8, 64], strides = [1, 1]} : vector<8x96xf32> to vector<8x64xf32>
    %216 = vector.extract_strided_slice %211 {offsets = [0, 0], sizes = [8, 64], strides = [1, 1]} : vector<8x96xf32> to vector<8x64xf32>
    %217 = arith.addf %215, %216 : vector<8x64xf32>
    %218 = arith.negf %217 : vector<8x64xf32>
    %219 = math.exp %218 : vector<8x64xf32>
    %cst_54 = arith.constant 1.000000e+00 : f32
    %220 = vector.broadcast %cst_54 : f32 to vector<8x64xf32>
    %221 = arith.addf %220, %219 : vector<8x64xf32>
    %222 = arith.divf %220, %221 : vector<8x64xf32>
    %223 = vector.extract_strided_slice %213 {offsets = [0, 64], sizes = [8, 32], strides = [1, 1]} : vector<8x96xf32> to vector<8x32xf32>
    %224 = vector.extract_strided_slice %222 {offsets = [0, 0], sizes = [8, 32], strides = [1, 1]} : vector<8x64xf32> to vector<8x32xf32>
    %225 = vector.extract_strided_slice %211 {offsets = [0, 64], sizes = [8, 32], strides = [1, 1]} : vector<8x96xf32> to vector<8x32xf32>
    %226 = vector.broadcast %44 : vector<1x32xf32> to vector<8x32xf32>
    %227 = arith.addf %225, %226 : vector<8x32xf32>
    %228 = arith.mulf %224, %227 : vector<8x32xf32>
    %229 = arith.addf %223, %228 : vector<8x32xf32>
    %230 = math.tanh %229 : vector<8x32xf32>
    %231 = vector.extract_strided_slice %222 {offsets = [0, 32], sizes = [8, 32], strides = [1, 1]} : vector<8x64xf32> to vector<8x32xf32>
    %cst_55 = arith.constant 1.000000e+00 : f32
    %232 = vector.broadcast %cst_55 : f32 to vector<8x32xf32>
    %233 = arith.subf %232, %231 : vector<8x32xf32>
    %234 = arith.mulf %233, %230 : vector<8x32xf32>
    %235 = arith.mulf %231, %205 : vector<8x32xf32>
    %236 = arith.addf %234, %235 : vector<8x32xf32>
    %237 = vector.extract_strided_slice %214 {offsets = [0, 0], sizes = [8, 64], strides = [1, 1]} : vector<8x96xf32> to vector<8x64xf32>
    %238 = vector.extract_strided_slice %212 {offsets = [0, 0], sizes = [8, 64], strides = [1, 1]} : vector<8x96xf32> to vector<8x64xf32>
    %239 = arith.addf %237, %238 : vector<8x64xf32>
    %240 = arith.negf %239 : vector<8x64xf32>
    %241 = math.exp %240 : vector<8x64xf32>
    %cst_56 = arith.constant 1.000000e+00 : f32
    %242 = vector.broadcast %cst_56 : f32 to vector<8x64xf32>
    %243 = arith.addf %242, %241 : vector<8x64xf32>
    %244 = arith.divf %242, %243 : vector<8x64xf32>
    %245 = vector.extract_strided_slice %214 {offsets = [0, 64], sizes = [8, 32], strides = [1, 1]} : vector<8x96xf32> to vector<8x32xf32>
    %246 = vector.extract_strided_slice %244 {offsets = [0, 0], sizes = [8, 32], strides = [1, 1]} : vector<8x64xf32> to vector<8x32xf32>
    %247 = vector.extract_strided_slice %212 {offsets = [0, 64], sizes = [8, 32], strides = [1, 1]} : vector<8x96xf32> to vector<8x32xf32>
    %248 = vector.broadcast %46 : vector<1x32xf32> to vector<8x32xf32>
    %249 = arith.addf %247, %248 : vector<8x32xf32>
    %250 = arith.mulf %246, %249 : vector<8x32xf32>
    %251 = arith.addf %245, %250 : vector<8x32xf32>
    %252 = math.tanh %251 : vector<8x32xf32>
    %253 = vector.extract_strided_slice %244 {offsets = [0, 32], sizes = [8, 32], strides = [1, 1]} : vector<8x64xf32> to vector<8x32xf32>
    %cst_57 = arith.constant 1.000000e+00 : f32
    %254 = vector.broadcast %cst_57 : f32 to vector<8x32xf32>
    %255 = arith.subf %254, %253 : vector<8x32xf32>
    %256 = arith.mulf %255, %252 : vector<8x32xf32>
    %257 = arith.mulf %253, %206 : vector<8x32xf32>
    %258 = arith.addf %256, %257 : vector<8x32xf32>
    %259 = arith.select %16, %236, %205 : vector<8x32xi1>, vector<8x32xf32>
    %260 = arith.select %20, %258, %206 : vector<8x32xi1>, vector<8x32xf32>
    %cst_58 = arith.constant 0.000000e+00 : f32
    %261 = vector.broadcast %cst_58 : f32 to vector<8x32xf32>
    %262 = arith.select %16, %236, %261 : vector<8x32xi1>, vector<8x32xf32>
    %cst_59 = arith.constant 0.000000e+00 : f32
    %263 = vector.broadcast %cst_59 : f32 to vector<8x32xf32>
    %264 = arith.select %20, %258, %263 : vector<8x32xi1>, vector<8x32xf32>
    %cst_60 = arith.constant dense<0.000000e+00> : vector<8x96xf32>
    %265 = tpu.matmul %259, %40, %cst_60 {dimension_numbers = #tpu.dot_dimension_numbers<[1], [0], [0], [1], [0, 0, 1, 1], [], []>} : vector<8x32xf32>, vector<32x96xf32>, vector<8x96xf32> -> vector<8x96xf32>
    %cst_61 = arith.constant dense<0.000000e+00> : vector<8x96xf32>
    %266 = tpu.matmul %260, %42, %cst_61 {dimension_numbers = #tpu.dot_dimension_numbers<[1], [0], [0], [1], [0, 0, 1, 1], [], []>} : vector<8x32xf32>, vector<32x96xf32>, vector<8x96xf32> -> vector<8x96xf32>
    %267 = vector.extract_strided_slice %38 {offsets = [32, 0], sizes = [8, 96], strides = [1, 1]} : vector<64x192xf32> to vector<8x96xf32>
    %268 = vector.extract_strided_slice %38 {offsets = [24, 96], sizes = [8, 96], strides = [1, 1]} : vector<64x192xf32> to vector<8x96xf32>
    %269 = vector.extract_strided_slice %267 {offsets = [0, 0], sizes = [8, 64], strides = [1, 1]} : vector<8x96xf32> to vector<8x64xf32>
    %270 = vector.extract_strided_slice %265 {offsets = [0, 0], sizes = [8, 64], strides = [1, 1]} : vector<8x96xf32> to vector<8x64xf32>
    %271 = arith.addf %269, %270 : vector<8x64xf32>
    %272 = arith.negf %271 : vector<8x64xf32>
    %273 = math.exp %272 : vector<8x64xf32>
    %cst_62 = arith.constant 1.000000e+00 : f32
    %274 = vector.broadcast %cst_62 : f32 to vector<8x64xf32>
    %275 = arith.addf %274, %273 : vector<8x64xf32>
    %276 = arith.divf %274, %275 : vector<8x64xf32>
    %277 = vector.extract_strided_slice %267 {offsets = [0, 64], sizes = [8, 32], strides = [1, 1]} : vector<8x96xf32> to vector<8x32xf32>
    %278 = vector.extract_strided_slice %276 {offsets = [0, 0], sizes = [8, 32], strides = [1, 1]} : vector<8x64xf32> to vector<8x32xf32>
    %279 = vector.extract_strided_slice %265 {offsets = [0, 64], sizes = [8, 32], strides = [1, 1]} : vector<8x96xf32> to vector<8x32xf32>
    %280 = vector.broadcast %44 : vector<1x32xf32> to vector<8x32xf32>
    %281 = arith.addf %279, %280 : vector<8x32xf32>
    %282 = arith.mulf %278, %281 : vector<8x32xf32>
    %283 = arith.addf %277, %282 : vector<8x32xf32>
    %284 = math.tanh %283 : vector<8x32xf32>
    %285 = vector.extract_strided_slice %276 {offsets = [0, 32], sizes = [8, 32], strides = [1, 1]} : vector<8x64xf32> to vector<8x32xf32>
    %cst_63 = arith.constant 1.000000e+00 : f32
    %286 = vector.broadcast %cst_63 : f32 to vector<8x32xf32>
    %287 = arith.subf %286, %285 : vector<8x32xf32>
    %288 = arith.mulf %287, %284 : vector<8x32xf32>
    %289 = arith.mulf %285, %259 : vector<8x32xf32>
    %290 = arith.addf %288, %289 : vector<8x32xf32>
    %291 = vector.extract_strided_slice %268 {offsets = [0, 0], sizes = [8, 64], strides = [1, 1]} : vector<8x96xf32> to vector<8x64xf32>
    %292 = vector.extract_strided_slice %266 {offsets = [0, 0], sizes = [8, 64], strides = [1, 1]} : vector<8x96xf32> to vector<8x64xf32>
    %293 = arith.addf %291, %292 : vector<8x64xf32>
    %294 = arith.negf %293 : vector<8x64xf32>
    %295 = math.exp %294 : vector<8x64xf32>
    %cst_64 = arith.constant 1.000000e+00 : f32
    %296 = vector.broadcast %cst_64 : f32 to vector<8x64xf32>
    %297 = arith.addf %296, %295 : vector<8x64xf32>
    %298 = arith.divf %296, %297 : vector<8x64xf32>
    %299 = vector.extract_strided_slice %268 {offsets = [0, 64], sizes = [8, 32], strides = [1, 1]} : vector<8x96xf32> to vector<8x32xf32>
    %300 = vector.extract_strided_slice %298 {offsets = [0, 0], sizes = [8, 32], strides = [1, 1]} : vector<8x64xf32> to vector<8x32xf32>
    %301 = vector.extract_strided_slice %266 {offsets = [0, 64], sizes = [8, 32], strides = [1, 1]} : vector<8x96xf32> to vector<8x32xf32>
    %302 = vector.broadcast %46 : vector<1x32xf32> to vector<8x32xf32>
    %303 = arith.addf %301, %302 : vector<8x32xf32>
    %304 = arith.mulf %300, %303 : vector<8x32xf32>
    %305 = arith.addf %299, %304 : vector<8x32xf32>
    %306 = math.tanh %305 : vector<8x32xf32>
    %307 = vector.extract_strided_slice %298 {offsets = [0, 32], sizes = [8, 32], strides = [1, 1]} : vector<8x64xf32> to vector<8x32xf32>
    %cst_65 = arith.constant 1.000000e+00 : f32
    %308 = vector.broadcast %cst_65 : f32 to vector<8x32xf32>
    %309 = arith.subf %308, %307 : vector<8x32xf32>
    %310 = arith.mulf %309, %306 : vector<8x32xf32>
    %311 = arith.mulf %307, %260 : vector<8x32xf32>
    %312 = arith.addf %310, %311 : vector<8x32xf32>
    %313 = arith.select %20, %290, %259 : vector<8x32xi1>, vector<8x32xf32>
    %314 = arith.select %16, %312, %260 : vector<8x32xi1>, vector<8x32xf32>
    %cst_66 = arith.constant 0.000000e+00 : f32
    %315 = vector.broadcast %cst_66 : f32 to vector<8x32xf32>
    %316 = arith.select %20, %290, %315 : vector<8x32xi1>, vector<8x32xf32>
    %cst_67 = arith.constant 0.000000e+00 : f32
    %317 = vector.broadcast %cst_67 : f32 to vector<8x32xf32>
    %318 = arith.select %16, %312, %317 : vector<8x32xi1>, vector<8x32xf32>
    %cst_68 = arith.constant dense<0.000000e+00> : vector<8x96xf32>
    %319 = tpu.matmul %313, %40, %cst_68 {dimension_numbers = #tpu.dot_dimension_numbers<[1], [0], [0], [1], [0, 0, 1, 1], [], []>} : vector<8x32xf32>, vector<32x96xf32>, vector<8x96xf32> -> vector<8x96xf32>
    %cst_69 = arith.constant dense<0.000000e+00> : vector<8x96xf32>
    %320 = tpu.matmul %314, %42, %cst_69 {dimension_numbers = #tpu.dot_dimension_numbers<[1], [0], [0], [1], [0, 0, 1, 1], [], []>} : vector<8x32xf32>, vector<32x96xf32>, vector<8x96xf32> -> vector<8x96xf32>
    %321 = vector.extract_strided_slice %38 {offsets = [40, 0], sizes = [8, 96], strides = [1, 1]} : vector<64x192xf32> to vector<8x96xf32>
    %322 = vector.extract_strided_slice %38 {offsets = [16, 96], sizes = [8, 96], strides = [1, 1]} : vector<64x192xf32> to vector<8x96xf32>
    %323 = vector.extract_strided_slice %321 {offsets = [0, 0], sizes = [8, 64], strides = [1, 1]} : vector<8x96xf32> to vector<8x64xf32>
    %324 = vector.extract_strided_slice %319 {offsets = [0, 0], sizes = [8, 64], strides = [1, 1]} : vector<8x96xf32> to vector<8x64xf32>
    %325 = arith.addf %323, %324 : vector<8x64xf32>
    %326 = arith.negf %325 : vector<8x64xf32>
    %327 = math.exp %326 : vector<8x64xf32>
    %cst_70 = arith.constant 1.000000e+00 : f32
    %328 = vector.broadcast %cst_70 : f32 to vector<8x64xf32>
    %329 = arith.addf %328, %327 : vector<8x64xf32>
    %330 = arith.divf %328, %329 : vector<8x64xf32>
    %331 = vector.extract_strided_slice %321 {offsets = [0, 64], sizes = [8, 32], strides = [1, 1]} : vector<8x96xf32> to vector<8x32xf32>
    %332 = vector.extract_strided_slice %330 {offsets = [0, 0], sizes = [8, 32], strides = [1, 1]} : vector<8x64xf32> to vector<8x32xf32>
    %333 = vector.extract_strided_slice %319 {offsets = [0, 64], sizes = [8, 32], strides = [1, 1]} : vector<8x96xf32> to vector<8x32xf32>
    %334 = vector.broadcast %44 : vector<1x32xf32> to vector<8x32xf32>
    %335 = arith.addf %333, %334 : vector<8x32xf32>
    %336 = arith.mulf %332, %335 : vector<8x32xf32>
    %337 = arith.addf %331, %336 : vector<8x32xf32>
    %338 = math.tanh %337 : vector<8x32xf32>
    %339 = vector.extract_strided_slice %330 {offsets = [0, 32], sizes = [8, 32], strides = [1, 1]} : vector<8x64xf32> to vector<8x32xf32>
    %cst_71 = arith.constant 1.000000e+00 : f32
    %340 = vector.broadcast %cst_71 : f32 to vector<8x32xf32>
    %341 = arith.subf %340, %339 : vector<8x32xf32>
    %342 = arith.mulf %341, %338 : vector<8x32xf32>
    %343 = arith.mulf %339, %313 : vector<8x32xf32>
    %344 = arith.addf %342, %343 : vector<8x32xf32>
    %345 = vector.extract_strided_slice %322 {offsets = [0, 0], sizes = [8, 64], strides = [1, 1]} : vector<8x96xf32> to vector<8x64xf32>
    %346 = vector.extract_strided_slice %320 {offsets = [0, 0], sizes = [8, 64], strides = [1, 1]} : vector<8x96xf32> to vector<8x64xf32>
    %347 = arith.addf %345, %346 : vector<8x64xf32>
    %348 = arith.negf %347 : vector<8x64xf32>
    %349 = math.exp %348 : vector<8x64xf32>
    %cst_72 = arith.constant 1.000000e+00 : f32
    %350 = vector.broadcast %cst_72 : f32 to vector<8x64xf32>
    %351 = arith.addf %350, %349 : vector<8x64xf32>
    %352 = arith.divf %350, %351 : vector<8x64xf32>
    %353 = vector.extract_strided_slice %322 {offsets = [0, 64], sizes = [8, 32], strides = [1, 1]} : vector<8x96xf32> to vector<8x32xf32>
    %354 = vector.extract_strided_slice %352 {offsets = [0, 0], sizes = [8, 32], strides = [1, 1]} : vector<8x64xf32> to vector<8x32xf32>
    %355 = vector.extract_strided_slice %320 {offsets = [0, 64], sizes = [8, 32], strides = [1, 1]} : vector<8x96xf32> to vector<8x32xf32>
    %356 = vector.broadcast %46 : vector<1x32xf32> to vector<8x32xf32>
    %357 = arith.addf %355, %356 : vector<8x32xf32>
    %358 = arith.mulf %354, %357 : vector<8x32xf32>
    %359 = arith.addf %353, %358 : vector<8x32xf32>
    %360 = math.tanh %359 : vector<8x32xf32>
    %361 = vector.extract_strided_slice %352 {offsets = [0, 32], sizes = [8, 32], strides = [1, 1]} : vector<8x64xf32> to vector<8x32xf32>
    %cst_73 = arith.constant 1.000000e+00 : f32
    %362 = vector.broadcast %cst_73 : f32 to vector<8x32xf32>
    %363 = arith.subf %362, %361 : vector<8x32xf32>
    %364 = arith.mulf %363, %360 : vector<8x32xf32>
    %365 = arith.mulf %361, %314 : vector<8x32xf32>
    %366 = arith.addf %364, %365 : vector<8x32xf32>
    %367 = arith.select %24, %344, %313 : vector<8x32xi1>, vector<8x32xf32>
    %368 = arith.select %12, %366, %314 : vector<8x32xi1>, vector<8x32xf32>
    %cst_74 = arith.constant 0.000000e+00 : f32
    %369 = vector.broadcast %cst_74 : f32 to vector<8x32xf32>
    %370 = arith.select %24, %344, %369 : vector<8x32xi1>, vector<8x32xf32>
    %cst_75 = arith.constant 0.000000e+00 : f32
    %371 = vector.broadcast %cst_75 : f32 to vector<8x32xf32>
    %372 = arith.select %12, %366, %371 : vector<8x32xi1>, vector<8x32xf32>
    %cst_76 = arith.constant dense<0.000000e+00> : vector<8x96xf32>
    %373 = tpu.matmul %367, %40, %cst_76 {dimension_numbers = #tpu.dot_dimension_numbers<[1], [0], [0], [1], [0, 0, 1, 1], [], []>} : vector<8x32xf32>, vector<32x96xf32>, vector<8x96xf32> -> vector<8x96xf32>
    %cst_77 = arith.constant dense<0.000000e+00> : vector<8x96xf32>
    %374 = tpu.matmul %368, %42, %cst_77 {dimension_numbers = #tpu.dot_dimension_numbers<[1], [0], [0], [1], [0, 0, 1, 1], [], []>} : vector<8x32xf32>, vector<32x96xf32>, vector<8x96xf32> -> vector<8x96xf32>
    %375 = vector.extract_strided_slice %38 {offsets = [48, 0], sizes = [8, 96], strides = [1, 1]} : vector<64x192xf32> to vector<8x96xf32>
    %376 = vector.extract_strided_slice %38 {offsets = [8, 96], sizes = [8, 96], strides = [1, 1]} : vector<64x192xf32> to vector<8x96xf32>
    %377 = vector.extract_strided_slice %375 {offsets = [0, 0], sizes = [8, 64], strides = [1, 1]} : vector<8x96xf32> to vector<8x64xf32>
    %378 = vector.extract_strided_slice %373 {offsets = [0, 0], sizes = [8, 64], strides = [1, 1]} : vector<8x96xf32> to vector<8x64xf32>
    %379 = arith.addf %377, %378 : vector<8x64xf32>
    %380 = arith.negf %379 : vector<8x64xf32>
    %381 = math.exp %380 : vector<8x64xf32>
    %cst_78 = arith.constant 1.000000e+00 : f32
    %382 = vector.broadcast %cst_78 : f32 to vector<8x64xf32>
    %383 = arith.addf %382, %381 : vector<8x64xf32>
    %384 = arith.divf %382, %383 : vector<8x64xf32>
    %385 = vector.extract_strided_slice %375 {offsets = [0, 64], sizes = [8, 32], strides = [1, 1]} : vector<8x96xf32> to vector<8x32xf32>
    %386 = vector.extract_strided_slice %384 {offsets = [0, 0], sizes = [8, 32], strides = [1, 1]} : vector<8x64xf32> to vector<8x32xf32>
    %387 = vector.extract_strided_slice %373 {offsets = [0, 64], sizes = [8, 32], strides = [1, 1]} : vector<8x96xf32> to vector<8x32xf32>
    %388 = vector.broadcast %44 : vector<1x32xf32> to vector<8x32xf32>
    %389 = arith.addf %387, %388 : vector<8x32xf32>
    %390 = arith.mulf %386, %389 : vector<8x32xf32>
    %391 = arith.addf %385, %390 : vector<8x32xf32>
    %392 = math.tanh %391 : vector<8x32xf32>
    %393 = vector.extract_strided_slice %384 {offsets = [0, 32], sizes = [8, 32], strides = [1, 1]} : vector<8x64xf32> to vector<8x32xf32>
    %cst_79 = arith.constant 1.000000e+00 : f32
    %394 = vector.broadcast %cst_79 : f32 to vector<8x32xf32>
    %395 = arith.subf %394, %393 : vector<8x32xf32>
    %396 = arith.mulf %395, %392 : vector<8x32xf32>
    %397 = arith.mulf %393, %367 : vector<8x32xf32>
    %398 = arith.addf %396, %397 : vector<8x32xf32>
    %399 = vector.extract_strided_slice %376 {offsets = [0, 0], sizes = [8, 64], strides = [1, 1]} : vector<8x96xf32> to vector<8x64xf32>
    %400 = vector.extract_strided_slice %374 {offsets = [0, 0], sizes = [8, 64], strides = [1, 1]} : vector<8x96xf32> to vector<8x64xf32>
    %401 = arith.addf %399, %400 : vector<8x64xf32>
    %402 = arith.negf %401 : vector<8x64xf32>
    %403 = math.exp %402 : vector<8x64xf32>
    %cst_80 = arith.constant 1.000000e+00 : f32
    %404 = vector.broadcast %cst_80 : f32 to vector<8x64xf32>
    %405 = arith.addf %404, %403 : vector<8x64xf32>
    %406 = arith.divf %404, %405 : vector<8x64xf32>
    %407 = vector.extract_strided_slice %376 {offsets = [0, 64], sizes = [8, 32], strides = [1, 1]} : vector<8x96xf32> to vector<8x32xf32>
    %408 = vector.extract_strided_slice %406 {offsets = [0, 0], sizes = [8, 32], strides = [1, 1]} : vector<8x64xf32> to vector<8x32xf32>
    %409 = vector.extract_strided_slice %374 {offsets = [0, 64], sizes = [8, 32], strides = [1, 1]} : vector<8x96xf32> to vector<8x32xf32>
    %410 = vector.broadcast %46 : vector<1x32xf32> to vector<8x32xf32>
    %411 = arith.addf %409, %410 : vector<8x32xf32>
    %412 = arith.mulf %408, %411 : vector<8x32xf32>
    %413 = arith.addf %407, %412 : vector<8x32xf32>
    %414 = math.tanh %413 : vector<8x32xf32>
    %415 = vector.extract_strided_slice %406 {offsets = [0, 32], sizes = [8, 32], strides = [1, 1]} : vector<8x64xf32> to vector<8x32xf32>
    %cst_81 = arith.constant 1.000000e+00 : f32
    %416 = vector.broadcast %cst_81 : f32 to vector<8x32xf32>
    %417 = arith.subf %416, %415 : vector<8x32xf32>
    %418 = arith.mulf %417, %414 : vector<8x32xf32>
    %419 = arith.mulf %415, %368 : vector<8x32xf32>
    %420 = arith.addf %418, %419 : vector<8x32xf32>
    %421 = arith.select %28, %398, %367 : vector<8x32xi1>, vector<8x32xf32>
    %422 = arith.select %8, %420, %368 : vector<8x32xi1>, vector<8x32xf32>
    %cst_82 = arith.constant 0.000000e+00 : f32
    %423 = vector.broadcast %cst_82 : f32 to vector<8x32xf32>
    %424 = arith.select %28, %398, %423 : vector<8x32xi1>, vector<8x32xf32>
    %cst_83 = arith.constant 0.000000e+00 : f32
    %425 = vector.broadcast %cst_83 : f32 to vector<8x32xf32>
    %426 = arith.select %8, %420, %425 : vector<8x32xi1>, vector<8x32xf32>
    %cst_84 = arith.constant dense<0.000000e+00> : vector<8x96xf32>
    %427 = tpu.matmul %421, %40, %cst_84 {dimension_numbers = #tpu.dot_dimension_numbers<[1], [0], [0], [1], [0, 0, 1, 1], [], []>} : vector<8x32xf32>, vector<32x96xf32>, vector<8x96xf32> -> vector<8x96xf32>
    %cst_85 = arith.constant dense<0.000000e+00> : vector<8x96xf32>
    %428 = tpu.matmul %422, %42, %cst_85 {dimension_numbers = #tpu.dot_dimension_numbers<[1], [0], [0], [1], [0, 0, 1, 1], [], []>} : vector<8x32xf32>, vector<32x96xf32>, vector<8x96xf32> -> vector<8x96xf32>
    %429 = vector.extract_strided_slice %38 {offsets = [56, 0], sizes = [8, 96], strides = [1, 1]} : vector<64x192xf32> to vector<8x96xf32>
    %430 = vector.extract_strided_slice %38 {offsets = [0, 96], sizes = [8, 96], strides = [1, 1]} : vector<64x192xf32> to vector<8x96xf32>
    %431 = vector.extract_strided_slice %429 {offsets = [0, 0], sizes = [8, 64], strides = [1, 1]} : vector<8x96xf32> to vector<8x64xf32>
    %432 = vector.extract_strided_slice %427 {offsets = [0, 0], sizes = [8, 64], strides = [1, 1]} : vector<8x96xf32> to vector<8x64xf32>
    %433 = arith.addf %431, %432 : vector<8x64xf32>
    %434 = arith.negf %433 : vector<8x64xf32>
    %435 = math.exp %434 : vector<8x64xf32>
    %cst_86 = arith.constant 1.000000e+00 : f32
    %436 = vector.broadcast %cst_86 : f32 to vector<8x64xf32>
    %437 = arith.addf %436, %435 : vector<8x64xf32>
    %438 = arith.divf %436, %437 : vector<8x64xf32>
    %439 = vector.extract_strided_slice %429 {offsets = [0, 64], sizes = [8, 32], strides = [1, 1]} : vector<8x96xf32> to vector<8x32xf32>
    %440 = vector.extract_strided_slice %438 {offsets = [0, 0], sizes = [8, 32], strides = [1, 1]} : vector<8x64xf32> to vector<8x32xf32>
    %441 = vector.extract_strided_slice %427 {offsets = [0, 64], sizes = [8, 32], strides = [1, 1]} : vector<8x96xf32> to vector<8x32xf32>
    %442 = vector.broadcast %44 : vector<1x32xf32> to vector<8x32xf32>
    %443 = arith.addf %441, %442 : vector<8x32xf32>
    %444 = arith.mulf %440, %443 : vector<8x32xf32>
    %445 = arith.addf %439, %444 : vector<8x32xf32>
    %446 = math.tanh %445 : vector<8x32xf32>
    %447 = vector.extract_strided_slice %438 {offsets = [0, 32], sizes = [8, 32], strides = [1, 1]} : vector<8x64xf32> to vector<8x32xf32>
    %cst_87 = arith.constant 1.000000e+00 : f32
    %448 = vector.broadcast %cst_87 : f32 to vector<8x32xf32>
    %449 = arith.subf %448, %447 : vector<8x32xf32>
    %450 = arith.mulf %449, %446 : vector<8x32xf32>
    %451 = arith.mulf %447, %421 : vector<8x32xf32>
    %452 = arith.addf %450, %451 : vector<8x32xf32>
    %453 = vector.extract_strided_slice %430 {offsets = [0, 0], sizes = [8, 64], strides = [1, 1]} : vector<8x96xf32> to vector<8x64xf32>
    %454 = vector.extract_strided_slice %428 {offsets = [0, 0], sizes = [8, 64], strides = [1, 1]} : vector<8x96xf32> to vector<8x64xf32>
    %455 = arith.addf %453, %454 : vector<8x64xf32>
    %456 = arith.negf %455 : vector<8x64xf32>
    %457 = math.exp %456 : vector<8x64xf32>
    %cst_88 = arith.constant 1.000000e+00 : f32
    %458 = vector.broadcast %cst_88 : f32 to vector<8x64xf32>
    %459 = arith.addf %458, %457 : vector<8x64xf32>
    %460 = arith.divf %458, %459 : vector<8x64xf32>
    %461 = vector.extract_strided_slice %430 {offsets = [0, 64], sizes = [8, 32], strides = [1, 1]} : vector<8x96xf32> to vector<8x32xf32>
    %462 = vector.extract_strided_slice %460 {offsets = [0, 0], sizes = [8, 32], strides = [1, 1]} : vector<8x64xf32> to vector<8x32xf32>
    %463 = vector.extract_strided_slice %428 {offsets = [0, 64], sizes = [8, 32], strides = [1, 1]} : vector<8x96xf32> to vector<8x32xf32>
    %464 = vector.broadcast %46 : vector<1x32xf32> to vector<8x32xf32>
    %465 = arith.addf %463, %464 : vector<8x32xf32>
    %466 = arith.mulf %462, %465 : vector<8x32xf32>
    %467 = arith.addf %461, %466 : vector<8x32xf32>
    %468 = math.tanh %467 : vector<8x32xf32>
    %469 = vector.extract_strided_slice %460 {offsets = [0, 32], sizes = [8, 32], strides = [1, 1]} : vector<8x64xf32> to vector<8x32xf32>
    %cst_89 = arith.constant 1.000000e+00 : f32
    %470 = vector.broadcast %cst_89 : f32 to vector<8x32xf32>
    %471 = arith.subf %470, %469 : vector<8x32xf32>
    %472 = arith.mulf %471, %468 : vector<8x32xf32>
    %473 = arith.mulf %469, %422 : vector<8x32xf32>
    %474 = arith.addf %472, %473 : vector<8x32xf32>
    %cst_90 = arith.constant 0.000000e+00 : f32
    %475 = vector.broadcast %cst_90 : f32 to vector<8x32xf32>
    %476 = arith.select %32, %452, %475 : vector<8x32xi1>, vector<8x32xf32>
    %cst_91 = arith.constant 0.000000e+00 : f32
    %477 = vector.broadcast %cst_91 : f32 to vector<8x32xf32>
    %478 = arith.select %4, %474, %477 : vector<8x32xi1>, vector<8x32xf32>
    %479 = tpu.concatenate %100, %478 in 1 : vector<8x32xf32>, vector<8x32xf32> -> vector<8x64xf32>
    %480 = tpu.concatenate %154, %426 in 1 : vector<8x32xf32>, vector<8x32xf32> -> vector<8x64xf32>
    %481 = tpu.concatenate %208, %372 in 1 : vector<8x32xf32>, vector<8x32xf32> -> vector<8x64xf32>
    %482 = tpu.concatenate %262, %318 in 1 : vector<8x32xf32>, vector<8x32xf32> -> vector<8x64xf32>
    %483 = tpu.concatenate %316, %264 in 1 : vector<8x32xf32>, vector<8x32xf32> -> vector<8x64xf32>
    %484 = tpu.concatenate %370, %210 in 1 : vector<8x32xf32>, vector<8x32xf32> -> vector<8x64xf32>
    %485 = tpu.concatenate %424, %156 in 1 : vector<8x32xf32>, vector<8x32xf32> -> vector<8x64xf32>
    %486 = tpu.concatenate %476, %102 in 1 : vector<8x32xf32>, vector<8x32xf32> -> vector<8x64xf32>
    %487 = tpu.concatenate %479, %480, %481, %482, %483, %484, %485, %486 in 0 : vector<8x64xf32>, vector<8x64xf32>, vector<8x64xf32>, vector<8x64xf32>, vector<8x64xf32>, vector<8x64xf32>, vector<8x64xf32>, vector<8x64xf32> -> vector<64x64xf32>
    %c0_92 = arith.constant 0 : index
    %c0_93 = arith.constant 0 : index
    %488 = vector.load %arg6[%c0_92, %c0_93] : memref<64x192xf32, #tpu.memory_space<vmem>>, vector<64x192xf32>
    %cst_94 = arith.constant dense<0.000000e+00> : vector<64x192xf32>
    %489 = tpu.matmul %487, %488, %cst_94 {dimension_numbers = #tpu.dot_dimension_numbers<[1], [0], [0], [1], [0, 0, 1, 1], [], []>} : vector<64x64xf32>, vector<64x192xf32>, vector<64x192xf32> -> vector<64x192xf32>
    %c0_95 = arith.constant 0 : index
    %c0_96 = arith.constant 0 : index
    %490 = vector.load %arg8[%c0_95, %c0_96] : memref<1x192xf32, #tpu.memory_space<vmem>>, vector<1x192xf32>
    %491 = vector.broadcast %490 : vector<1x192xf32> to vector<64x192xf32>
    %492 = arith.addf %489, %491 : vector<64x192xf32>
    %c0_97 = arith.constant 0 : index
    %c0_98 = arith.constant 0 : index
    %c0_99 = arith.constant 0 : index
    %493 = vector.load %arg7[%c0_97, %c0_98, %c0_99] : memref<2x32x96xf32, #tpu.memory_space<vmem>>, vector<1x32x96xf32>
    %494 = vector.shape_cast %493 : vector<1x32x96xf32> to vector<32x96xf32>
    %c1_100 = arith.constant 1 : index
    %c0_101 = arith.constant 0 : index
    %c0_102 = arith.constant 0 : index
    %495 = vector.load %arg7[%c1_100, %c0_101, %c0_102] : memref<2x32x96xf32, #tpu.memory_space<vmem>>, vector<1x32x96xf32>
    %496 = vector.shape_cast %495 : vector<1x32x96xf32> to vector<32x96xf32>
    %c0_103 = arith.constant 0 : index
    %c0_104 = arith.constant 0 : index
    %c0_105 = arith.constant 0 : index
    %497 = vector.load %arg9[%c0_103, %c0_104, %c0_105] : memref<2x1x32xf32, #tpu.memory_space<vmem>>, vector<1x1x32xf32>
    %498 = vector.shape_cast %497 : vector<1x1x32xf32> to vector<1x32xf32>
    %c1_106 = arith.constant 1 : index
    %c0_107 = arith.constant 0 : index
    %c0_108 = arith.constant 0 : index
    %499 = vector.load %arg9[%c1_106, %c0_107, %c0_108] : memref<2x1x32xf32, #tpu.memory_space<vmem>>, vector<1x1x32xf32>
    %500 = vector.shape_cast %499 : vector<1x1x32xf32> to vector<1x32xf32>
    %cst_109 = arith.constant 0.000000e+00 : f32
    %501 = vector.broadcast %cst_109 : f32 to vector<8x32xf32>
    %cst_110 = arith.constant 0.000000e+00 : f32
    %502 = vector.broadcast %cst_110 : f32 to vector<8x32xf32>
    %cst_111 = arith.constant dense<0.000000e+00> : vector<8x96xf32>
    %503 = tpu.matmul %501, %494, %cst_111 {dimension_numbers = #tpu.dot_dimension_numbers<[1], [0], [0], [1], [0, 0, 1, 1], [], []>} : vector<8x32xf32>, vector<32x96xf32>, vector<8x96xf32> -> vector<8x96xf32>
    %cst_112 = arith.constant dense<0.000000e+00> : vector<8x96xf32>
    %504 = tpu.matmul %502, %496, %cst_112 {dimension_numbers = #tpu.dot_dimension_numbers<[1], [0], [0], [1], [0, 0, 1, 1], [], []>} : vector<8x32xf32>, vector<32x96xf32>, vector<8x96xf32> -> vector<8x96xf32>
    %505 = vector.extract_strided_slice %492 {offsets = [0, 0], sizes = [8, 96], strides = [1, 1]} : vector<64x192xf32> to vector<8x96xf32>
    %506 = vector.extract_strided_slice %492 {offsets = [56, 96], sizes = [8, 96], strides = [1, 1]} : vector<64x192xf32> to vector<8x96xf32>
    %507 = vector.extract_strided_slice %505 {offsets = [0, 0], sizes = [8, 64], strides = [1, 1]} : vector<8x96xf32> to vector<8x64xf32>
    %508 = vector.extract_strided_slice %503 {offsets = [0, 0], sizes = [8, 64], strides = [1, 1]} : vector<8x96xf32> to vector<8x64xf32>
    %509 = arith.addf %507, %508 : vector<8x64xf32>
    %510 = arith.negf %509 : vector<8x64xf32>
    %511 = math.exp %510 : vector<8x64xf32>
    %cst_113 = arith.constant 1.000000e+00 : f32
    %512 = vector.broadcast %cst_113 : f32 to vector<8x64xf32>
    %513 = arith.addf %512, %511 : vector<8x64xf32>
    %514 = arith.divf %512, %513 : vector<8x64xf32>
    %515 = vector.extract_strided_slice %505 {offsets = [0, 64], sizes = [8, 32], strides = [1, 1]} : vector<8x96xf32> to vector<8x32xf32>
    %516 = vector.extract_strided_slice %514 {offsets = [0, 0], sizes = [8, 32], strides = [1, 1]} : vector<8x64xf32> to vector<8x32xf32>
    %517 = vector.extract_strided_slice %503 {offsets = [0, 64], sizes = [8, 32], strides = [1, 1]} : vector<8x96xf32> to vector<8x32xf32>
    %518 = vector.broadcast %498 : vector<1x32xf32> to vector<8x32xf32>
    %519 = arith.addf %517, %518 : vector<8x32xf32>
    %520 = arith.mulf %516, %519 : vector<8x32xf32>
    %521 = arith.addf %515, %520 : vector<8x32xf32>
    %522 = math.tanh %521 : vector<8x32xf32>
    %523 = vector.extract_strided_slice %514 {offsets = [0, 32], sizes = [8, 32], strides = [1, 1]} : vector<8x64xf32> to vector<8x32xf32>
    %cst_114 = arith.constant 1.000000e+00 : f32
    %524 = vector.broadcast %cst_114 : f32 to vector<8x32xf32>
    %525 = arith.subf %524, %523 : vector<8x32xf32>
    %526 = arith.mulf %525, %522 : vector<8x32xf32>
    %527 = arith.mulf %523, %501 : vector<8x32xf32>
    %528 = arith.addf %526, %527 : vector<8x32xf32>
    %529 = vector.extract_strided_slice %506 {offsets = [0, 0], sizes = [8, 64], strides = [1, 1]} : vector<8x96xf32> to vector<8x64xf32>
    %530 = vector.extract_strided_slice %504 {offsets = [0, 0], sizes = [8, 64], strides = [1, 1]} : vector<8x96xf32> to vector<8x64xf32>
    %531 = arith.addf %529, %530 : vector<8x64xf32>
    %532 = arith.negf %531 : vector<8x64xf32>
    %533 = math.exp %532 : vector<8x64xf32>
    %cst_115 = arith.constant 1.000000e+00 : f32
    %534 = vector.broadcast %cst_115 : f32 to vector<8x64xf32>
    %535 = arith.addf %534, %533 : vector<8x64xf32>
    %536 = arith.divf %534, %535 : vector<8x64xf32>
    %537 = vector.extract_strided_slice %506 {offsets = [0, 64], sizes = [8, 32], strides = [1, 1]} : vector<8x96xf32> to vector<8x32xf32>
    %538 = vector.extract_strided_slice %536 {offsets = [0, 0], sizes = [8, 32], strides = [1, 1]} : vector<8x64xf32> to vector<8x32xf32>
    %539 = vector.extract_strided_slice %504 {offsets = [0, 64], sizes = [8, 32], strides = [1, 1]} : vector<8x96xf32> to vector<8x32xf32>
    %540 = vector.broadcast %500 : vector<1x32xf32> to vector<8x32xf32>
    %541 = arith.addf %539, %540 : vector<8x32xf32>
    %542 = arith.mulf %538, %541 : vector<8x32xf32>
    %543 = arith.addf %537, %542 : vector<8x32xf32>
    %544 = math.tanh %543 : vector<8x32xf32>
    %545 = vector.extract_strided_slice %536 {offsets = [0, 32], sizes = [8, 32], strides = [1, 1]} : vector<8x64xf32> to vector<8x32xf32>
    %cst_116 = arith.constant 1.000000e+00 : f32
    %546 = vector.broadcast %cst_116 : f32 to vector<8x32xf32>
    %547 = arith.subf %546, %545 : vector<8x32xf32>
    %548 = arith.mulf %547, %544 : vector<8x32xf32>
    %549 = arith.mulf %545, %502 : vector<8x32xf32>
    %550 = arith.addf %548, %549 : vector<8x32xf32>
    %551 = arith.select %4, %528, %501 : vector<8x32xi1>, vector<8x32xf32>
    %552 = arith.select %32, %550, %502 : vector<8x32xi1>, vector<8x32xf32>
    %cst_117 = arith.constant 0.000000e+00 : f32
    %553 = vector.broadcast %cst_117 : f32 to vector<8x32xf32>
    %554 = arith.select %4, %528, %553 : vector<8x32xi1>, vector<8x32xf32>
    %cst_118 = arith.constant 0.000000e+00 : f32
    %555 = vector.broadcast %cst_118 : f32 to vector<8x32xf32>
    %556 = arith.select %32, %550, %555 : vector<8x32xi1>, vector<8x32xf32>
    %cst_119 = arith.constant dense<0.000000e+00> : vector<8x96xf32>
    %557 = tpu.matmul %551, %494, %cst_119 {dimension_numbers = #tpu.dot_dimension_numbers<[1], [0], [0], [1], [0, 0, 1, 1], [], []>} : vector<8x32xf32>, vector<32x96xf32>, vector<8x96xf32> -> vector<8x96xf32>
    %cst_120 = arith.constant dense<0.000000e+00> : vector<8x96xf32>
    %558 = tpu.matmul %552, %496, %cst_120 {dimension_numbers = #tpu.dot_dimension_numbers<[1], [0], [0], [1], [0, 0, 1, 1], [], []>} : vector<8x32xf32>, vector<32x96xf32>, vector<8x96xf32> -> vector<8x96xf32>
    %559 = vector.extract_strided_slice %492 {offsets = [8, 0], sizes = [8, 96], strides = [1, 1]} : vector<64x192xf32> to vector<8x96xf32>
    %560 = vector.extract_strided_slice %492 {offsets = [48, 96], sizes = [8, 96], strides = [1, 1]} : vector<64x192xf32> to vector<8x96xf32>
    %561 = vector.extract_strided_slice %559 {offsets = [0, 0], sizes = [8, 64], strides = [1, 1]} : vector<8x96xf32> to vector<8x64xf32>
    %562 = vector.extract_strided_slice %557 {offsets = [0, 0], sizes = [8, 64], strides = [1, 1]} : vector<8x96xf32> to vector<8x64xf32>
    %563 = arith.addf %561, %562 : vector<8x64xf32>
    %564 = arith.negf %563 : vector<8x64xf32>
    %565 = math.exp %564 : vector<8x64xf32>
    %cst_121 = arith.constant 1.000000e+00 : f32
    %566 = vector.broadcast %cst_121 : f32 to vector<8x64xf32>
    %567 = arith.addf %566, %565 : vector<8x64xf32>
    %568 = arith.divf %566, %567 : vector<8x64xf32>
    %569 = vector.extract_strided_slice %559 {offsets = [0, 64], sizes = [8, 32], strides = [1, 1]} : vector<8x96xf32> to vector<8x32xf32>
    %570 = vector.extract_strided_slice %568 {offsets = [0, 0], sizes = [8, 32], strides = [1, 1]} : vector<8x64xf32> to vector<8x32xf32>
    %571 = vector.extract_strided_slice %557 {offsets = [0, 64], sizes = [8, 32], strides = [1, 1]} : vector<8x96xf32> to vector<8x32xf32>
    %572 = vector.broadcast %498 : vector<1x32xf32> to vector<8x32xf32>
    %573 = arith.addf %571, %572 : vector<8x32xf32>
    %574 = arith.mulf %570, %573 : vector<8x32xf32>
    %575 = arith.addf %569, %574 : vector<8x32xf32>
    %576 = math.tanh %575 : vector<8x32xf32>
    %577 = vector.extract_strided_slice %568 {offsets = [0, 32], sizes = [8, 32], strides = [1, 1]} : vector<8x64xf32> to vector<8x32xf32>
    %cst_122 = arith.constant 1.000000e+00 : f32
    %578 = vector.broadcast %cst_122 : f32 to vector<8x32xf32>
    %579 = arith.subf %578, %577 : vector<8x32xf32>
    %580 = arith.mulf %579, %576 : vector<8x32xf32>
    %581 = arith.mulf %577, %551 : vector<8x32xf32>
    %582 = arith.addf %580, %581 : vector<8x32xf32>
    %583 = vector.extract_strided_slice %560 {offsets = [0, 0], sizes = [8, 64], strides = [1, 1]} : vector<8x96xf32> to vector<8x64xf32>
    %584 = vector.extract_strided_slice %558 {offsets = [0, 0], sizes = [8, 64], strides = [1, 1]} : vector<8x96xf32> to vector<8x64xf32>
    %585 = arith.addf %583, %584 : vector<8x64xf32>
    %586 = arith.negf %585 : vector<8x64xf32>
    %587 = math.exp %586 : vector<8x64xf32>
    %cst_123 = arith.constant 1.000000e+00 : f32
    %588 = vector.broadcast %cst_123 : f32 to vector<8x64xf32>
    %589 = arith.addf %588, %587 : vector<8x64xf32>
    %590 = arith.divf %588, %589 : vector<8x64xf32>
    %591 = vector.extract_strided_slice %560 {offsets = [0, 64], sizes = [8, 32], strides = [1, 1]} : vector<8x96xf32> to vector<8x32xf32>
    %592 = vector.extract_strided_slice %590 {offsets = [0, 0], sizes = [8, 32], strides = [1, 1]} : vector<8x64xf32> to vector<8x32xf32>
    %593 = vector.extract_strided_slice %558 {offsets = [0, 64], sizes = [8, 32], strides = [1, 1]} : vector<8x96xf32> to vector<8x32xf32>
    %594 = vector.broadcast %500 : vector<1x32xf32> to vector<8x32xf32>
    %595 = arith.addf %593, %594 : vector<8x32xf32>
    %596 = arith.mulf %592, %595 : vector<8x32xf32>
    %597 = arith.addf %591, %596 : vector<8x32xf32>
    %598 = math.tanh %597 : vector<8x32xf32>
    %599 = vector.extract_strided_slice %590 {offsets = [0, 32], sizes = [8, 32], strides = [1, 1]} : vector<8x64xf32> to vector<8x32xf32>
    %cst_124 = arith.constant 1.000000e+00 : f32
    %600 = vector.broadcast %cst_124 : f32 to vector<8x32xf32>
    %601 = arith.subf %600, %599 : vector<8x32xf32>
    %602 = arith.mulf %601, %598 : vector<8x32xf32>
    %603 = arith.mulf %599, %552 : vector<8x32xf32>
    %604 = arith.addf %602, %603 : vector<8x32xf32>
    %605 = arith.select %8, %582, %551 : vector<8x32xi1>, vector<8x32xf32>
    %606 = arith.select %28, %604, %552 : vector<8x32xi1>, vector<8x32xf32>
    %cst_125 = arith.constant 0.000000e+00 : f32
    %607 = vector.broadcast %cst_125 : f32 to vector<8x32xf32>
    %608 = arith.select %8, %582, %607 : vector<8x32xi1>, vector<8x32xf32>
    %cst_126 = arith.constant 0.000000e+00 : f32
    %609 = vector.broadcast %cst_126 : f32 to vector<8x32xf32>
    %610 = arith.select %28, %604, %609 : vector<8x32xi1>, vector<8x32xf32>
    %cst_127 = arith.constant dense<0.000000e+00> : vector<8x96xf32>
    %611 = tpu.matmul %605, %494, %cst_127 {dimension_numbers = #tpu.dot_dimension_numbers<[1], [0], [0], [1], [0, 0, 1, 1], [], []>} : vector<8x32xf32>, vector<32x96xf32>, vector<8x96xf32> -> vector<8x96xf32>
    %cst_128 = arith.constant dense<0.000000e+00> : vector<8x96xf32>
    %612 = tpu.matmul %606, %496, %cst_128 {dimension_numbers = #tpu.dot_dimension_numbers<[1], [0], [0], [1], [0, 0, 1, 1], [], []>} : vector<8x32xf32>, vector<32x96xf32>, vector<8x96xf32> -> vector<8x96xf32>
    %613 = vector.extract_strided_slice %492 {offsets = [16, 0], sizes = [8, 96], strides = [1, 1]} : vector<64x192xf32> to vector<8x96xf32>
    %614 = vector.extract_strided_slice %492 {offsets = [40, 96], sizes = [8, 96], strides = [1, 1]} : vector<64x192xf32> to vector<8x96xf32>
    %615 = vector.extract_strided_slice %613 {offsets = [0, 0], sizes = [8, 64], strides = [1, 1]} : vector<8x96xf32> to vector<8x64xf32>
    %616 = vector.extract_strided_slice %611 {offsets = [0, 0], sizes = [8, 64], strides = [1, 1]} : vector<8x96xf32> to vector<8x64xf32>
    %617 = arith.addf %615, %616 : vector<8x64xf32>
    %618 = arith.negf %617 : vector<8x64xf32>
    %619 = math.exp %618 : vector<8x64xf32>
    %cst_129 = arith.constant 1.000000e+00 : f32
    %620 = vector.broadcast %cst_129 : f32 to vector<8x64xf32>
    %621 = arith.addf %620, %619 : vector<8x64xf32>
    %622 = arith.divf %620, %621 : vector<8x64xf32>
    %623 = vector.extract_strided_slice %613 {offsets = [0, 64], sizes = [8, 32], strides = [1, 1]} : vector<8x96xf32> to vector<8x32xf32>
    %624 = vector.extract_strided_slice %622 {offsets = [0, 0], sizes = [8, 32], strides = [1, 1]} : vector<8x64xf32> to vector<8x32xf32>
    %625 = vector.extract_strided_slice %611 {offsets = [0, 64], sizes = [8, 32], strides = [1, 1]} : vector<8x96xf32> to vector<8x32xf32>
    %626 = vector.broadcast %498 : vector<1x32xf32> to vector<8x32xf32>
    %627 = arith.addf %625, %626 : vector<8x32xf32>
    %628 = arith.mulf %624, %627 : vector<8x32xf32>
    %629 = arith.addf %623, %628 : vector<8x32xf32>
    %630 = math.tanh %629 : vector<8x32xf32>
    %631 = vector.extract_strided_slice %622 {offsets = [0, 32], sizes = [8, 32], strides = [1, 1]} : vector<8x64xf32> to vector<8x32xf32>
    %cst_130 = arith.constant 1.000000e+00 : f32
    %632 = vector.broadcast %cst_130 : f32 to vector<8x32xf32>
    %633 = arith.subf %632, %631 : vector<8x32xf32>
    %634 = arith.mulf %633, %630 : vector<8x32xf32>
    %635 = arith.mulf %631, %605 : vector<8x32xf32>
    %636 = arith.addf %634, %635 : vector<8x32xf32>
    %637 = vector.extract_strided_slice %614 {offsets = [0, 0], sizes = [8, 64], strides = [1, 1]} : vector<8x96xf32> to vector<8x64xf32>
    %638 = vector.extract_strided_slice %612 {offsets = [0, 0], sizes = [8, 64], strides = [1, 1]} : vector<8x96xf32> to vector<8x64xf32>
    %639 = arith.addf %637, %638 : vector<8x64xf32>
    %640 = arith.negf %639 : vector<8x64xf32>
    %641 = math.exp %640 : vector<8x64xf32>
    %cst_131 = arith.constant 1.000000e+00 : f32
    %642 = vector.broadcast %cst_131 : f32 to vector<8x64xf32>
    %643 = arith.addf %642, %641 : vector<8x64xf32>
    %644 = arith.divf %642, %643 : vector<8x64xf32>
    %645 = vector.extract_strided_slice %614 {offsets = [0, 64], sizes = [8, 32], strides = [1, 1]} : vector<8x96xf32> to vector<8x32xf32>
    %646 = vector.extract_strided_slice %644 {offsets = [0, 0], sizes = [8, 32], strides = [1, 1]} : vector<8x64xf32> to vector<8x32xf32>
    %647 = vector.extract_strided_slice %612 {offsets = [0, 64], sizes = [8, 32], strides = [1, 1]} : vector<8x96xf32> to vector<8x32xf32>
    %648 = vector.broadcast %500 : vector<1x32xf32> to vector<8x32xf32>
    %649 = arith.addf %647, %648 : vector<8x32xf32>
    %650 = arith.mulf %646, %649 : vector<8x32xf32>
    %651 = arith.addf %645, %650 : vector<8x32xf32>
    %652 = math.tanh %651 : vector<8x32xf32>
    %653 = vector.extract_strided_slice %644 {offsets = [0, 32], sizes = [8, 32], strides = [1, 1]} : vector<8x64xf32> to vector<8x32xf32>
    %cst_132 = arith.constant 1.000000e+00 : f32
    %654 = vector.broadcast %cst_132 : f32 to vector<8x32xf32>
    %655 = arith.subf %654, %653 : vector<8x32xf32>
    %656 = arith.mulf %655, %652 : vector<8x32xf32>
    %657 = arith.mulf %653, %606 : vector<8x32xf32>
    %658 = arith.addf %656, %657 : vector<8x32xf32>
    %659 = arith.select %12, %636, %605 : vector<8x32xi1>, vector<8x32xf32>
    %660 = arith.select %24, %658, %606 : vector<8x32xi1>, vector<8x32xf32>
    %cst_133 = arith.constant 0.000000e+00 : f32
    %661 = vector.broadcast %cst_133 : f32 to vector<8x32xf32>
    %662 = arith.select %12, %636, %661 : vector<8x32xi1>, vector<8x32xf32>
    %cst_134 = arith.constant 0.000000e+00 : f32
    %663 = vector.broadcast %cst_134 : f32 to vector<8x32xf32>
    %664 = arith.select %24, %658, %663 : vector<8x32xi1>, vector<8x32xf32>
    %cst_135 = arith.constant dense<0.000000e+00> : vector<8x96xf32>
    %665 = tpu.matmul %659, %494, %cst_135 {dimension_numbers = #tpu.dot_dimension_numbers<[1], [0], [0], [1], [0, 0, 1, 1], [], []>} : vector<8x32xf32>, vector<32x96xf32>, vector<8x96xf32> -> vector<8x96xf32>
    %cst_136 = arith.constant dense<0.000000e+00> : vector<8x96xf32>
    %666 = tpu.matmul %660, %496, %cst_136 {dimension_numbers = #tpu.dot_dimension_numbers<[1], [0], [0], [1], [0, 0, 1, 1], [], []>} : vector<8x32xf32>, vector<32x96xf32>, vector<8x96xf32> -> vector<8x96xf32>
    %667 = vector.extract_strided_slice %492 {offsets = [24, 0], sizes = [8, 96], strides = [1, 1]} : vector<64x192xf32> to vector<8x96xf32>
    %668 = vector.extract_strided_slice %492 {offsets = [32, 96], sizes = [8, 96], strides = [1, 1]} : vector<64x192xf32> to vector<8x96xf32>
    %669 = vector.extract_strided_slice %667 {offsets = [0, 0], sizes = [8, 64], strides = [1, 1]} : vector<8x96xf32> to vector<8x64xf32>
    %670 = vector.extract_strided_slice %665 {offsets = [0, 0], sizes = [8, 64], strides = [1, 1]} : vector<8x96xf32> to vector<8x64xf32>
    %671 = arith.addf %669, %670 : vector<8x64xf32>
    %672 = arith.negf %671 : vector<8x64xf32>
    %673 = math.exp %672 : vector<8x64xf32>
    %cst_137 = arith.constant 1.000000e+00 : f32
    %674 = vector.broadcast %cst_137 : f32 to vector<8x64xf32>
    %675 = arith.addf %674, %673 : vector<8x64xf32>
    %676 = arith.divf %674, %675 : vector<8x64xf32>
    %677 = vector.extract_strided_slice %667 {offsets = [0, 64], sizes = [8, 32], strides = [1, 1]} : vector<8x96xf32> to vector<8x32xf32>
    %678 = vector.extract_strided_slice %676 {offsets = [0, 0], sizes = [8, 32], strides = [1, 1]} : vector<8x64xf32> to vector<8x32xf32>
    %679 = vector.extract_strided_slice %665 {offsets = [0, 64], sizes = [8, 32], strides = [1, 1]} : vector<8x96xf32> to vector<8x32xf32>
    %680 = vector.broadcast %498 : vector<1x32xf32> to vector<8x32xf32>
    %681 = arith.addf %679, %680 : vector<8x32xf32>
    %682 = arith.mulf %678, %681 : vector<8x32xf32>
    %683 = arith.addf %677, %682 : vector<8x32xf32>
    %684 = math.tanh %683 : vector<8x32xf32>
    %685 = vector.extract_strided_slice %676 {offsets = [0, 32], sizes = [8, 32], strides = [1, 1]} : vector<8x64xf32> to vector<8x32xf32>
    %cst_138 = arith.constant 1.000000e+00 : f32
    %686 = vector.broadcast %cst_138 : f32 to vector<8x32xf32>
    %687 = arith.subf %686, %685 : vector<8x32xf32>
    %688 = arith.mulf %687, %684 : vector<8x32xf32>
    %689 = arith.mulf %685, %659 : vector<8x32xf32>
    %690 = arith.addf %688, %689 : vector<8x32xf32>
    %691 = vector.extract_strided_slice %668 {offsets = [0, 0], sizes = [8, 64], strides = [1, 1]} : vector<8x96xf32> to vector<8x64xf32>
    %692 = vector.extract_strided_slice %666 {offsets = [0, 0], sizes = [8, 64], strides = [1, 1]} : vector<8x96xf32> to vector<8x64xf32>
    %693 = arith.addf %691, %692 : vector<8x64xf32>
    %694 = arith.negf %693 : vector<8x64xf32>
    %695 = math.exp %694 : vector<8x64xf32>
    %cst_139 = arith.constant 1.000000e+00 : f32
    %696 = vector.broadcast %cst_139 : f32 to vector<8x64xf32>
    %697 = arith.addf %696, %695 : vector<8x64xf32>
    %698 = arith.divf %696, %697 : vector<8x64xf32>
    %699 = vector.extract_strided_slice %668 {offsets = [0, 64], sizes = [8, 32], strides = [1, 1]} : vector<8x96xf32> to vector<8x32xf32>
    %700 = vector.extract_strided_slice %698 {offsets = [0, 0], sizes = [8, 32], strides = [1, 1]} : vector<8x64xf32> to vector<8x32xf32>
    %701 = vector.extract_strided_slice %666 {offsets = [0, 64], sizes = [8, 32], strides = [1, 1]} : vector<8x96xf32> to vector<8x32xf32>
    %702 = vector.broadcast %500 : vector<1x32xf32> to vector<8x32xf32>
    %703 = arith.addf %701, %702 : vector<8x32xf32>
    %704 = arith.mulf %700, %703 : vector<8x32xf32>
    %705 = arith.addf %699, %704 : vector<8x32xf32>
    %706 = math.tanh %705 : vector<8x32xf32>
    %707 = vector.extract_strided_slice %698 {offsets = [0, 32], sizes = [8, 32], strides = [1, 1]} : vector<8x64xf32> to vector<8x32xf32>
    %cst_140 = arith.constant 1.000000e+00 : f32
    %708 = vector.broadcast %cst_140 : f32 to vector<8x32xf32>
    %709 = arith.subf %708, %707 : vector<8x32xf32>
    %710 = arith.mulf %709, %706 : vector<8x32xf32>
    %711 = arith.mulf %707, %660 : vector<8x32xf32>
    %712 = arith.addf %710, %711 : vector<8x32xf32>
    %713 = arith.select %16, %690, %659 : vector<8x32xi1>, vector<8x32xf32>
    %714 = arith.select %20, %712, %660 : vector<8x32xi1>, vector<8x32xf32>
    %cst_141 = arith.constant 0.000000e+00 : f32
    %715 = vector.broadcast %cst_141 : f32 to vector<8x32xf32>
    %716 = arith.select %16, %690, %715 : vector<8x32xi1>, vector<8x32xf32>
    %cst_142 = arith.constant 0.000000e+00 : f32
    %717 = vector.broadcast %cst_142 : f32 to vector<8x32xf32>
    %718 = arith.select %20, %712, %717 : vector<8x32xi1>, vector<8x32xf32>
    %cst_143 = arith.constant dense<0.000000e+00> : vector<8x96xf32>
    %719 = tpu.matmul %713, %494, %cst_143 {dimension_numbers = #tpu.dot_dimension_numbers<[1], [0], [0], [1], [0, 0, 1, 1], [], []>} : vector<8x32xf32>, vector<32x96xf32>, vector<8x96xf32> -> vector<8x96xf32>
    %cst_144 = arith.constant dense<0.000000e+00> : vector<8x96xf32>
    %720 = tpu.matmul %714, %496, %cst_144 {dimension_numbers = #tpu.dot_dimension_numbers<[1], [0], [0], [1], [0, 0, 1, 1], [], []>} : vector<8x32xf32>, vector<32x96xf32>, vector<8x96xf32> -> vector<8x96xf32>
    %721 = vector.extract_strided_slice %492 {offsets = [32, 0], sizes = [8, 96], strides = [1, 1]} : vector<64x192xf32> to vector<8x96xf32>
    %722 = vector.extract_strided_slice %492 {offsets = [24, 96], sizes = [8, 96], strides = [1, 1]} : vector<64x192xf32> to vector<8x96xf32>
    %723 = vector.extract_strided_slice %721 {offsets = [0, 0], sizes = [8, 64], strides = [1, 1]} : vector<8x96xf32> to vector<8x64xf32>
    %724 = vector.extract_strided_slice %719 {offsets = [0, 0], sizes = [8, 64], strides = [1, 1]} : vector<8x96xf32> to vector<8x64xf32>
    %725 = arith.addf %723, %724 : vector<8x64xf32>
    %726 = arith.negf %725 : vector<8x64xf32>
    %727 = math.exp %726 : vector<8x64xf32>
    %cst_145 = arith.constant 1.000000e+00 : f32
    %728 = vector.broadcast %cst_145 : f32 to vector<8x64xf32>
    %729 = arith.addf %728, %727 : vector<8x64xf32>
    %730 = arith.divf %728, %729 : vector<8x64xf32>
    %731 = vector.extract_strided_slice %721 {offsets = [0, 64], sizes = [8, 32], strides = [1, 1]} : vector<8x96xf32> to vector<8x32xf32>
    %732 = vector.extract_strided_slice %730 {offsets = [0, 0], sizes = [8, 32], strides = [1, 1]} : vector<8x64xf32> to vector<8x32xf32>
    %733 = vector.extract_strided_slice %719 {offsets = [0, 64], sizes = [8, 32], strides = [1, 1]} : vector<8x96xf32> to vector<8x32xf32>
    %734 = vector.broadcast %498 : vector<1x32xf32> to vector<8x32xf32>
    %735 = arith.addf %733, %734 : vector<8x32xf32>
    %736 = arith.mulf %732, %735 : vector<8x32xf32>
    %737 = arith.addf %731, %736 : vector<8x32xf32>
    %738 = math.tanh %737 : vector<8x32xf32>
    %739 = vector.extract_strided_slice %730 {offsets = [0, 32], sizes = [8, 32], strides = [1, 1]} : vector<8x64xf32> to vector<8x32xf32>
    %cst_146 = arith.constant 1.000000e+00 : f32
    %740 = vector.broadcast %cst_146 : f32 to vector<8x32xf32>
    %741 = arith.subf %740, %739 : vector<8x32xf32>
    %742 = arith.mulf %741, %738 : vector<8x32xf32>
    %743 = arith.mulf %739, %713 : vector<8x32xf32>
    %744 = arith.addf %742, %743 : vector<8x32xf32>
    %745 = vector.extract_strided_slice %722 {offsets = [0, 0], sizes = [8, 64], strides = [1, 1]} : vector<8x96xf32> to vector<8x64xf32>
    %746 = vector.extract_strided_slice %720 {offsets = [0, 0], sizes = [8, 64], strides = [1, 1]} : vector<8x96xf32> to vector<8x64xf32>
    %747 = arith.addf %745, %746 : vector<8x64xf32>
    %748 = arith.negf %747 : vector<8x64xf32>
    %749 = math.exp %748 : vector<8x64xf32>
    %cst_147 = arith.constant 1.000000e+00 : f32
    %750 = vector.broadcast %cst_147 : f32 to vector<8x64xf32>
    %751 = arith.addf %750, %749 : vector<8x64xf32>
    %752 = arith.divf %750, %751 : vector<8x64xf32>
    %753 = vector.extract_strided_slice %722 {offsets = [0, 64], sizes = [8, 32], strides = [1, 1]} : vector<8x96xf32> to vector<8x32xf32>
    %754 = vector.extract_strided_slice %752 {offsets = [0, 0], sizes = [8, 32], strides = [1, 1]} : vector<8x64xf32> to vector<8x32xf32>
    %755 = vector.extract_strided_slice %720 {offsets = [0, 64], sizes = [8, 32], strides = [1, 1]} : vector<8x96xf32> to vector<8x32xf32>
    %756 = vector.broadcast %500 : vector<1x32xf32> to vector<8x32xf32>
    %757 = arith.addf %755, %756 : vector<8x32xf32>
    %758 = arith.mulf %754, %757 : vector<8x32xf32>
    %759 = arith.addf %753, %758 : vector<8x32xf32>
    %760 = math.tanh %759 : vector<8x32xf32>
    %761 = vector.extract_strided_slice %752 {offsets = [0, 32], sizes = [8, 32], strides = [1, 1]} : vector<8x64xf32> to vector<8x32xf32>
    %cst_148 = arith.constant 1.000000e+00 : f32
    %762 = vector.broadcast %cst_148 : f32 to vector<8x32xf32>
    %763 = arith.subf %762, %761 : vector<8x32xf32>
    %764 = arith.mulf %763, %760 : vector<8x32xf32>
    %765 = arith.mulf %761, %714 : vector<8x32xf32>
    %766 = arith.addf %764, %765 : vector<8x32xf32>
    %767 = arith.select %20, %744, %713 : vector<8x32xi1>, vector<8x32xf32>
    %768 = arith.select %16, %766, %714 : vector<8x32xi1>, vector<8x32xf32>
    %cst_149 = arith.constant 0.000000e+00 : f32
    %769 = vector.broadcast %cst_149 : f32 to vector<8x32xf32>
    %770 = arith.select %20, %744, %769 : vector<8x32xi1>, vector<8x32xf32>
    %cst_150 = arith.constant 0.000000e+00 : f32
    %771 = vector.broadcast %cst_150 : f32 to vector<8x32xf32>
    %772 = arith.select %16, %766, %771 : vector<8x32xi1>, vector<8x32xf32>
    %cst_151 = arith.constant dense<0.000000e+00> : vector<8x96xf32>
    %773 = tpu.matmul %767, %494, %cst_151 {dimension_numbers = #tpu.dot_dimension_numbers<[1], [0], [0], [1], [0, 0, 1, 1], [], []>} : vector<8x32xf32>, vector<32x96xf32>, vector<8x96xf32> -> vector<8x96xf32>
    %cst_152 = arith.constant dense<0.000000e+00> : vector<8x96xf32>
    %774 = tpu.matmul %768, %496, %cst_152 {dimension_numbers = #tpu.dot_dimension_numbers<[1], [0], [0], [1], [0, 0, 1, 1], [], []>} : vector<8x32xf32>, vector<32x96xf32>, vector<8x96xf32> -> vector<8x96xf32>
    %775 = vector.extract_strided_slice %492 {offsets = [40, 0], sizes = [8, 96], strides = [1, 1]} : vector<64x192xf32> to vector<8x96xf32>
    %776 = vector.extract_strided_slice %492 {offsets = [16, 96], sizes = [8, 96], strides = [1, 1]} : vector<64x192xf32> to vector<8x96xf32>
    %777 = vector.extract_strided_slice %775 {offsets = [0, 0], sizes = [8, 64], strides = [1, 1]} : vector<8x96xf32> to vector<8x64xf32>
    %778 = vector.extract_strided_slice %773 {offsets = [0, 0], sizes = [8, 64], strides = [1, 1]} : vector<8x96xf32> to vector<8x64xf32>
    %779 = arith.addf %777, %778 : vector<8x64xf32>
    %780 = arith.negf %779 : vector<8x64xf32>
    %781 = math.exp %780 : vector<8x64xf32>
    %cst_153 = arith.constant 1.000000e+00 : f32
    %782 = vector.broadcast %cst_153 : f32 to vector<8x64xf32>
    %783 = arith.addf %782, %781 : vector<8x64xf32>
    %784 = arith.divf %782, %783 : vector<8x64xf32>
    %785 = vector.extract_strided_slice %775 {offsets = [0, 64], sizes = [8, 32], strides = [1, 1]} : vector<8x96xf32> to vector<8x32xf32>
    %786 = vector.extract_strided_slice %784 {offsets = [0, 0], sizes = [8, 32], strides = [1, 1]} : vector<8x64xf32> to vector<8x32xf32>
    %787 = vector.extract_strided_slice %773 {offsets = [0, 64], sizes = [8, 32], strides = [1, 1]} : vector<8x96xf32> to vector<8x32xf32>
    %788 = vector.broadcast %498 : vector<1x32xf32> to vector<8x32xf32>
    %789 = arith.addf %787, %788 : vector<8x32xf32>
    %790 = arith.mulf %786, %789 : vector<8x32xf32>
    %791 = arith.addf %785, %790 : vector<8x32xf32>
    %792 = math.tanh %791 : vector<8x32xf32>
    %793 = vector.extract_strided_slice %784 {offsets = [0, 32], sizes = [8, 32], strides = [1, 1]} : vector<8x64xf32> to vector<8x32xf32>
    %cst_154 = arith.constant 1.000000e+00 : f32
    %794 = vector.broadcast %cst_154 : f32 to vector<8x32xf32>
    %795 = arith.subf %794, %793 : vector<8x32xf32>
    %796 = arith.mulf %795, %792 : vector<8x32xf32>
    %797 = arith.mulf %793, %767 : vector<8x32xf32>
    %798 = arith.addf %796, %797 : vector<8x32xf32>
    %799 = vector.extract_strided_slice %776 {offsets = [0, 0], sizes = [8, 64], strides = [1, 1]} : vector<8x96xf32> to vector<8x64xf32>
    %800 = vector.extract_strided_slice %774 {offsets = [0, 0], sizes = [8, 64], strides = [1, 1]} : vector<8x96xf32> to vector<8x64xf32>
    %801 = arith.addf %799, %800 : vector<8x64xf32>
    %802 = arith.negf %801 : vector<8x64xf32>
    %803 = math.exp %802 : vector<8x64xf32>
    %cst_155 = arith.constant 1.000000e+00 : f32
    %804 = vector.broadcast %cst_155 : f32 to vector<8x64xf32>
    %805 = arith.addf %804, %803 : vector<8x64xf32>
    %806 = arith.divf %804, %805 : vector<8x64xf32>
    %807 = vector.extract_strided_slice %776 {offsets = [0, 64], sizes = [8, 32], strides = [1, 1]} : vector<8x96xf32> to vector<8x32xf32>
    %808 = vector.extract_strided_slice %806 {offsets = [0, 0], sizes = [8, 32], strides = [1, 1]} : vector<8x64xf32> to vector<8x32xf32>
    %809 = vector.extract_strided_slice %774 {offsets = [0, 64], sizes = [8, 32], strides = [1, 1]} : vector<8x96xf32> to vector<8x32xf32>
    %810 = vector.broadcast %500 : vector<1x32xf32> to vector<8x32xf32>
    %811 = arith.addf %809, %810 : vector<8x32xf32>
    %812 = arith.mulf %808, %811 : vector<8x32xf32>
    %813 = arith.addf %807, %812 : vector<8x32xf32>
    %814 = math.tanh %813 : vector<8x32xf32>
    %815 = vector.extract_strided_slice %806 {offsets = [0, 32], sizes = [8, 32], strides = [1, 1]} : vector<8x64xf32> to vector<8x32xf32>
    %cst_156 = arith.constant 1.000000e+00 : f32
    %816 = vector.broadcast %cst_156 : f32 to vector<8x32xf32>
    %817 = arith.subf %816, %815 : vector<8x32xf32>
    %818 = arith.mulf %817, %814 : vector<8x32xf32>
    %819 = arith.mulf %815, %768 : vector<8x32xf32>
    %820 = arith.addf %818, %819 : vector<8x32xf32>
    %821 = arith.select %24, %798, %767 : vector<8x32xi1>, vector<8x32xf32>
    %822 = arith.select %12, %820, %768 : vector<8x32xi1>, vector<8x32xf32>
    %cst_157 = arith.constant 0.000000e+00 : f32
    %823 = vector.broadcast %cst_157 : f32 to vector<8x32xf32>
    %824 = arith.select %24, %798, %823 : vector<8x32xi1>, vector<8x32xf32>
    %cst_158 = arith.constant 0.000000e+00 : f32
    %825 = vector.broadcast %cst_158 : f32 to vector<8x32xf32>
    %826 = arith.select %12, %820, %825 : vector<8x32xi1>, vector<8x32xf32>
    %cst_159 = arith.constant dense<0.000000e+00> : vector<8x96xf32>
    %827 = tpu.matmul %821, %494, %cst_159 {dimension_numbers = #tpu.dot_dimension_numbers<[1], [0], [0], [1], [0, 0, 1, 1], [], []>} : vector<8x32xf32>, vector<32x96xf32>, vector<8x96xf32> -> vector<8x96xf32>
    %cst_160 = arith.constant dense<0.000000e+00> : vector<8x96xf32>
    %828 = tpu.matmul %822, %496, %cst_160 {dimension_numbers = #tpu.dot_dimension_numbers<[1], [0], [0], [1], [0, 0, 1, 1], [], []>} : vector<8x32xf32>, vector<32x96xf32>, vector<8x96xf32> -> vector<8x96xf32>
    %829 = vector.extract_strided_slice %492 {offsets = [48, 0], sizes = [8, 96], strides = [1, 1]} : vector<64x192xf32> to vector<8x96xf32>
    %830 = vector.extract_strided_slice %492 {offsets = [8, 96], sizes = [8, 96], strides = [1, 1]} : vector<64x192xf32> to vector<8x96xf32>
    %831 = vector.extract_strided_slice %829 {offsets = [0, 0], sizes = [8, 64], strides = [1, 1]} : vector<8x96xf32> to vector<8x64xf32>
    %832 = vector.extract_strided_slice %827 {offsets = [0, 0], sizes = [8, 64], strides = [1, 1]} : vector<8x96xf32> to vector<8x64xf32>
    %833 = arith.addf %831, %832 : vector<8x64xf32>
    %834 = arith.negf %833 : vector<8x64xf32>
    %835 = math.exp %834 : vector<8x64xf32>
    %cst_161 = arith.constant 1.000000e+00 : f32
    %836 = vector.broadcast %cst_161 : f32 to vector<8x64xf32>
    %837 = arith.addf %836, %835 : vector<8x64xf32>
    %838 = arith.divf %836, %837 : vector<8x64xf32>
    %839 = vector.extract_strided_slice %829 {offsets = [0, 64], sizes = [8, 32], strides = [1, 1]} : vector<8x96xf32> to vector<8x32xf32>
    %840 = vector.extract_strided_slice %838 {offsets = [0, 0], sizes = [8, 32], strides = [1, 1]} : vector<8x64xf32> to vector<8x32xf32>
    %841 = vector.extract_strided_slice %827 {offsets = [0, 64], sizes = [8, 32], strides = [1, 1]} : vector<8x96xf32> to vector<8x32xf32>
    %842 = vector.broadcast %498 : vector<1x32xf32> to vector<8x32xf32>
    %843 = arith.addf %841, %842 : vector<8x32xf32>
    %844 = arith.mulf %840, %843 : vector<8x32xf32>
    %845 = arith.addf %839, %844 : vector<8x32xf32>
    %846 = math.tanh %845 : vector<8x32xf32>
    %847 = vector.extract_strided_slice %838 {offsets = [0, 32], sizes = [8, 32], strides = [1, 1]} : vector<8x64xf32> to vector<8x32xf32>
    %cst_162 = arith.constant 1.000000e+00 : f32
    %848 = vector.broadcast %cst_162 : f32 to vector<8x32xf32>
    %849 = arith.subf %848, %847 : vector<8x32xf32>
    %850 = arith.mulf %849, %846 : vector<8x32xf32>
    %851 = arith.mulf %847, %821 : vector<8x32xf32>
    %852 = arith.addf %850, %851 : vector<8x32xf32>
    %853 = vector.extract_strided_slice %830 {offsets = [0, 0], sizes = [8, 64], strides = [1, 1]} : vector<8x96xf32> to vector<8x64xf32>
    %854 = vector.extract_strided_slice %828 {offsets = [0, 0], sizes = [8, 64], strides = [1, 1]} : vector<8x96xf32> to vector<8x64xf32>
    %855 = arith.addf %853, %854 : vector<8x64xf32>
    %856 = arith.negf %855 : vector<8x64xf32>
    %857 = math.exp %856 : vector<8x64xf32>
    %cst_163 = arith.constant 1.000000e+00 : f32
    %858 = vector.broadcast %cst_163 : f32 to vector<8x64xf32>
    %859 = arith.addf %858, %857 : vector<8x64xf32>
    %860 = arith.divf %858, %859 : vector<8x64xf32>
    %861 = vector.extract_strided_slice %830 {offsets = [0, 64], sizes = [8, 32], strides = [1, 1]} : vector<8x96xf32> to vector<8x32xf32>
    %862 = vector.extract_strided_slice %860 {offsets = [0, 0], sizes = [8, 32], strides = [1, 1]} : vector<8x64xf32> to vector<8x32xf32>
    %863 = vector.extract_strided_slice %828 {offsets = [0, 64], sizes = [8, 32], strides = [1, 1]} : vector<8x96xf32> to vector<8x32xf32>
    %864 = vector.broadcast %500 : vector<1x32xf32> to vector<8x32xf32>
    %865 = arith.addf %863, %864 : vector<8x32xf32>
    %866 = arith.mulf %862, %865 : vector<8x32xf32>
    %867 = arith.addf %861, %866 : vector<8x32xf32>
    %868 = math.tanh %867 : vector<8x32xf32>
    %869 = vector.extract_strided_slice %860 {offsets = [0, 32], sizes = [8, 32], strides = [1, 1]} : vector<8x64xf32> to vector<8x32xf32>
    %cst_164 = arith.constant 1.000000e+00 : f32
    %870 = vector.broadcast %cst_164 : f32 to vector<8x32xf32>
    %871 = arith.subf %870, %869 : vector<8x32xf32>
    %872 = arith.mulf %871, %868 : vector<8x32xf32>
    %873 = arith.mulf %869, %822 : vector<8x32xf32>
    %874 = arith.addf %872, %873 : vector<8x32xf32>
    %875 = arith.select %28, %852, %821 : vector<8x32xi1>, vector<8x32xf32>
    %876 = arith.select %8, %874, %822 : vector<8x32xi1>, vector<8x32xf32>
    %cst_165 = arith.constant 0.000000e+00 : f32
    %877 = vector.broadcast %cst_165 : f32 to vector<8x32xf32>
    %878 = arith.select %28, %852, %877 : vector<8x32xi1>, vector<8x32xf32>
    %cst_166 = arith.constant 0.000000e+00 : f32
    %879 = vector.broadcast %cst_166 : f32 to vector<8x32xf32>
    %880 = arith.select %8, %874, %879 : vector<8x32xi1>, vector<8x32xf32>
    %cst_167 = arith.constant dense<0.000000e+00> : vector<8x96xf32>
    %881 = tpu.matmul %875, %494, %cst_167 {dimension_numbers = #tpu.dot_dimension_numbers<[1], [0], [0], [1], [0, 0, 1, 1], [], []>} : vector<8x32xf32>, vector<32x96xf32>, vector<8x96xf32> -> vector<8x96xf32>
    %cst_168 = arith.constant dense<0.000000e+00> : vector<8x96xf32>
    %882 = tpu.matmul %876, %496, %cst_168 {dimension_numbers = #tpu.dot_dimension_numbers<[1], [0], [0], [1], [0, 0, 1, 1], [], []>} : vector<8x32xf32>, vector<32x96xf32>, vector<8x96xf32> -> vector<8x96xf32>
    %883 = vector.extract_strided_slice %492 {offsets = [56, 0], sizes = [8, 96], strides = [1, 1]} : vector<64x192xf32> to vector<8x96xf32>
    %884 = vector.extract_strided_slice %492 {offsets = [0, 96], sizes = [8, 96], strides = [1, 1]} : vector<64x192xf32> to vector<8x96xf32>
    %885 = vector.extract_strided_slice %883 {offsets = [0, 0], sizes = [8, 64], strides = [1, 1]} : vector<8x96xf32> to vector<8x64xf32>
    %886 = vector.extract_strided_slice %881 {offsets = [0, 0], sizes = [8, 64], strides = [1, 1]} : vector<8x96xf32> to vector<8x64xf32>
    %887 = arith.addf %885, %886 : vector<8x64xf32>
    %888 = arith.negf %887 : vector<8x64xf32>
    %889 = math.exp %888 : vector<8x64xf32>
    %cst_169 = arith.constant 1.000000e+00 : f32
    %890 = vector.broadcast %cst_169 : f32 to vector<8x64xf32>
    %891 = arith.addf %890, %889 : vector<8x64xf32>
    %892 = arith.divf %890, %891 : vector<8x64xf32>
    %893 = vector.extract_strided_slice %883 {offsets = [0, 64], sizes = [8, 32], strides = [1, 1]} : vector<8x96xf32> to vector<8x32xf32>
    %894 = vector.extract_strided_slice %892 {offsets = [0, 0], sizes = [8, 32], strides = [1, 1]} : vector<8x64xf32> to vector<8x32xf32>
    %895 = vector.extract_strided_slice %881 {offsets = [0, 64], sizes = [8, 32], strides = [1, 1]} : vector<8x96xf32> to vector<8x32xf32>
    %896 = vector.broadcast %498 : vector<1x32xf32> to vector<8x32xf32>
    %897 = arith.addf %895, %896 : vector<8x32xf32>
    %898 = arith.mulf %894, %897 : vector<8x32xf32>
    %899 = arith.addf %893, %898 : vector<8x32xf32>
    %900 = math.tanh %899 : vector<8x32xf32>
    %901 = vector.extract_strided_slice %892 {offsets = [0, 32], sizes = [8, 32], strides = [1, 1]} : vector<8x64xf32> to vector<8x32xf32>
    %cst_170 = arith.constant 1.000000e+00 : f32
    %902 = vector.broadcast %cst_170 : f32 to vector<8x32xf32>
    %903 = arith.subf %902, %901 : vector<8x32xf32>
    %904 = arith.mulf %903, %900 : vector<8x32xf32>
    %905 = arith.mulf %901, %875 : vector<8x32xf32>
    %906 = arith.addf %904, %905 : vector<8x32xf32>
    %907 = vector.extract_strided_slice %884 {offsets = [0, 0], sizes = [8, 64], strides = [1, 1]} : vector<8x96xf32> to vector<8x64xf32>
    %908 = vector.extract_strided_slice %882 {offsets = [0, 0], sizes = [8, 64], strides = [1, 1]} : vector<8x96xf32> to vector<8x64xf32>
    %909 = arith.addf %907, %908 : vector<8x64xf32>
    %910 = arith.negf %909 : vector<8x64xf32>
    %911 = math.exp %910 : vector<8x64xf32>
    %cst_171 = arith.constant 1.000000e+00 : f32
    %912 = vector.broadcast %cst_171 : f32 to vector<8x64xf32>
    %913 = arith.addf %912, %911 : vector<8x64xf32>
    %914 = arith.divf %912, %913 : vector<8x64xf32>
    %915 = vector.extract_strided_slice %884 {offsets = [0, 64], sizes = [8, 32], strides = [1, 1]} : vector<8x96xf32> to vector<8x32xf32>
    %916 = vector.extract_strided_slice %914 {offsets = [0, 0], sizes = [8, 32], strides = [1, 1]} : vector<8x64xf32> to vector<8x32xf32>
    %917 = vector.extract_strided_slice %882 {offsets = [0, 64], sizes = [8, 32], strides = [1, 1]} : vector<8x96xf32> to vector<8x32xf32>
    %918 = vector.broadcast %500 : vector<1x32xf32> to vector<8x32xf32>
    %919 = arith.addf %917, %918 : vector<8x32xf32>
    %920 = arith.mulf %916, %919 : vector<8x32xf32>
    %921 = arith.addf %915, %920 : vector<8x32xf32>
    %922 = math.tanh %921 : vector<8x32xf32>
    %923 = vector.extract_strided_slice %914 {offsets = [0, 32], sizes = [8, 32], strides = [1, 1]} : vector<8x64xf32> to vector<8x32xf32>
    %cst_172 = arith.constant 1.000000e+00 : f32
    %924 = vector.broadcast %cst_172 : f32 to vector<8x32xf32>
    %925 = arith.subf %924, %923 : vector<8x32xf32>
    %926 = arith.mulf %925, %922 : vector<8x32xf32>
    %927 = arith.mulf %923, %876 : vector<8x32xf32>
    %928 = arith.addf %926, %927 : vector<8x32xf32>
    %cst_173 = arith.constant 0.000000e+00 : f32
    %929 = vector.broadcast %cst_173 : f32 to vector<8x32xf32>
    %930 = arith.select %32, %906, %929 : vector<8x32xi1>, vector<8x32xf32>
    %cst_174 = arith.constant 0.000000e+00 : f32
    %931 = vector.broadcast %cst_174 : f32 to vector<8x32xf32>
    %932 = arith.select %4, %928, %931 : vector<8x32xi1>, vector<8x32xf32>
    %933 = tpu.concatenate %554, %932 in 1 : vector<8x32xf32>, vector<8x32xf32> -> vector<8x64xf32>
    %934 = tpu.concatenate %608, %880 in 1 : vector<8x32xf32>, vector<8x32xf32> -> vector<8x64xf32>
    %935 = tpu.concatenate %662, %826 in 1 : vector<8x32xf32>, vector<8x32xf32> -> vector<8x64xf32>
    %936 = tpu.concatenate %716, %772 in 1 : vector<8x32xf32>, vector<8x32xf32> -> vector<8x64xf32>
    %937 = tpu.concatenate %770, %718 in 1 : vector<8x32xf32>, vector<8x32xf32> -> vector<8x64xf32>
    %938 = tpu.concatenate %824, %664 in 1 : vector<8x32xf32>, vector<8x32xf32> -> vector<8x64xf32>
    %939 = tpu.concatenate %878, %610 in 1 : vector<8x32xf32>, vector<8x32xf32> -> vector<8x64xf32>
    %940 = tpu.concatenate %930, %556 in 1 : vector<8x32xf32>, vector<8x32xf32> -> vector<8x64xf32>
    %941 = tpu.concatenate %933, %934, %935, %936, %937, %938, %939, %940 in 0 : vector<8x64xf32>, vector<8x64xf32>, vector<8x64xf32>, vector<8x64xf32>, vector<8x64xf32>, vector<8x64xf32>, vector<8x64xf32>, vector<8x64xf32> -> vector<64x64xf32>
    %c0_175 = arith.constant 0 : index
    %c0_176 = arith.constant 0 : index
    %942 = vector.load %arg10[%c0_175, %c0_176] : memref<64x64xf32, #tpu.memory_space<vmem>>, vector<64x64xf32>
    tpu.vector_store %arg10[%c0_175, %c0_176], %941 {strides = array<i32>} : memref<64x64xf32, #tpu.memory_space<vmem>>, vector<64x64xf32>,
    return
  }
}

</mosaic_0001>

<bundles_post_ra>
// kernel: encoder_forward.1
= control target key start
LH: loop header
LB: loop body
LE: loop exit
PB: predicated region body
PF: predicated region fallthrough
CT: control target
= control target key end

     0   :  { %vm215_vm0 = vcmask 1043456   ;;  %vm190_vm1 = vcmask 359424   ;;  %s3669_s22 = smov 64   ;;  %s3672_s13 = smov 32   ;;  %s5373_s2 = inlined_call_operand.vmem [shape: f32[300,192], index: 2, kind: input, shape index: {}]   ;;  %s5374_s1 = inlined_call_operand.vmem [shape: f32[64,300], index: 1, kind: input, shape index: {}]   ;;  %s5375_s5 = inlined_call_operand.vmem [shape: f32[2,1,32], index: 5, kind: input, shape index: {}]   ;;  %s5376_s3 = inlined_call_operand.vmem [shape: f32[2,32,96], index: 3, kind: input, shape index: {}]   ;;  %s5377_s4 = inlined_call_operand.vmem [shape: f32[1,192], index: 4, kind: input, shape index: {}]   ;;  %s5378_s0 = inlined_call_operand.vmem [shape: f32[8,1], index: 0, kind: input, shape index: {}]   ;;  %s5379_s6 = inlined_call_operand.vmem [shape: f32[64,192], index: 6, kind: input, shape index: {}]   ;;  %s5380_s7 = inlined_call_operand.vmem [shape: f32[2,32,96], index: 7, kind: input, shape index: {}]   ;;  %s5381_s9 = inlined_call_operand.vmem [shape: f32[2,1,32], index: 9, kind: input, shape index: {}]   ;;  %s5382_s8 = inlined_call_operand.vmem [shape: f32[1,192], index: 8, kind: input, shape index: {}]   ;;  %s5383_s10 = inlined_call_operand.vmem [shape: f32[64,64], index: 10, kind: output, shape index: {}]  }
   0x1   :  { %v138_v0 = vld [vmem:[%s5373_s2 + $0xf0] sm:$0xff]  ;;  %v139_v3 = vld [vmem:[%s5373_s2 + $0xf8] sm:$0xff]  ;;  %v136_v4 = vld [vmem:[%s5373_s2 + $0xe0] sm:$0xff] }
   0x2   :  { %v170_v1 = vld [vmem:[%s5373_s2 + $0x1f0] sm:$0xff]  ;;  %222 = vmatpush.msra.mxu0 %v138_v0  ;;  %v168_v5 = vld [vmem:[%s5373_s2 + $0x1e0] sm:$0xff]  ;;  %345 = vmatpush.msra.mxu3 %v139_v3  ;;  %v137_v7 = vld [vmem:[%s5373_s2 + $0xe8] sm:$0xff] }
   0x3   :  { %v182_v2 = vld [vmem:[%s5373_s2 + $0x250] sm:$0xf]  ;;  %263 = vmatpush.msra.mxu1 %v170_v1  ;;  %v180_v6 = vld [vmem:[%s5373_s2 + $0x240] sm:$0xff]  ;;  %v135_v11 = vld [vmem:[%s5373_s2 + $0xd8] sm:$0xff] }
   0x4   :  { %3265 = vmatpush.msk.msra.mxu2 %vm215_vm0, %v182_v2  ;;  %v134_v8 = vld [vmem:[%s5373_s2 + $0xd0] sm:$0xff]  ;;  %223 = vmatpush.msra.mxu0 %v136_v4  ;;  %v132_v12 = vld [vmem:[%s5373_s2 + $0xc0] sm:$0xff]  ;;  %v133_v15 = vld [vmem:[%s5373_s2 + $0xc8] sm:$0xff] }
   0x5   :  { %264 = vmatpush.msra.mxu1 %v168_v5  ;;  %v166_v9 = vld [vmem:[%s5373_s2 + $0x1d0] sm:$0xff]  ;;  %346 = vmatpush.msra.mxu3 %v137_v7  ;;  %v164_v13 = vld [vmem:[%s5373_s2 + $0x1c0] sm:$0xff]  ;;  %v131_v19 = vld [vmem:[%s5373_s2 + $0xb8] sm:$0xff] }
   0x6   :  { %v178_v10 = vld [vmem:[%s5373_s2 + $0x230] sm:$0xff]  ;;  %315 = vmatpush.msra.mxu2 %v180_v6  ;;  %224 = vmatpush.msra.mxu0 %v134_v8  ;;  %v176_v14 = vld [vmem:[%s5373_s2 + $0x220] sm:$0xff]  ;;  %v129_v23 = vld [vmem:[%s5373_s2 + $0xa8] sm:$0xff] }
   0x7   :  { %265 = vmatpush.msra.mxu1 %v166_v9  ;;  %347 = vmatpush.msra.mxu3 %v135_v11  ;;  %v130_v16 = vld [vmem:[%s5373_s2 + $0xb0] sm:$0xff]  ;;  %v128_v20 = vld [vmem:[%s5373_s2 + $0xa0] sm:$0xff]  ;;  %v127_v27 = vld [vmem:[%s5373_s2 + $0x98] sm:$0xff] }
   0x8   :  { %316 = vmatpush.msra.mxu2 %v178_v10  ;;  %v162_v17 = vld [vmem:[%s5373_s2 + $0x1b0] sm:$0xff]  ;;  %225 = vmatpush.msra.mxu0 %v132_v12  ;;  %v160_v21 = vld [vmem:[%s5373_s2 + $0x1a0] sm:$0xff]  ;;  %v125_v30 = vld [vmem:[%s5373_s2 + $0x88] sm:$0xff] }
   0x9   :  { %266 = vmatpush.msra.mxu1 %v164_v13  ;;  %v174_v18 = vld [vmem:[%s5373_s2 + $0x210] sm:$0xff]  ;;  %348 = vmatpush.msra.mxu3 %v133_v15  ;;  %v172_v22 = vld [vmem:[%s5373_s2 + $0x200] sm:$0xff]  ;;  %v123_v33 = vld [vmem:[%s5373_s2 + $0x78] sm:$0xff] }
   0xa   :  { %317 = vmatpush.msra.mxu2 %v176_v14  ;;  %226 = vmatpush.msra.mxu0 %v130_v16  ;;  %v3805_v24 = vld [vmem:[%s5374_s1 + $0x10] sm:$0xff]  ;;  %v124_v28 = vld [vmem:[%s5373_s2 + $0x80] sm:$0xff]  ;;  %v121_v36 = vld [vmem:[%s5373_s2 + $0x68] sm:$0xff] }
   0xb   :  { %267 = vmatpush.msra.mxu1 %v162_v17  ;;  %349 = vmatpush.msra.mxu3 %v131_v19  ;;  %v126_v25 = vld [vmem:[%s5373_s2 + $0x90] sm:$0xff]  ;;  %v156_v29 = vld [vmem:[%s5373_s2 + $0x180] sm:$0xff]  ;;  %v3848_v37 = vld [vmem:[%s5374_s1 + $0x28] sm:$0xff] }
   0xc   :  { %318 = vmatpush.msra.mxu2 %v174_v18  ;;  %227 = vmatpush.msra.mxu0 %v128_v20  ;;  %v158_v26 = vld [vmem:[%s5373_s2 + $0x190] sm:$0xff]  ;;  %v120_v34 = vld [vmem:[%s5373_s2 + $0x60] sm:$0xff]  ;;  %v119_v40 = vld [vmem:[%s5373_s2 + $0x58] sm:$0xff] }
   0xd   :  { %268 = vmatpush.msra.mxu1 %v160_v21  ;;  %350 = vmatpush.msra.mxu3 %v129_v23  ;;  %v122_v31 = vld [vmem:[%s5373_s2 + $0x70] sm:$0xff]  ;;  %v152_v35 = vld [vmem:[%s5373_s2 + $0x160] sm:$0xff]  ;;  %v117_v43 = vld [vmem:[%s5373_s2 + $0x48] sm:$0xff] }
   0xe   :  { %319 = vmatpush.msra.mxu2 %v172_v22  ;;  %228 = vmatpush.msra.mxu0 %v126_v25  ;;  %v154_v32 = vld [vmem:[%s5373_s2 + $0x170] sm:$0xff]  ;;  %v116_v41 = vld [vmem:[%s5373_s2 + $0x40] sm:$0xff]  ;;  %v171_v44 = vld [vmem:[%s5373_s2 + $0x1f8] sm:$0xff] }
   0xf   :  { %3266 = vmatmul.msk.f32.vlgmr.msra.gmra.mxu2 %vm190_vm1, %v3805_v24  ;;  %269 = vmatpush.msra.mxu1 %v158_v26  ;;  %v118_v38 = vld [vmem:[%s5373_s2 + $0x50] sm:$0xff]  ;;  %v148_v42 = vld [vmem:[%s5373_s2 + $0x140] sm:$0xff]  ;;  %v169_v46 = vld [vmem:[%s5373_s2 + $0x1e8] sm:$0xff] }
  0x10   :  { %351 = vmatpush.msra.mxu3 %v127_v27  ;;  %229 = vmatpush.msra.mxu0 %v124_v28  ;;  %v150_v39 = vld [vmem:[%s5373_s2 + $0x150] sm:$0xff]  ;;  %v115_v48 = vld [vmem:[%s5373_s2 + $0x38] sm:$0xff]  ;;  %v112_v49 = vld [vmem:[%s5373_s2 + $0x20] sm:$0xff] }
  0x11   :  { %270 = vmatpush.msra.mxu1 %v156_v29  ;;  %v114_v45 = vld [vmem:[%s5373_s2 + $0x30] sm:$0xff]  ;;  %386 = vmatpush.msrb.mxu2 %v171_v44  ;;  %v144_v50 = vld [vmem:[%s5373_s2 + $0x120] sm:$0xff]  ;;  %v167_v51 = vld [vmem:[%s5373_s2 + $0x1d8] sm:$0xff] }
  0x12   :  { %352 = vmatpush.msra.mxu3 %v125_v30  ;;  %230 = vmatpush.msra.mxu0 %v122_v31  ;;  %v146_v47 = vld [vmem:[%s5373_s2 + $0x130] sm:$0xff]  ;;  %v113_v52 = vld [vmem:[%s5373_s2 + $0x28] sm:$0xff]  ;;  %v3900_v53 = vld [vmem:[%s5374_s1 + $0x40] sm:$0xff] }
  0x13   :  { %271 = vmatpush.msra.mxu1 %v154_v32  ;;  %387 = vmatpush.msrb.mxu2 %v169_v46  ;;  %v110_v54 = vld [vmem:[%s5373_s2 + $0x10] sm:$0xff]  ;;  %v111_v56 = vld [vmem:[%s5373_s2 + $0x18] sm:$0xff]  ;;  %v108_v57 = vld [vmem:[%s5373_s2] sm:$0xff] }
  0x14   :  { %353 = vmatpush.msra.mxu3 %v123_v33  ;;  %231 = vmatpush.msra.mxu0 %v120_v34  ;;  %v142_v55 = vld [vmem:[%s5373_s2 + $0x110] sm:$0xff]  ;;  %v165_v58 = vld [vmem:[%s5373_s2 + $0x1c8] sm:$0xff]  ;;  %v140_v59 = vld [vmem:[%s5373_s2 + $0x100] sm:$0xff] }
  0x15   :  { %272 = vmatpush.msra.mxu1 %v152_v35  ;;  %388 = vmatpush.msrb.mxu2 %v167_v51  ;;  %v109_v60 = vld [vmem:[%s5373_s2 + $0x8] sm:$0xff]  ;;  %v84_v61 = vld [vmem:[%s5374_s1] sm:$0xff]  ;;  %v163_v63 = vld [vmem:[%s5373_s2 + $0x1b8] sm:$0xff] }
  0x16   :  { %354 = vmatpush.msra.mxu3 %v121_v36  ;;  %232 = vmatpush.msra.mxu0 %v118_v38  ;;  %v3931_v62 = vld [vmem:[%s5374_s1 + $0x8] sm:$0xff]  ;;  %v3939_v0 = vld [vmem:[%s5376_s3 + $0x38] sm:$0xff]  ;;  %v3953_v3 = vld [vmem:[%s5376_s3 + $0x30] sm:$0xff] }
  0x17   :  { %3267 = vmatmul.msk.f32.gmra.mxu2 %vm190_vm1, %v3848_v37  ;;  %273 = vmatpush.msra.mxu1 %v150_v39  ;;  %v161_v1 = vld [vmem:[%s5373_s2 + $0x1a8] sm:$0xff]  ;;  %v3948_v2 = vld [vmem:[%s5374_s1 + $0x58] sm:$0xff]  ;;  %v3981_v9 = vld [vmem:[%s5374_s1 + $0x20] sm:$0xff] }
  0x18   :  { %355 = vmatpush.msra.mxu3 %v119_v40  ;;  %233 = vmatpush.msra.mxu0 %v116_v41  ;;  %v159_v4 = vld [vmem:[%s5373_s2 + $0x198] sm:$0xff]  ;;  %v3962_v5 = vld [vmem:[%s5376_s3 + $0x28] sm:$0xff]  ;;  %v3995_v12 = vld [vmem:[%s5374_s1 + $0x70] sm:$0xff] }
  0x19   :  { %274 = vmatpush.msra.mxu1 %v148_v42  ;;  %389 = vmatpush.msrb.mxu2 %v165_v58  ;;  %v157_v6 = vld [vmem:[%s5373_s2 + $0x188] sm:$0xff]  ;;  %v3973_v7 = vld [vmem:[%s5376_s3 + $0x18] sm:$0xff]  ;;  %v90_v15 = vld [vmem:[%s5374_s1 + $0x30] sm:$0xff] }
  0x1a   :  { %356 = vmatpush.msra.mxu3 %v117_v43  ;;  %234 = vmatpush.msra.mxu0 %v114_v45  ;;  %v87_v8 = vld [vmem:[%s5374_s1 + $0x18] sm:$0xff]  ;;  %v153_v11 = vld [vmem:[%s5373_s2 + $0x168] sm:$0xff]  ;;  %v4028_v20 = vld [vmem:[%s5376_s3 + $0x20] sm:$0xff] }
  0x1b   :  { %275 = vmatpush.msra.mxu1 %v146_v47  ;;  %390 = vmatpush.msrb.mxu2 %v163_v63  ;;  %v155_v10 = vld [vmem:[%s5373_s2 + $0x178] sm:$0xff]  ;;  %v149_v14 = vld [vmem:[%s5373_s2 + $0x148] sm:$0xff]  ;;  %v4049_v26 = vld [vmem:[%s5376_s3 + $0x10] sm:$0xff] }
  0x1c   :  { %357 = vmatpush.msra.mxu3 %v115_v48  ;;  %235 = vmatpush.msra.mxu0 %v112_v49  ;;  %v151_v13 = vld [vmem:[%s5373_s2 + $0x158] sm:$0xff]  ;;  %v145_v18 = vld [vmem:[%s5373_s2 + $0x128] sm:$0xff]  ;;  %v4057_v28 = vld [vmem:[%s5374_s1 + $0x50] sm:$0xff]  ;;  %v3670_v48 = vmov 0.0  }
  0x1d   :  { %276 = vmatpush.msra.mxu1 %v144_v50  ;;  %391 = vmatpush.msrb.mxu2 %v161_v1  ;;  %v4011_v16 = vld [vmem:[%s5374_s1 + $0x38] sm:$0xff]  ;;  %v4023_v19 = vld [vmem:[%s5374_s1 + $0x88] sm:$0xff]  ;;  %v4066_v29 = vld [vmem:[%s5374_s1 + $0xa0] sm:$0xff] }
  0x1e   :  { %358 = vmatpush.msra.mxu3 %v113_v52  ;;  %236 = vmatpush.msra.mxu0 %v110_v54  ;;  %v147_v17 = vld [vmem:[%s5373_s2 + $0x138] sm:$0xff]  ;;  %v141_v22 = vld [vmem:[%s5373_s2 + $0x108] sm:$0xff]  ;;  %v96_v34 = vld [vmem:[%s5374_s1 + $0x60] sm:$0xff] }
  0x1f   :  { %3268 = vmatmul.msk.f32.gmra.mxu2 %vm190_vm1, %v3900_v53  ;;  %277 = vmatpush.msra.mxu1 %v142_v55  ;;  %v143_v21 = vld [vmem:[%s5373_s2 + $0x118] sm:$0xff]  ;;  %v181_v25 = vld [vmem:[%s5373_s2 + $0x248] sm:$0xff]  ;;  %v4097_v36 = vld [vmem:[%s5376_s3] sm:$0xff] }
  0x20   :  { %359 = vmatpush.msra.mxu3 %v111_v56  ;;  %237 = vmatpush.msra.mxu0 %v108_v57  ;;  %v183_v23 = vld [vmem:[%s5373_s2 + $0x258] sm:$0xf]  ;;  %v93_v27 = vld [vmem:[%s5374_s1 + $0x48] sm:$0xff]  ;;  %v100_v41 = vld [vmem:[%s5374_s1 + $0x80] sm:$0xff] }
  0x21   :  { %278 = vmatpush.msra.mxu1 %v140_v59  ;;  %238 = vmatmul.f32.vlgmr.msra.gmra.mxu0 %v84_v61  ;;  %v179_v30 = vld [vmem:[%s5373_s2 + $0x238] sm:$0xff]  ;;  %v177_v31 = vld [vmem:[%s5373_s2 + $0x228] sm:$0xff]  ;;  %v3393_v42 = vld [vmem:[%s5375_s5] ss:$0 sm:$0xff] }
  0x22   :  { %360 = vmatpush.msra.mxu3 %v109_v60  ;;  %279 = vmatmul.f32.vlgmr.msra.gmra.mxu1 %v3931_v62  ;;  %v175_v32 = vld [vmem:[%s5373_s2 + $0x218] sm:$0xff]  ;;  %v4085_v33 = vld [vmem:[%s5376_s3 + $0x8] sm:$0xff]  ;;  %v102_v43 = vld [vmem:[%s5374_s1 + $0x90] sm:$0xff] }
  0x23   :  { %361 = vmatmul.f32.vlgmr.msra.gmra.mxu3 %v84_v61  ;;  %392 = vmatpush.msrb.mxu2 %v159_v4  ;;  %v97_v35 = vld [vmem:[%s5374_s1 + $0x68] sm:$0xff]  ;;  %v107_v39 = vld [vmem:[%s5374_s1 + $0xb8] sm:$0xff]  ;;  %v3394_v45 = vld [vmem:[%s5375_s5 + $0x1] ss:$0 sm:$0xff] }
  0x24   :  { %516 = vmatpush.msrb.mxu3 %v3939_v0  ;;  %496 = vmatpush.msrb.mxu1 %v3973_v7  ;;  %v173_v38 = vld [vmem:[%s5373_s2 + $0x208] sm:$0xff]  ;;  %v99_v40 = vld [vmem:[%s5374_s1 + $0x78] sm:$0xff]  ;;  %v106_v47 = vld [vmem:[%s5374_s1 + $0xb0] sm:$0xff] }
  0x25   :  { %393 = vmatpush.msrb.mxu2 %v157_v6  ;;  %3274 = vmatpush.msk.msrb.mxu0 %vm215_vm0, %v183_v23  ;;  %v103_v44 = vld [vmem:[%s5374_s1 + $0x98] sm:$0xff]  ;;  %v105_v46 = vld [vmem:[%s5374_s1 + $0xa8] sm:$0xff]  ;;  %v184_v51 = vld [vmem:[%s5377_s4] sm:$0x3]  ;;  %s3671_s4 = smov 96  }
  0x26   :  { %517 = vmatpush.msrb.mxu3 %v3953_v3  ;;  %497 = vmatpush.msrb.mxu1 %v4049_v26  ;;  %v4184_v54 = vperm.slane %v184_v51, 0 }
  0x27   :  { %3269 = vmatmul.msk.f32.gmra.mxu2 %vm190_vm1, %v3948_v2  ;;  %438 = vmatpush.msrb.mxu0 %v181_v25 }
  0x28   :  { %518 = vmatpush.msrb.mxu3 %v3962_v5  ;;  %394 = vmatpush.msrb.mxu2 %v155_v10 }
  0x29   :  { %241 = vmatmul.f32.gmra.mxu0 %v87_v8  ;;  %498 = vmatpush.msrb.mxu1 %v4085_v33 }
  0x2a   :  { %282 = vmatmul.f32.gmra.mxu1 %v3981_v9  ;;  %395 = vmatpush.msrb.mxu2 %v153_v11 }
  0x2b   :  { %364 = vmatmul.f32.gmra.mxu3 %v87_v8  ;;  %439 = vmatpush.msrb.mxu0 %v179_v30 }
  0x2c   :  { %396 = vmatpush.msrb.mxu2 %v151_v13  ;;  %519 = vmatpush.msrb.mxu3 %v4028_v20 }
  0x2d   :  { %440 = vmatpush.msrb.mxu0 %v177_v31  ;;  %499 = vmatpush.msrb.mxu1 %v4097_v36 }
  0x2e   :  { %397 = vmatpush.msrb.mxu2 %v149_v14  ;;  %680 = vmatpush.msra.mxu3 %v3939_v0 }
  0x2f   :  { %3270 = vmatmul.msk.f32.gmra.mxu2 %vm190_vm1, %v3995_v12  ;;  %441 = vmatpush.msrb.mxu0 %v175_v32 }
  0x30   :  { %398 = vmatpush.msrb.mxu2 %v147_v17  ;;  %681 = vmatpush.msra.mxu3 %v3953_v3 }
  0x31   :  { %244 = vmatmul.f32.gmra.mxu0 %v90_v15  ;;  %657 = vmatpush.msra.mxu1 %v3973_v7 }
  0x32   :  { %285 = vmatmul.f32.gmra.mxu1 %v4011_v16  ;;  %399 = vmatpush.msrb.mxu2 %v145_v18 }
  0x33   :  { %367 = vmatmul.f32.gmra.mxu3 %v90_v15  ;;  %442 = vmatpush.msrb.mxu0 %v173_v38 }
  0x34   :  { %400 = vmatpush.msrb.mxu2 %v143_v21  ;;  %682 = vmatpush.msra.mxu3 %v3962_v5 }
  0x35   :  { %658 = vmatpush.msra.mxu1 %v4049_v26  ;;  %546 = vrot.lane.b32.xlu1 %v3393_v42, %s3669_s22 }
  0x36   :  { %401 = vmatpush.msrb.mxu2 %v141_v22  ;;  %683 = vmatpush.msra.mxu3 %v4028_v20 }
  0x37   :  { %3271 = vmatmul.msk.f32.gmra.mxu2 %vm190_vm1, %v4023_v19  ;;  %659 = vmatpush.msra.mxu1 %v4085_v33 }
  0x38   :  { %1437 = vmatpush.msra.mxu2 %v3973_v7  ;;  %615 = vrot.lane.b32.xlu0 %v3394_v45, %s3669_s22 }
  0x39   :  { %247 = vmatmul.f32.gmra.mxu0 %v93_v27  ;;  %660 = vmatpush.msra.mxu1 %v4097_v36 }
  0x3a   :  { %288 = vmatmul.f32.gmra.mxu1 %v4057_v28  ;;  %1438 = vmatpush.msra.mxu2 %v4049_v26 }
  0x3b   :  { %370 = vmatmul.f32.gmra.mxu3 %v93_v27 }
  0x3c   :  { %1439 = vmatpush.msra.mxu2 %v4085_v33 }
  0x3e   :  { %1440 = vmatpush.msra.mxu2 %v4097_v36 }
  0x3f   :  { %3272 = vmatmul.msk.f32.gmra.mxu2 %vm190_vm1, %v4066_v29 }
  0x41   :  { %250 = vmatmul.f32.gmra.mxu0 %v96_v34 }
  0x42   :  { %291 = vmatmul.f32.gmra.mxu1 %v97_v35 }
  0x43   :  { %373 = vmatmul.f32.gmra.mxu3 %v96_v34 }
  0x47   :  { %3273 = vmatmul.msk.f32.gmra.mxu2 %vm190_vm1, %v107_v39 }
  0x49   :  { %253 = vmatmul.f32.gmra.mxu0 %v99_v40 }
  0x4a   :  { %294 = vmatmul.f32.gmra.mxu1 %v100_v41 }
  0x4b   :  { %376 = vmatmul.f32.gmra.mxu3 %v99_v40 }
  0x4f   :  { %402 = vmatmul.f32.vlgmr.msrb.gmra.mxu2 %v3931_v62 }
  0x50   :  { %1616 = vmatpush.msrb.mxu2 %v3939_v0 }
  0x51   :  { %256 = vmatmul.f32.gmra.mxu0 %v102_v43 }
  0x52   :  { %1617 = vmatpush.msrb.mxu2 %v3953_v3  ;;  %297 = vmatmul.f32.gmra.mxu1 %v103_v44 }
  0x53   :  { %379 = vmatmul.f32.gmra.mxu3 %v102_v43 }
  0x54   :  { %1618 = vmatpush.msrb.mxu2 %v3962_v5 }
  0x56   :  { %1619 = vmatpush.msrb.mxu2 %v4028_v20 }
  0x57   :  { %405 = vmatmul.f32.gmra.mxu2 %v3981_v9 }
  0x59   :  { %259 = vmatmul.f32.gmra.mxu0 %v105_v46 }
  0x5a   :  { %300 = vmatmul.f32.gmra.mxu1 %v106_v47 }
  0x5b   :  { %382 = vmatmul.f32.gmra.mxu3 %v105_v46 }
  0x5f   :  { %408 = vmatmul.f32.gmra.mxu2 %v4011_v16 }
  0x61   :  { %3275 = vmatmul.msk.f32.vlgmr.msrb.gmra.mxu0 %vm190_vm1, %v3805_v24 }
  0x62   :  { %500 = vmatmul.f32.vlgmr.msrb.gmra.mxu1 %v3670_v48 }
  0x63   :  { %520 = vmatmul.f32.vlgmr.msrb.gmra.mxu3 %v3670_v48  ;;  %813 = vmatpush.msrb.mxu1 %v3973_v7 }
  0x64   :  { %836 = vmatpush.msrb.mxu3 %v3939_v0 }
  0x65   :  { %814 = vmatpush.msrb.mxu1 %v4049_v26 }
  0x66   :  { %837 = vmatpush.msrb.mxu3 %v3953_v3 }
  0x67   :  { %411 = vmatmul.f32.gmra.mxu2 %v4057_v28  ;;  %815 = vmatpush.msrb.mxu1 %v4085_v33 }
  0x68   :  { %838 = vmatpush.msrb.mxu3 %v3962_v5 }
  0x69   :  { %816 = vmatpush.msrb.mxu1 %v4097_v36  ;;  %3276 = vmatmul.msk.f32.gmra.mxu0 %vm190_vm1, %v3848_v37 }
  0x6a   :  { %839 = vmatpush.msrb.mxu3 %v4028_v20 }
  0x6f   :  { %414 = vmatmul.f32.gmra.mxu2 %v97_v35 }
  0x71   :  { %3277 = vmatmul.msk.f32.gmra.mxu0 %vm190_vm1, %v3900_v53  ;;  %v187_v53 = vperm.slane %v184_v51, 1 }
  0x77   :  { %417 = vmatmul.f32.gmra.mxu2 %v100_v41 }
  0x79   :  { %3278 = vmatmul.msk.f32.gmra.mxu0 %vm190_vm1, %v3948_v2 }
  0x7f   :  { %420 = vmatmul.f32.gmra.mxu2 %v103_v44 }
  0x81   :  { %3279 = vmatmul.msk.f32.gmra.mxu0 %vm190_vm1, %v3995_v12 }
  0x87   :  { %423 = vmatmul.f32.gmra.mxu2 %v106_v47 }
  0x89   :  { %3280 = vmatmul.msk.f32.gmra.mxu0 %vm190_vm1, %v4023_v19 }
  0x91   :  { %3281 = vmatmul.msk.f32.gmra.mxu0 %vm190_vm1, %v4066_v29 }
  0x92   :  { %v4170_v24 = vpop.f32.mrf.mxu2 }
  0x99   :  { %3282 = vmatmul.msk.f32.gmra.mxu0 %vm190_vm1, %v107_v39  ;;  %vm480_vm1 = vcmask 261120  }
  0x9a   :  { %v4174_v37 = vpop.f32.mrf.mxu2 }
  0x9e   :  { %v4177_v49 = vpop.f32.mrf.mxu0 }
  0x9f   :  { %v4179_v50 = vpop.f32.mrf.mxu1 }
  0xa2   :  { %v327_v52 = vpop.f32.mrf.mxu2 }
  0xa6   :  { %v362_v55 = vpop.f32.mrf.mxu3  ;;  %v242_v57 = vpop.f32.mrf.mxu0 }
  0xa7   :  { %v363_v56 = vadd.f32 %v362_v55, %v187_v53  ;;  %v283_v58 = vpop.f32.mrf.mxu1  ;;  %v243_v59 = vadd.f32 %v242_v57, %v4184_v54 }
  0xa9   :  { %v4187_v61 = vadd.f32 %v283_v58, %v243_v59 }
  0xaa   :  { %v330_v60 = vpop.f32.mrf.mxu2 }
  0xae   :  { %v365_v62 = vpop.f32.mrf.mxu3  ;;  %v245_v1 = vpop.f32.mrf.mxu0 }
  0xaf   :  { %v366_v63 = vadd.f32 %v365_v62, %v187_v53  ;;  %v286_v2 = vpop.f32.mrf.mxu1  ;;  %v246_v4 = vadd.f32 %v245_v1, %v4184_v54  ;;  %v4210_v62 = vpop.permute.xlu1 %546 }
  0xb1   :  { %v287_v8 = vadd.f32 %v286_v2, %v246_v4 }
  0xb2   :  { %v333_v6 = vpop.f32.mrf.mxu2 }
  0xb3   :  { %v4190_v9 = vadd.f32 %v327_v52, %v287_v8 }
  0xb6   :  { %v368_v10 = vpop.f32.mrf.mxu3  ;;  %v248_v12 = vpop.f32.mrf.mxu0 }
  0xb7   :  { %v369_v11 = vadd.f32 %v368_v10, %v187_v53  ;;  %v289_v13 = vpop.f32.mrf.mxu1  ;;  %v249_v14 = vadd.f32 %v248_v12, %v4184_v54 }
  0xb9   :  { %v290_v16 = vadd.f32 %v289_v13, %v249_v14  ;;  %v4218_v13 = vpop.permute.xlu0 %615 }
  0xba   :  { %v336_v15 = vpop.f32.mrf.mxu2 }
  0xbb   :  { %v4193_v17 = vadd.f32 %v330_v60, %v290_v16 }
  0xbe   :  { %v371_v18 = vpop.f32.mrf.mxu3  ;;  %v251_v21 = vpop.f32.mrf.mxu0 }
  0xbf   :  { %v372_v19 = vadd.f32 %v371_v18, %v187_v53  ;;  %v292_v22 = vpop.f32.mrf.mxu1  ;;  %v252_v23 = vadd.f32 %v251_v21, %v4184_v54 }
  0xc1   :  { %v293_v27 = vadd.f32 %v292_v22, %v252_v23 }
  0xc2   :  { %v339_v25 = vpop.f32.mrf.mxu2 }
  0xc3   :  { %v4196_v28 = vadd.f32 %v333_v6, %v293_v27 }
  0xc6   :  { %v374_v29 = vpop.f32.mrf.mxu3  ;;  %v254_v31 = vpop.f32.mrf.mxu0 }
  0xc7   :  { %v375_v30 = vadd.f32 %v374_v29, %v187_v53  ;;  %v295_v32 = vpop.f32.mrf.mxu1  ;;  %v255_v34 = vadd.f32 %v254_v31, %v4184_v54 }
  0xc9   :  { %v296_v38 = vadd.f32 %v295_v32, %v255_v34 }
  0xca   :  { %v4199_v35 = vpop.f32.mrf.mxu2 }
  0xcb   :  { %v4201_v39 = vadd.f32 %v336_v15, %v296_v38  ;;  %v240_v38 = vadd.f32 %v4177_v49, %v4184_v54 }
  0xce   :  { %v377_v40 = vpop.f32.mrf.mxu3  ;;  %v257_v42 = vpop.f32.mrf.mxu0 }
  0xcf   :  { %v378_v41 = vadd.f32 %v377_v40, %v187_v53  ;;  %v298_v43 = vpop.f32.mrf.mxu1  ;;  %v258_v44 = vadd.f32 %v257_v42, %v4184_v54 }
  0xd1   :  { %v299_v46 = vadd.f32 %v298_v43, %v258_v44 }
  0xd2   :  { %v403_v45 = vpop.f32.mrf.mxu2 }
  0xd3   :  { %v404_v47 = vadd.f32 %v403_v45, %v363_v56  ;;  %v4204_v51 = vadd.f32 %v339_v25, %v299_v46 }
  0xd6   :  { %v380_v52 = vpop.f32.mrf.mxu3  ;;  %v4206_v57 = vpop.f32.mrf.mxu0 }
  0xd7   :  { %v381_v55 = vadd.f32 %v380_v52, %v187_v53  ;;  %v4208_v58 = vpop.f32.mrf.mxu1 }
  0xda   :  { %v406_v59 = vpop.f32.mrf.mxu2 }
  0xdb   :  { %v407_v60 = vadd.f32 %v406_v59, %v366_v63 }
  0xde   :  { %v383_v1 = vpop.f32.mrf.mxu3  ;;  %v444_v4 = vpop.f32.mrf.mxu0 }
  0xdf   :  { %v4212_v2 = vadd.f32 %v383_v1, %v187_v53  ;;  %v501_v6 = vpop.f32.mrf.mxu1  ;;  %v4214_v8 = vadd.f32 %v444_v4, %v404_v47 }
  0xe0   :  { %v549_v56 = vadd.f32 %v4210_v62, %v501_v6 }
  0xe2   :  { %v409_v10 = vpop.f32.mrf.mxu2  ;;  %551 = vrot.lane.b32.xlu2 %v549_v56, %s3669_s22 }
  0xe3   :  { %v410_v12 = vadd.f32 %v409_v10, %v369_v11 }
  0xe6   :  { %v521_v14 = vpop.f32.mrf.mxu3  ;;  %v447_v53 = vpop.f32.mrf.mxu0 }
  0xe7   :  { %v618_v63 = vadd.f32 %v4218_v13, %v521_v14  ;;  %570 = vrot.lane.b32.xlu0 %v521_v14, %s3671_s4  ;;  %v4222_v15 = vadd.f32 %v447_v53, %v407_v60 }
  0xe9   :  { %620 = vrot.lane.b32.xlu1 %v618_v63, %s3672_s13  ;;  %v261_v63 = vadd.f32 %v4206_v57, %v4184_v54 }
  0xea   :  { %v412_v16 = vpop.f32.mrf.mxu2 }
  0xeb   :  { %v413_v18 = vadd.f32 %v412_v16, %v372_v19  ;;  %v281_v19 = vadd.f32 %v4179_v50, %v240_v38  ;;  %v302_v53 = vadd.f32 %v4208_v58, %v261_v63 }
  0xed   :  { %v4250_v16 = vadd.f32 %v4199_v35, %v302_v53 }
  0xee   :  { %v450_v21 = vpop.f32.mrf.mxu0 }
  0xef   :  { %v4225_v11 = vadd.f32 %v450_v21, %v410_v12 }
  0xf2   :  { %v415_v22 = vpop.f32.mrf.mxu2 }
  0xf3   :  { %v416_v23 = vadd.f32 %v415_v22, %v375_v30  ;;  %v4237_v30 = vadd.f32 %v4170_v24, %v281_v19 }
  0xf5   :  { %v524_v45 = vadd.f32 %v501_v6, %v4237_v30 }
  0xf6   :  { %v453_v25 = vpop.f32.mrf.mxu0 }
  0xf7   :  { %v4227_v27 = vadd.f32 %v453_v25, %v413_v18  ;;  %v3288_v46 = vmul.f32 -1.442695, %v524_v45 }
  0xf9   :  { %3397 = vpow2.f32 %v3288_v46 }
  0xfa   :  { %v418_v29 = vpop.f32.mrf.mxu2 }
  0xfb   :  { %v419_v31 = vadd.f32 %v418_v29, %v378_v41 }
  0xfe   :  { %v456_v32 = vpop.f32.mrf.mxu0 }
  0xff   :  { %v4229_v34 = vadd.f32 %v456_v32, %v416_v23  ;;  %v3398_v52 = vpop.eup %3397 }
 0x100   :  { %v528_v59 = vadd.f32 1.0, %v3398_v52  ;;  %v3673_v52 = vmov 0  }
 0x101   :  { %3391 = vset.pattern.permute.xlu1 %v3673_v52  ;;  %3390 = vset.pattern.permute.xlu2 %v3673_v52 }
 0x102   :  { %v421_v40 = vpop.f32.mrf.mxu2  ;;  %3399 = vrcp.f32 %v528_v59  ;;  %v540_v4 = vand.u32 2147483648, %v528_v59  ;;  %vm534_vm3 = vweird.f32 %v528_v59  ;;  %v538_v24 = vand.u32 2147483647, %v528_v59  ;;  %3392 = vset.pattern.permute.xlu0 %v3673_v52 }
 0x103   :  { %v422_v42 = vadd.f32 %v421_v40, %v381_v55 }
 0x104   :  { %v541_v6 = vor.u32 1.1754944e-38, %v540_v4  ;;  %vm539_vm5 = vcmp.eq.f32.partialorder %v538_v24, 8.507059e+37 }
 0x106   :  { %v459_v43 = vpop.f32.mrf.mxu0 }
 0x107   :  { %v4234_v44 = vadd.f32 %v459_v43, %v419_v31 }
 0x108   :  { %v3400_v49 = vpop.eup %3399 }
 0x109   :  { %v530_v55 = vmul.f32 %v3400_v49, %v528_v59  ;;  %vm535_vm2 = vweird.f32 %v3400_v49  ;;  %v4262_v59 = vld [vmem:[%s5378_s0] sm:$0xff] }
 0x10a   :  { %vm536_vm4 = vmor %vm534_vm3, %vm535_vm2  ;;  %vm78_vm10 = vcmp.gt.f32.partialorder %v4262_v59, 7.0  ;;  %vm36_vm11 = vcmp.gt.f32.partialorder %v4262_v59, 0.0 }
 0x10b   :  { %v531_v60 = vsub.f32 1.0, %v530_v55  ;;  %v424_v55 = vpop.f32.mrf.mxu2 }
 0x10d   :  { %v532_v50 = vmul.f32 %v3400_v49, %v531_v60 }
 0x10e   :  { %v462_v41 = vpop.f32.mrf.mxu0 }
 0x10f   :  { %v4240_v47 = vadd.f32 %v462_v41, %v422_v42  ;;  %v533_v1 = vadd.f32 %v3400_v49, %v532_v50  ;;  %v425_v50 = vadd.f32 %v424_v55, %v4212_v2 }
 0x111   :  { %v537_v56 = vsel %vm536_vm4, %v3400_v49, %v533_v1  ;;  %v79_v49 = vsel %vm78_vm10, 1, %v3673_v52 }
 0x112   :  { %v4242_v12 = vsel %vm539_vm5, %v541_v6, %v537_v56  ;;  %v37_v6 = vsel %vm36_vm11, 1, %v3673_v52 }
 0x116   :  { %v465_v60 = vpop.f32.mrf.mxu0 }
 0x117   :  { %v466_v1 = vadd.f32 %v465_v60, %v425_v50 }
 0x13c   :  { %v552_v10 = vpop.permute.xlu2 %551 }
 0x13d   :  { %v554_v14 = vmul.f32 %v552_v10, %v4242_v12 }
 0x13f   :  { %556 = vrot.lane.b32.xlu0 %v554_v14, %s3669_s22 }
 0x159   :  { %v571_v18 = vpop.permute.xlu0 %570 }
 0x15a   :  { %v573_v21 = vadd.f32 %v571_v18, %v4250_v16  ;;  %v574_v10 = vadd.f32 %v571_v18, %v466_v1 }
 0x15b   :  { %v621_v42 = vpop.permute.xlu1 %620 }
 0x15c   :  { %v3289_v22 = vmul.f32 -1.442695, %v573_v21  ;;  %v3290_v14 = vmul.f32 -1.442695, %v574_v10 }
 0x15e   :  { %3401 = vpow2.f32 %v3289_v22 }
 0x164   :  { %v3402_v23 = vpop.eup %3401 }
 0x165   :  { %v581_v25 = vadd.f32 1.0, %v3402_v23 }
 0x167   :  { %3403 = vrcp.f32 %v581_v25  ;;  %v594_v38 = vand.u32 2147483648, %v581_v25  ;;  %v592_v54 = vand.u32 2147483647, %v581_v25  ;;  %vm588_vm7 = vweird.f32 %v581_v25 }
 0x169   :  { %v595_v35 = vor.u32 1.1754944e-38, %v594_v38  ;;  %vm593_vm9 = vcmp.eq.f32.partialorder %v592_v54, 8.507059e+37 }
 0x16d   :  { %v3404_v29 = vpop.eup %3403 }
 0x16e   :  { %v584_v31 = vmul.f32 %v3404_v29, %v581_v25  ;;  %vm589_vm6 = vweird.f32 %v3404_v29 }
 0x16f   :  { %vm590_vm8 = vmor %vm588_vm7, %vm589_vm6  ;;  %vm72_vm7 = vcmp.gt.f32.partialorder %v4262_v59, 6.0 }
 0x170   :  { %v585_v32 = vsub.f32 1.0, %v584_v31 }
 0x172   :  { %v586_v40 = vmul.f32 %v3404_v29, %v585_v32 }
 0x174   :  { %v587_v57 = vadd.f32 %v3404_v29, %v586_v40 }
 0x176   :  { %v591_v58 = vsel %vm590_vm8, %v3404_v29, %v587_v57 }
 0x177   :  { %v596_v19 = vsel %vm593_vm9, %v595_v35, %v591_v58 }
 0x178   :  { %v623_v43 = vmul.f32 %v621_v42, %v596_v19  ;;  %v561_v19 = vsub.f32 1.0, %v4242_v12 }
 0x17a   :  { %625 = vrot.lane.b32.xlu2 %v623_v43, %s3669_s22 }
 0x182   :  { %81 = vperm.xlu2 %3390, %v79_v49  }
 0x1b1   :  { %v557_v45 = vpop.permute.xlu0 %556 }
 0x1b2   :  { %v559_v46 = vadd.f32 %v557_v45, %v4237_v30 }
 0x1b4   :  { %3405 = vtanh.f32 %v559_v46 }
 0x1ba   :  { %v3406_v41 = vpop.eup %3405 }
 0x1bb   :  { %563 = vrot.lane.b32.xlu0 %v3406_v41, %s3671_s4  ;;  %v567_v41 = vmul.f32 0.0, %v4242_v12 }
 0x1d4   :  { %v626_v4 = vpop.permute.xlu2 %625 }
 0x1d5   :  { %v628_v24 = vadd.f32 %v626_v4, %v466_v1 }
 0x1d7   :  { %3407 = vtanh.f32 %v628_v24 }
 0x1d8   :  { %3409 = vpow2.f32 %v3290_v14 }
 0x1dc   :  { %v4270_v54 = vpop.permute.xlu2 %81 }
 0x1dd   :  { %v3408_v56 = vpop.eup %3407  ;;  %vm5384_vm0 = vcmp.eq.s32.totalorder %v4270_v54, 1 }
 0x1de   :  { %632 = vrot.lane.b32.xlu1 %v3408_v56, %s3671_s4  ;;  %v3410_v63 = vpop.eup %3409 }
 0x1df   :  { %v582_v53 = vadd.f32 1.0, %v3410_v63 }
 0x1e1   :  { %3411 = vrcp.f32 %v582_v53  ;;  %v609_v29 = vand.u32 2147483648, %v582_v53  ;;  %vm603_vm13 = vweird.f32 %v582_v53  ;;  %v607_v31 = vand.u32 2147483647, %v582_v53 }
 0x1e3   :  { %v610_v38 = vor.u32 1.1754944e-38, %v609_v29  ;;  %vm608_vm15 = vcmp.eq.f32.partialorder %v607_v31, 8.507059e+37 }
 0x1e6   :  { %39 = vperm.xlu1 %3391, %v37_v6  }
 0x1e7   :  { %v3412_v21 = vpop.eup %3411 }
 0x1e8   :  { %v599_v2 = vmul.f32 %v3412_v21, %v582_v53  ;;  %vm604_vm12 = vweird.f32 %v3412_v21  ;;  %v4313_v53 = vadd.f32 %v4174_v37, %v4187_v61 }
 0x1e9   :  { %vm605_vm14 = vmor %vm603_vm13, %vm604_vm12  ;;  %vm42_vm12 = vcmp.gt.f32.partialorder %v4262_v59, 1.0 }
 0x1ea   :  { %v600_v22 = vsub.f32 1.0, %v599_v2 }
 0x1ec   :  { %v601_v23 = vmul.f32 %v3412_v21, %v600_v22 }
 0x1ee   :  { %v602_v25 = vadd.f32 %v3412_v21, %v601_v23 }
 0x1f0   :  { %v606_v32 = vsel %vm605_vm14, %v3412_v21, %v602_v25 }
 0x1f1   :  { %v611_v40 = vsel %vm608_vm15, %v610_v38, %v606_v32 }
 0x1f2   :  { %v630_v18 = vsub.f32 1.0, %v611_v40  ;;  %v636_v58 = vmul.f32 0.0, %v611_v40 }
 0x22d   :  { %v564_v35 = vpop.permute.xlu0 %563 }
 0x22e   :  { %v566_v45 = vmul.f32 %v564_v35, %v561_v19 }
 0x230   :  { %v568_v55 = vadd.f32 %v567_v41, %v566_v45 }
 0x250   :  { %v633_v57 = vpop.permute.xlu1 %632 }
 0x251   :  { %v635_v42 = vmul.f32 %v633_v57, %v630_v18 }
 0x253   :  { %v637_v43 = vadd.f32 %v636_v58, %v635_v42  ;;  %v73_v42 = vsel %vm72_vm7, 1, %v3673_v52 }
 0x255   :  { %v4276_v46 = vsel %vm5384_vm0, %v637_v43, 0.0 }
 0x256   :  { %3292 = vmatmul.msk.f32.vlgmr.msra.gmra.mxu3 %vm480_vm1, %v4276_v46 }
 0x257   :  { %992 = vmatpush.msra.mxu3 %v3939_v0 }
 0x258   :  { %v4282_v49 = vpop.permute.xlu1 %39 }
 0x259   :  { %vm41_vm2 = vcmp.eq.s32.totalorder %v4282_v49, 1  ;;  %993 = vmatpush.msra.mxu3 %v3953_v3 }
 0x25a   :  { %v4288_v60 = vsel %vm41_vm2, %v568_v55, 0.0 }
 0x25b   :  { %641 = vrot.lane.b32.xlu2 %v4288_v60, %s3671_s4  ;;  %994 = vmatpush.msra.mxu3 %v3962_v5 }
 0x25d   :  { %995 = vmatpush.msra.mxu3 %v4028_v20 }
 0x2b5   :  { %v4294_v12 = vpop.permute.xlu2 %641 }
 0x2b6   :  { %3291 = vmatmul.msk.f32.vlgmr.msra.gmra.mxu1 %vm480_vm1, %v4294_v12 }
 0x2b7   :  { %969 = vmatpush.msra.mxu1 %v3973_v7 }
 0x2b9   :  { %970 = vmatpush.msra.mxu1 %v4049_v26 }
 0x2bb   :  { %971 = vmatpush.msra.mxu1 %v4085_v33 }
 0x2bd   :  { %972 = vmatpush.msra.mxu1 %v4097_v36 }
 0x2d9   :  { %v685_v50 = vpop.f32.mrf.mxu3 }
 0x2da   :  { %v772_v1 = vadd.f32 %v685_v50, %v4218_v13  ;;  %729 = vrot.lane.b32.xlu0 %v685_v50, %s3671_s4 }
 0x2dc   :  { %774 = vrot.lane.b32.xlu1 %v772_v1, %s3672_s13 }
 0x333   :  { %v662_v4 = vpop.f32.mrf.mxu1 }
 0x334   :  { %v708_v24 = vadd.f32 %v662_v4, %v4210_v62  ;;  %v688_v21 = vadd.f32 %v662_v4, %v4313_v53 }
 0x336   :  { %710 = vrot.lane.b32.xlu2 %v708_v24, %s3669_s22  ;;  %v3293_v23 = vmul.f32 -1.442695, %v688_v21 }
 0x34c   :  { %v4307_v56 = vpop.permute.xlu0 %729 }
 0x34d   :  { %v732_v6 = vadd.f32 %v4307_v56, %v4204_v51 }
 0x34e   :  { %v775_v37 = vpop.permute.xlu1 %774 }
 0x34f   :  { %v3294_v10 = vmul.f32 -1.442695, %v732_v6 }
 0x351   :  { %3413 = vpow2.f32 %v3294_v10 }
 0x357   :  { %v3414_v14 = vpop.eup %3413 }
 0x358   :  { %v740_v63 = vadd.f32 1.0, %v3414_v14 }
 0x35a   :  { %3415 = vrcp.f32 %v740_v63  ;;  %v753_v29 = vand.u32 2147483648, %v740_v63  ;;  %v751_v32 = vand.u32 2147483647, %v740_v63  ;;  %vm747_vm4 = vweird.f32 %v740_v63 }
 0x35b   :  { %3417 = vpow2.f32 %v3293_v23 }
 0x35c   :  { %v754_v40 = vor.u32 1.1754944e-38, %v753_v29  ;;  %vm752_vm6 = vcmp.eq.f32.partialorder %v751_v32, 8.507059e+37 }
 0x360   :  { %v3416_v2 = vpop.eup %3415 }
 0x361   :  { %v743_v22 = vmul.f32 %v3416_v2, %v740_v63  ;;  %vm748_vm3 = vweird.f32 %v3416_v2  ;;  %v3418_v35 = vpop.eup %3417 }
 0x362   :  { %vm749_vm5 = vmor %vm747_vm4, %vm748_vm3  ;;  %v692_v58 = vadd.f32 1.0, %v3418_v35 }
 0x363   :  { %v744_v25 = vsub.f32 1.0, %v743_v22  ;;  %v43_v22 = vsel %vm42_vm12, 1, %v3673_v52 }
 0x364   :  { %3419 = vrcp.f32 %v692_v58  ;;  %v704_v50 = vand.u32 2147483648, %v692_v58  ;;  %vm698_vm9 = vweird.f32 %v692_v58  ;;  %v702_v1 = vand.u32 2147483647, %v692_v58 }
 0x365   :  { %v745_v31 = vmul.f32 %v3416_v2, %v744_v25 }
 0x366   :  { %v705_v24 = vor.u32 1.1754944e-38, %v704_v50  ;;  %vm703_vm11 = vcmp.eq.f32.partialorder %v702_v1, 8.507059e+37 }
 0x367   :  { %v746_v38 = vadd.f32 %v3416_v2, %v745_v31  ;;  %v733_v31 = vadd.f32 %v4307_v56, %v4240_v47 }
 0x369   :  { %v750_v18 = vsel %vm749_vm5, %v3416_v2, %v746_v38  ;;  %v3295_v32 = vmul.f32 -1.442695, %v733_v31 }
 0x36a   :  { %v755_v57 = vsel %vm752_vm6, %v754_v40, %v750_v18  ;;  %v3420_v19 = vpop.eup %3419 }
 0x36b   :  { %v777_v61 = vmul.f32 %v775_v37, %v755_v57  ;;  %v694_v43 = vmul.f32 %v3420_v19, %v692_v58  ;;  %vm699_vm8 = vweird.f32 %v3420_v19 }
 0x36c   :  { %vm700_vm10 = vmor %vm698_vm9, %vm699_vm8 }
 0x36d   :  { %779 = vrot.lane.b32.xlu0 %v777_v61, %s3669_s22  ;;  %v695_v45 = vsub.f32 1.0, %v694_v43 }
 0x36f   :  { %v696_v41 = vmul.f32 %v3420_v19, %v695_v45 }
 0x371   :  { %v697_v55 = vadd.f32 %v3420_v19, %v696_v41 }
 0x373   :  { %v701_v4 = vsel %vm700_vm10, %v3420_v19, %v697_v55  ;;  %vm66_vm10 = vcmp.gt.f32.partialorder %v4262_v59, 5.0 }
 0x374   :  { %v706_v10 = vsel %vm703_vm11, %v705_v24, %v701_v4  ;;  %vm48_vm11 = vcmp.gt.f32.partialorder %v4262_v59, 2.0 }
 0x375   :  { %75 = vperm.xlu0 %3392, %v73_v42   ;;  %v720_v24 = vsub.f32 1.0, %v706_v10 }
 0x390   :  { %v711_v6 = vpop.permute.xlu2 %710 }
 0x391   :  { %v713_v14 = vmul.f32 %v711_v6, %v706_v10 }
 0x393   :  { %715 = vrot.lane.b32.xlu1 %v713_v14, %s3669_s22 }
 0x3df   :  { %v780_v63 = vpop.permute.xlu0 %779 }
 0x3e0   :  { %v782_v21 = vadd.f32 %v780_v63, %v4240_v47  ;;  %v726_v63 = vmul.f32 %v706_v10, %v4288_v60 }
 0x3e2   :  { %3421 = vtanh.f32 %v782_v21 }
 0x3e7   :  { %v4328_v45 = vpop.permute.xlu0 %75 }
 0x3e8   :  { %v3422_v2 = vpop.eup %3421  ;;  %vm77_vm4 = vcmp.eq.s32.totalorder %v4328_v45, 1 }
 0x3e9   :  { %786 = vrot.lane.b32.xlu2 %v3422_v2, %s3671_s4 }
 0x3f1   :  { %45 = vperm.xlu2 %3390, %v43_v22  }
 0x405   :  { %v716_v23 = vpop.permute.xlu1 %715 }
 0x406   :  { %v718_v25 = vadd.f32 %v716_v23, %v4313_v53 }
 0x408   :  { %3423 = vtanh.f32 %v718_v25 }
 0x409   :  { %3425 = vpow2.f32 %v3295_v32 }
 0x40e   :  { %v3424_v29 = vpop.eup %3423 }
 0x40f   :  { %722 = vrot.lane.b32.xlu1 %v3424_v29, %s3671_s4  ;;  %v3426_v38 = vpop.eup %3425 }
 0x410   :  { %v741_v40 = vadd.f32 1.0, %v3426_v38 }
 0x412   :  { %3427 = vrcp.f32 %v741_v40  ;;  %v768_v58 = vand.u32 2147483648, %v741_v40  ;;  %vm762_vm14 = vweird.f32 %v741_v40  ;;  %v766_v42 = vand.u32 2147483647, %v741_v40 }
 0x414   :  { %v769_v43 = vor.u32 1.1754944e-38, %v768_v58  ;;  %vm767_vm3 = vcmp.eq.f32.partialorder %v766_v42, 8.507059e+37 }
 0x418   :  { %v3428_v18 = vpop.eup %3427 }
 0x419   :  { %v758_v57 = vmul.f32 %v3428_v18, %v741_v40  ;;  %vm763_vm13 = vweird.f32 %v3428_v18 }
 0x41a   :  { %vm764_vm15 = vmor %vm762_vm14, %vm763_vm13 }
 0x41b   :  { %v759_v37 = vsub.f32 1.0, %v758_v57 }
 0x41d   :  { %v760_v61 = vmul.f32 %v3428_v18, %v759_v37 }
 0x41f   :  { %v761_v35 = vadd.f32 %v3428_v18, %v760_v61  ;;  %v67_v61 = vsel %vm66_vm10, 1, %v3673_v52 }
 0x421   :  { %v765_v19 = vsel %vm764_vm15, %v3428_v18, %v761_v35 }
 0x422   :  { %v770_v47 = vsel %vm767_vm3, %v769_v43, %v765_v19 }
 0x423   :  { %v784_v56 = vsub.f32 1.0, %v770_v47  ;;  %v790_v55 = vmul.f32 %v770_v47, %v4276_v46  ;;  %v49_v47 = vsel %vm48_vm11, 1, %v3673_v52 }
 0x443   :  { %v787_v41 = vpop.permute.xlu2 %786 }
 0x444   :  { %v789_v50 = vmul.f32 %v787_v41, %v784_v56 }
 0x446   :  { %v4332_v1 = vadd.f32 %v790_v55, %v789_v50 }
 0x448   :  { %v4338_v4 = vsel %vm77_vm4, %v4332_v1, %v4276_v46 }
 0x449   :  { %3297 = vmatmul.msk.f32.vlgmr.msrb.gmra.mxu3 %vm480_vm1, %v4338_v4 }
 0x44a   :  { %1148 = vmatpush.msrb.mxu3 %v3939_v0 }
 0x44b   :  { %v4346_v14 = vpop.permute.xlu2 %45 }
 0x44c   :  { %1149 = vmatpush.msrb.mxu3 %v3953_v3  ;;  %vm47_vm5 = vcmp.eq.s32.totalorder %v4346_v14, 1 }
 0x44e   :  { %1150 = vmatpush.msrb.mxu3 %v3962_v5 }
 0x450   :  { %1151 = vmatpush.msrb.mxu3 %v4028_v20 }
 0x481   :  { %v723_v6 = vpop.permute.xlu1 %722 }
 0x482   :  { %v725_v21 = vmul.f32 %v723_v6, %v720_v24 }
 0x484   :  { %v4349_v2 = vadd.f32 %v726_v63, %v725_v21 }
 0x486   :  { %v4356_v0 = vsel %vm47_vm5, %v4349_v2, %v4288_v60 }
 0x487   :  { %797 = vrot.lane.b32.xlu1 %v4356_v0, %s3671_s4 }
 0x4cc   :  { %v841_v3 = vpop.f32.mrf.mxu3 }
 0x4cd   :  { %v928_v5 = vadd.f32 %v841_v3, %v4218_v13  ;;  %885 = vrot.lane.b32.xlu2 %v841_v3, %s3671_s4 }
 0x4cf   :  { %930 = vrot.lane.b32.xlu0 %v928_v5, %s3672_s13 }
 0x4f9   :  { %v798_v20 = vpop.permute.xlu1 %797 }
 0x4fa   :  { %3296 = vmatmul.msk.f32.vlgmr.msrb.gmra.mxu1 %vm480_vm1, %v798_v20 }
 0x4fb   :  { %1125 = vmatpush.msrb.mxu1 %v3973_v7 }
 0x4fd   :  { %1126 = vmatpush.msrb.mxu1 %v4049_v26 }
 0x4ff   :  { %1127 = vmatpush.msrb.mxu1 %v4085_v33 }
 0x501   :  { %1128 = vmatpush.msrb.mxu1 %v4097_v36 }
 0x527   :  { %v886_v60 = vpop.permute.xlu2 %885 }
 0x528   :  { %v888_v10 = vadd.f32 %v886_v60, %v4201_v39 }
 0x52a   :  { %v3299_v22 = vmul.f32 -1.442695, %v888_v10  ;;  %v889_v10 = vadd.f32 %v886_v60, %v4234_v44 }
 0x52c   :  { %3429 = vpow2.f32 %v3299_v22 }
 0x532   :  { %v3430_v23 = vpop.eup %3429 }
 0x533   :  { %v896_v25 = vadd.f32 1.0, %v3430_v23 }
 0x535   :  { %3431 = vrcp.f32 %v896_v25  ;;  %v909_v38 = vand.u32 2147483648, %v896_v25  ;;  %v907_v7 = vand.u32 2147483647, %v896_v25  ;;  %vm903_vm7 = vweird.f32 %v896_v25 }
 0x537   :  { %v910_v33 = vor.u32 1.1754944e-38, %v909_v38  ;;  %vm908_vm9 = vcmp.eq.f32.partialorder %v907_v7, 8.507059e+37 }
 0x53b   :  { %v3432_v29 = vpop.eup %3431 }
 0x53c   :  { %v899_v31 = vmul.f32 %v3432_v29, %v896_v25  ;;  %vm904_vm6 = vweird.f32 %v3432_v29 }
 0x53d   :  { %vm905_vm8 = vmor %vm903_vm7, %vm904_vm6 }
 0x53e   :  { %v900_v32 = vsub.f32 1.0, %v899_v31  ;;  %v3300_v31 = vmul.f32 -1.442695, %v889_v10 }
 0x540   :  { %v901_v40 = vmul.f32 %v3432_v29, %v900_v32 }
 0x541   :  { %v931_v57 = vpop.permute.xlu0 %930 }
 0x542   :  { %v902_v26 = vadd.f32 %v3432_v29, %v901_v40 }
 0x544   :  { %v906_v36 = vsel %vm905_vm8, %v3432_v29, %v902_v26 }
 0x545   :  { %v911_v18 = vsel %vm908_vm9, %v910_v33, %v906_v36 }
 0x546   :  { %v933_v37 = vmul.f32 %v931_v57, %v911_v18 }
 0x548   :  { %935 = vrot.lane.b32.xlu2 %v933_v37, %s3669_s22 }
 0x550   :  { %69 = vperm.xlu2 %3390, %v67_v61  }
 0x577   :  { %v818_v35 = vpop.f32.mrf.mxu1 }
 0x578   :  { %v864_v58 = vadd.f32 %v818_v35, %v4210_v62  ;;  %v844_v56 = vadd.f32 %v818_v35, %v4190_v9 }
 0x57a   :  { %866 = vrot.lane.b32.xlu1 %v864_v58, %s3669_s22  ;;  %v3298_v41 = vmul.f32 -1.442695, %v844_v56 }
 0x5a2   :  { %v936_v42 = vpop.permute.xlu2 %935 }
 0x5a3   :  { %v938_v19 = vadd.f32 %v936_v42, %v4234_v44 }
 0x5a5   :  { %3433 = vtanh.f32 %v938_v19 }
 0x5a6   :  { %3435 = vpow2.f32 %v3298_v41  ;;  %v4398_v41 = vld [vmem:[%s5376_s3 + $0x38] sm:$0xff] }
 0x5aa   :  { %v4381_v42 = vpop.permute.xlu2 %69 }
 0x5ab   :  { %v3434_v43 = vpop.eup %3433  ;;  %vm71_vm9 = vcmp.eq.s32.totalorder %v4381_v42, 1 }
 0x5ac   :  { %942 = vrot.lane.b32.xlu1 %v3434_v43, %s3671_s4  ;;  %v3436_v55 = vpop.eup %3435 }
 0x5ad   :  { %v848_v50 = vadd.f32 1.0, %v3436_v55  ;;  %v4404_v55 = vld [vmem:[%s5376_s3 + $0x30] sm:$0xff] }
 0x5af   :  { %3437 = vrcp.f32 %v848_v50  ;;  %v860_v5 = vand.u32 2147483648, %v848_v50  ;;  %vm854_vm13 = vweird.f32 %v848_v50  ;;  %v858_v20 = vand.u32 2147483647, %v848_v50 }
 0x5b0   :  { %3439 = vpow2.f32 %v3300_v31 }
 0x5b1   :  { %v861_v23 = vor.u32 1.1754944e-38, %v860_v5  ;;  %vm859_vm15 = vcmp.eq.f32.partialorder %v858_v20, 8.507059e+37 }
 0x5b4   :  { %51 = vperm.xlu1 %3391, %v49_v47  }
 0x5b5   :  { %v3438_v24 = vpop.eup %3437 }
 0x5b6   :  { %v850_v6 = vmul.f32 %v3438_v24, %v848_v50  ;;  %vm855_vm12 = vweird.f32 %v3438_v24  ;;  %v3440_v38 = vpop.eup %3439  ;;  %v4416_v50 = vld [vmem:[%s5376_s3 + $0x20] sm:$0xff] }
 0x5b7   :  { %vm856_vm14 = vmor %vm854_vm13, %vm855_vm12  ;;  %v897_v40 = vadd.f32 1.0, %v3440_v38 }
 0x5b8   :  { %v851_v63 = vsub.f32 1.0, %v850_v6 }
 0x5b9   :  { %3441 = vrcp.f32 %v897_v40  ;;  %v924_v44 = vand.u32 2147483648, %v897_v40  ;;  %vm918_vm6 = vweird.f32 %v897_v40  ;;  %v922_v60 = vand.u32 2147483647, %v897_v40 }
 0x5ba   :  { %v852_v21 = vmul.f32 %v3438_v24, %v851_v63 }
 0x5bb   :  { %v925_v37 = vor.u32 1.1754944e-38, %v924_v44  ;;  %vm923_vm8 = vcmp.eq.f32.partialorder %v922_v60, 8.507059e+37 }
 0x5bc   :  { %v853_v3 = vadd.f32 %v3438_v24, %v852_v21 }
 0x5be   :  { %v857_v22 = vsel %vm856_vm14, %v3438_v24, %v853_v3 }
 0x5bf   :  { %v862_v29 = vsel %vm859_vm15, %v861_v23, %v857_v22  ;;  %v3442_v7 = vpop.eup %3441  ;;  %vm60_vm15 = vcmp.gt.f32.partialorder %v4262_v59, 4.0 }
 0x5c0   :  { %v914_v26 = vmul.f32 %v3442_v7, %v897_v40  ;;  %vm919_vm3 = vweird.f32 %v3442_v7  ;;  %v876_v5 = vsub.f32 1.0, %v862_v29  ;;  %v882_v22 = vmul.f32 %v862_v29, %v4356_v0 }
 0x5c1   :  { %vm920_vm7 = vmor %vm918_vm6, %vm919_vm3  ;;  %vm54_vm3 = vcmp.gt.f32.partialorder %v4262_v59, 3.0 }
 0x5c2   :  { %v915_v33 = vsub.f32 1.0, %v914_v26 }
 0x5c4   :  { %v916_v36 = vmul.f32 %v3442_v7, %v915_v33 }
 0x5c6   :  { %v917_v18 = vadd.f32 %v3442_v7, %v916_v36 }
 0x5c8   :  { %v921_v57 = vsel %vm920_vm7, %v3442_v7, %v917_v18 }
 0x5c9   :  { %v926_v61 = vsel %vm923_vm8, %v925_v37, %v921_v57 }
 0x5ca   :  { %v940_v35 = vsub.f32 1.0, %v926_v61  ;;  %v946_v19 = vmul.f32 %v926_v61, %v4338_v4 }
 0x5ec   :  { %v867_v25 = vpop.permute.xlu1 %866 }
 0x5ed   :  { %v869_v32 = vmul.f32 %v867_v25, %v862_v29 }
 0x5ef   :  { %871 = vrot.lane.b32.xlu0 %v869_v32, %s3669_s22 }
 0x61e   :  { %v943_v58 = vpop.permute.xlu1 %942 }
 0x61f   :  { %v945_v43 = vmul.f32 %v943_v58, %v940_v35 }
 0x621   :  { %v4384_v47 = vadd.f32 %v946_v19, %v945_v43  ;;  %v4445_v43 = vld [vmem:[%s5376_s3 + $0x18] sm:$0xff] }
 0x623   :  { %v4391_v56 = vsel %vm71_vm9, %v4384_v47, %v4338_v4  ;;  %v4410_v4 = vld [vmem:[%s5376_s3 + $0x28] sm:$0xff] }
 0x624   :  { %3302 = vmatmul.msk.f32.vlgmr.msra.gmra.mxu3 %vm480_vm1, %v4391_v56 }
 0x625   :  { %1304 = vmatpush.msra.mxu3 %v4398_v41 }
 0x626   :  { %v4424_v10 = vpop.permute.xlu1 %51 }
 0x627   :  { %1305 = vmatpush.msra.mxu3 %v4404_v55  ;;  %vm53_vm10 = vcmp.eq.s32.totalorder %v4424_v10, 1 }
 0x629   :  { %1306 = vmatpush.msra.mxu3 %v4410_v4 }
 0x62b   :  { %1307 = vmatpush.msra.mxu3 %v4416_v50 }
 0x661   :  { %v872_v24 = vpop.permute.xlu0 %871 }
 0x662   :  { %v874_v6 = vadd.f32 %v872_v24, %v4190_v9  ;;  %v61_v24 = vsel %vm60_vm15, 1, %v3673_v52 }
 0x664   :  { %3443 = vtanh.f32 %v874_v6  ;;  %v4452_v6 = vld [vmem:[%s5376_s3 + $0x10] sm:$0xff] }
 0x66a   :  { %v3444_v63 = vpop.eup %3443 }
 0x66b   :  { %878 = vrot.lane.b32.xlu0 %v3444_v63, %s3671_s4  ;;  %v4458_v63 = vld [vmem:[%s5376_s3 + $0x8] sm:$0xff] }
 0x6a7   :  { %v997_v21 = vpop.f32.mrf.mxu3 }
 0x6a8   :  { %v1084_v3 = vadd.f32 %v997_v21, %v4218_v13  ;;  %1041 = vrot.lane.b32.xlu0 %v997_v21, %s3671_s4  ;;  %v4464_v21 = vld [vmem:[%s5376_s3] sm:$0xff] }
 0x6aa   :  { %1086 = vrot.lane.b32.xlu1 %v1084_v3, %s3672_s13 }
 0x6dd   :  { %v879_v20 = vpop.permute.xlu0 %878 }
 0x6de   :  { %v881_v23 = vmul.f32 %v879_v20, %v876_v5 }
 0x6e0   :  { %v4427_v25 = vadd.f32 %v882_v22, %v881_v23 }
 0x6e2   :  { %v4434_v31 = vsel %vm53_vm10, %v4427_v25, %v4356_v0 }
 0x6e3   :  { %953 = vrot.lane.b32.xlu2 %v4434_v31, %s3671_s4 }
 0x71a   :  { %v1042_v32 = vpop.permute.xlu0 %1041 }
 0x71b   :  { %v1044_v38 = vadd.f32 %v1042_v32, %v4196_v28 }
 0x71c   :  { %v1087_v61 = vpop.permute.xlu1 %1086 }
 0x71d   :  { %v3304_v40 = vmul.f32 -1.442695, %v1044_v38  ;;  %v55_v38 = vsel %vm54_vm3, 1, %v3673_v52 }
 0x71f   :  { %3445 = vpow2.f32 %v3304_v40 }
 0x725   :  { %v3446_v29 = vpop.eup %3445 }
 0x726   :  { %v1052_v7 = vadd.f32 1.0, %v3446_v29  ;;  %v1045_v29 = vadd.f32 %v1042_v32, %v4229_v34 }
 0x728   :  { %3447 = vrcp.f32 %v1052_v7  ;;  %v1065_v18 = vand.u32 2147483648, %v1052_v7  ;;  %v1063_v60 = vand.u32 2147483647, %v1052_v7  ;;  %vm1059_vm12 = vweird.f32 %v1052_v7 }
 0x72a   :  { %v1066_v57 = vor.u32 1.1754944e-38, %v1065_v18  ;;  %vm1064_vm14 = vcmp.eq.f32.partialorder %v1063_v60, 8.507059e+37 }
 0x72e   :  { %v3448_v26 = vpop.eup %3447 }
 0x72f   :  { %v1055_v33 = vmul.f32 %v3448_v26, %v1052_v7  ;;  %vm1060_vm11 = vweird.f32 %v3448_v26 }
 0x730   :  { %vm1061_vm13 = vmor %vm1059_vm12, %vm1060_vm11 }
 0x731   :  { %v1056_v36 = vsub.f32 1.0, %v1055_v33 }
 0x733   :  { %v1057_v44 = vmul.f32 %v3448_v26, %v1056_v36 }
 0x735   :  { %v1058_v0 = vadd.f32 %v3448_v26, %v1057_v44 }
 0x737   :  { %v1062_v37 = vsel %vm1061_vm13, %v3448_v26, %v1058_v0  ;;  %v3305_v26 = vmul.f32 -1.442695, %v1045_v29 }
 0x738   :  { %v1067_v35 = vsel %vm1064_vm14, %v1066_v57, %v1062_v37 }
 0x739   :  { %v1089_v58 = vmul.f32 %v1087_v61, %v1067_v35 }
 0x73b   :  { %1091 = vrot.lane.b32.xlu0 %v1089_v58, %s3669_s22 }
 0x73d   :  { %v954_v19 = vpop.permute.xlu2 %953 }
 0x73e   :  { %3301 = vmatmul.msk.f32.vlgmr.msra.gmra.mxu1 %vm480_vm1, %v954_v19 }
 0x73f   :  { %1281 = vmatpush.msra.mxu1 %v4445_v43 }
 0x741   :  { %1282 = vmatpush.msra.mxu1 %v4452_v6 }
 0x743   :  { %63 = vperm.xlu0 %3392, %v61_v24   ;;  %1283 = vmatpush.msra.mxu1 %v4458_v63 }
 0x745   :  { %1284 = vmatpush.msra.mxu1 %v4464_v21 }
 0x7ad   :  { %v1092_v3 = vpop.permute.xlu0 %1091 }
 0x7ae   :  { %v1094_v5 = vadd.f32 %v1092_v3, %v4229_v34 }
 0x7b0   :  { %3449 = vtanh.f32 %v1094_v5 }
 0x7b6   :  { %v3450_v23 = vpop.eup %3449 }
 0x7bb   :  { %v974_v20 = vpop.f32.mrf.mxu1 }
 0x7bc   :  { %v1020_v22 = vadd.f32 %v974_v20, %v4210_v62  ;;  %v1000_v40 = vadd.f32 %v974_v20, %v4193_v17 }
 0x7be   :  { %1022 = vrot.lane.b32.xlu2 %v1020_v22, %s3669_s22  ;;  %v3303_v7 = vmul.f32 -1.442695, %v1000_v40 }
 0x7c0   :  { %3451 = vpow2.f32 %v3303_v7 }
 0x7c1   :  { %3453 = vpow2.f32 %v3305_v26 }
 0x7c6   :  { %1098 = vrot.lane.b32.xlu2 %v3450_v23, %s3671_s4  ;;  %v3452_v33 = vpop.eup %3451 }
 0x7c7   :  { %v1004_v36 = vadd.f32 1.0, %v3452_v33  ;;  %v3454_v18 = vpop.eup %3453 }
 0x7c8   :  { %v1053_v44 = vadd.f32 1.0, %v3454_v18 }
 0x7c9   :  { %3455 = vrcp.f32 %v1004_v36  ;;  %v1016_v32 = vand.u32 2147483648, %v1004_v36  ;;  %vm1010_vm7 = vweird.f32 %v1004_v36  ;;  %v1014_v58 = vand.u32 2147483647, %v1004_v36 }
 0x7ca   :  { %3457 = vrcp.f32 %v1053_v44  ;;  %v1080_v5 = vand.u32 2147483648, %v1053_v44  ;;  %vm1074_vm13 = vweird.f32 %v1053_v44  ;;  %v1078_v20 = vand.u32 2147483647, %v1053_v44 }
 0x7cb   :  { %v1017_v3 = vor.u32 1.1754944e-38, %v1016_v32  ;;  %vm1015_vm12 = vcmp.eq.f32.partialorder %v1014_v58, 8.507059e+37 }
 0x7cc   :  { %v1081_v29 = vor.u32 1.1754944e-38, %v1080_v5  ;;  %vm1079_vm15 = vcmp.eq.f32.partialorder %v1078_v20, 8.507059e+37 }
 0x7ce   :  { %57 = vperm.xlu2 %3390, %v55_v38  }
 0x7cf   :  { %v3456_v60 = vpop.eup %3455 }
 0x7d0   :  { %v1006_v0 = vmul.f32 %v3456_v60, %v1004_v36  ;;  %v3458_v59 = vpop.eup %3457  ;;  %vm1011_vm6 = vweird.f32 %v3456_v60  ;;  %v4476_v36 = vpop.permute.xlu0 %63 }
 0x7d1   :  { %v1070_v52 = vmul.f32 %v3458_v59, %v1053_v44  ;;  %vm1012_vm8 = vmor %vm1010_vm7, %vm1011_vm6  ;;  %vm1075_vm11 = vweird.f32 %v3458_v59  ;;  %vm65_vm3 = vcmp.eq.s32.totalorder %v4476_v36, 1 }
 0x7d2   :  { %v1007_v57 = vsub.f32 1.0, %v1006_v0  ;;  %vm1076_vm14 = vmor %vm1074_vm13, %vm1075_vm11 }
 0x7d3   :  { %v1071_v61 = vsub.f32 1.0, %v1070_v52 }
 0x7d4   :  { %v1008_v37 = vmul.f32 %v3456_v60, %v1007_v57 }
 0x7d5   :  { %v1072_v34 = vmul.f32 %v3458_v59, %v1071_v61 }
 0x7d6   :  { %v1009_v35 = vadd.f32 %v3456_v60, %v1008_v37 }
 0x7d7   :  { %v1073_v24 = vadd.f32 %v3458_v59, %v1072_v34 }
 0x7d8   :  { %v1013_v19 = vsel %vm1012_vm8, %v3456_v60, %v1009_v35 }
 0x7d9   :  { %v1018_v23 = vsel %vm1015_vm12, %v1017_v3, %v1013_v19  ;;  %v1077_v40 = vsel %vm1076_vm14, %v3458_v59, %v1073_v24 }
 0x7da   :  { %v1082_v7 = vsel %vm1079_vm15, %v1081_v29, %v1077_v40 }
 0x7db   :  { %v1096_v26 = vsub.f32 1.0, %v1082_v7  ;;  %v1102_v18 = vmul.f32 %v1082_v7, %v4391_v56 }
 0x818   :  { %v1023_v22 = vpop.permute.xlu2 %1022 }
 0x819   :  { %v1025_v38 = vmul.f32 %v1023_v22, %v1018_v23 }
 0x81b   :  { %1027 = vrot.lane.b32.xlu1 %v1025_v38, %s3669_s22 }
 0x820   :  { %v1099_v33 = vpop.permute.xlu2 %1098 }
 0x821   :  { %v1101_v60 = vmul.f32 %v1099_v33, %v1096_v26 }
 0x823   :  { %v4479_v0 = vadd.f32 %v1102_v18, %v1101_v60 }
 0x825   :  { %v4486_v44 = vsel %vm65_vm3, %v4479_v0, %v4391_v56 }
 0x826   :  { %3307 = vmatmul.msk.f32.vlgmr.msrb.gmra.mxu3 %vm480_vm1, %v4486_v44 }
 0x827   :  { %1593 = vmatpush.msrb.mxu3 %v4445_v43  ;;  %v1032_v43 = vsub.f32 1.0, %v1018_v23 }
 0x828   :  { %v4499_v61 = vpop.permute.xlu2 %57 }
 0x829   :  { %1594 = vmatpush.msrb.mxu3 %v4452_v6  ;;  %vm59_vm6 = vcmp.eq.s32.totalorder %v4499_v61, 1 }
 0x82b   :  { %1595 = vmatpush.msrb.mxu3 %v4458_v63  ;;  %v1038_v63 = vmul.f32 %v1018_v23, %v4434_v31 }
 0x82d   :  { %1596 = vmatpush.msrb.mxu3 %v4464_v21 }
 0x88d   :  { %v1028_v59 = vpop.permute.xlu1 %1027 }
 0x88e   :  { %v1030_v57 = vadd.f32 %v1028_v59, %v4193_v17 }
 0x890   :  { %3459 = vtanh.f32 %v1030_v57 }
 0x896   :  { %v3460_v52 = vpop.eup %3459 }
 0x897   :  { %1034 = vrot.lane.b32.xlu1 %v3460_v52, %s3671_s4 }
 0x8a9   :  { %v1153_v56 = vpop.f32.mrf.mxu3 }
 0x8aa   :  { %v1240_v37 = vadd.f32 %v1153_v56, %v4218_v13  ;;  %1197 = vrot.lane.b32.xlu1 %v1153_v56, %s3671_s4 }
 0x8ac   :  { %1242 = vrot.lane.b32.xlu2 %v1240_v37, %s3672_s13 }
 0x906   :  { %v1243_v26 = vpop.permute.xlu2 %1242 }
 0x909   :  { %v1035_v6 = vpop.permute.xlu1 %1034 }
 0x90a   :  { %v1037_v21 = vmul.f32 %v1035_v6, %v1032_v43 }
 0x90c   :  { %v4502_v35 = vadd.f32 %v1038_v63, %v1037_v21 }
 0x90e   :  { %v4509_v34 = vsel %vm59_vm6, %v4502_v35, %v4434_v31 }
 0x90f   :  { %1109 = vrot.lane.b32.xlu0 %v4509_v34, %s3671_s4 }
 0x91c   :  { %v1198_v32 = vpop.permute.xlu1 %1197 }
 0x91d   :  { %v1200_v58 = vadd.f32 %v1198_v32, %v4193_v17  ;;  %v1201_v52 = vadd.f32 %v1198_v32, %v4227_v27 }
 0x91f   :  { %v3309_v19 = vmul.f32 -1.442695, %v1200_v58  ;;  %v3310_v56 = vmul.f32 -1.442695, %v1201_v52 }
 0x921   :  { %3461 = vpow2.f32 %v3309_v19 }
 0x927   :  { %v3462_v24 = vpop.eup %3461 }
 0x928   :  { %v1208_v3 = vadd.f32 1.0, %v3462_v24 }
 0x92a   :  { %3463 = vrcp.f32 %v1208_v3  ;;  %v1221_v23 = vand.u32 2147483648, %v1208_v3  ;;  %v1219_v40 = vand.u32 2147483647, %v1208_v3  ;;  %vm1215_vm8 = vweird.f32 %v1208_v3 }
 0x92c   :  { %v1222_v29 = vor.u32 1.1754944e-38, %v1221_v23  ;;  %vm1220_vm12 = vcmp.eq.f32.partialorder %v1219_v40, 8.507059e+37 }
 0x930   :  { %v3464_v5 = vpop.eup %3463 }
 0x931   :  { %v1211_v20 = vmul.f32 %v3464_v5, %v1208_v3  ;;  %vm1216_vm7 = vweird.f32 %v3464_v5 }
 0x932   :  { %vm1217_vm11 = vmor %vm1215_vm8, %vm1216_vm7 }
 0x933   :  { %v1212_v22 = vsub.f32 1.0, %v1211_v20 }
 0x935   :  { %v1213_v38 = vmul.f32 %v3464_v5, %v1212_v22 }
 0x937   :  { %v1214_v31 = vadd.f32 %v3464_v5, %v1213_v38 }
 0x939   :  { %v1218_v7 = vsel %vm1217_vm11, %v3464_v5, %v1214_v31 }
 0x93a   :  { %v1223_v17 = vsel %vm1220_vm12, %v1222_v29, %v1218_v7 }
 0x93b   :  { %v1245_v33 = vmul.f32 %v1243_v26, %v1223_v17 }
 0x93d   :  { %1247 = vrot.lane.b32.xlu0 %v1245_v33, %s3669_s22 }
 0x981   :  { %v1110_v18 = vpop.permute.xlu0 %1109 }
 0x982   :  { %3306 = vmatmul.msk.f32.vlgmr.msrb.gmra.mxu1 %vm480_vm1, %v1110_v18 }
 0x983   :  { %1460 = vmatpush.msrb.mxu1 %v4398_v41 }
 0x985   :  { %1461 = vmatpush.msrb.mxu1 %v4404_v55 }
 0x987   :  { %1462 = vmatpush.msrb.mxu1 %v4410_v4 }
 0x989   :  { %1463 = vmatpush.msrb.mxu1 %v4416_v50 }
 0x9af   :  { %v1248_v60 = vpop.permute.xlu0 %1247 }
 0x9b0   :  { %v1250_v59 = vadd.f32 %v1248_v60, %v4227_v27 }
 0x9b2   :  { %3465 = vtanh.f32 %v1250_v59 }
 0x9b3   :  { %3467 = vpow2.f32 %v3310_v56 }
 0x9b8   :  { %v3466_v57 = vpop.eup %3465 }
 0x9b9   :  { %1254 = vrot.lane.b32.xlu0 %v3466_v57, %s3671_s4  ;;  %v3468_v55 = vpop.eup %3467 }
 0x9ba   :  { %v1209_v4 = vadd.f32 1.0, %v3468_v55 }
 0x9bc   :  { %3469 = vrcp.f32 %v1209_v4  ;;  %v1236_v58 = vand.u32 2147483648, %v1209_v4  ;;  %vm1230_vm14 = vweird.f32 %v1209_v4  ;;  %v1234_v19 = vand.u32 2147483647, %v1209_v4 }
 0x9be   :  { %v1237_v32 = vor.u32 1.1754944e-38, %v1236_v58  ;;  %vm1235_vm7 = vcmp.eq.f32.partialorder %v1234_v19, 8.507059e+37 }
 0x9c2   :  { %v3470_v50 = vpop.eup %3469 }
 0x9c3   :  { %v1226_v43 = vmul.f32 %v3470_v50, %v1209_v4  ;;  %vm1231_vm13 = vweird.f32 %v3470_v50 }
 0x9c4   :  { %vm1232_vm15 = vmor %vm1230_vm14, %vm1231_vm13 }
 0x9c5   :  { %v1227_v6 = vsub.f32 1.0, %v1226_v43 }
 0x9c7   :  { %v1228_v63 = vmul.f32 %v3470_v50, %v1227_v6 }
 0x9c9   :  { %v1229_v21 = vadd.f32 %v3470_v50, %v1228_v63 }
 0x9cb   :  { %v1233_v27 = vsel %vm1232_vm15, %v3470_v50, %v1229_v21 }
 0x9cc   :  { %v1238_v24 = vsel %vm1235_vm7, %v1237_v32, %v1233_v27 }
 0x9cd   :  { %v1252_v3 = vsub.f32 1.0, %v1238_v24  ;;  %v1258_v20 = vmul.f32 %v1238_v24, %v4486_v44 }
 0x9ff   :  { %v1130_v37 = vpop.f32.mrf.mxu1 }
 0xa00   :  { %v1176_v41 = vadd.f32 %v1130_v37, %v4210_v62  ;;  %v1156_v40 = vadd.f32 %v1130_v37, %v4196_v28 }
 0xa02   :  { %1178 = vrot.lane.b32.xlu1 %v1176_v41, %s3669_s22  ;;  %v3308_v31 = vmul.f32 -1.442695, %v1156_v40 }
 0xa04   :  { %3471 = vpow2.f32 %v3308_v31 }
 0xa0a   :  { %v3472_v29 = vpop.eup %3471 }
 0xa0b   :  { %v1160_v7 = vadd.f32 1.0, %v3472_v29 }
 0xa0d   :  { %3473 = vrcp.f32 %v1160_v7  ;;  %v1172_v59 = vand.u32 2147483648, %v1160_v7  ;;  %vm1166_vm11 = vweird.f32 %v1160_v7 }
 0xa0f   :  { %v1173_v52 = vor.u32 1.1754944e-38, %v1172_v59 }
 0xa13   :  { %v3474_v26 = vpop.eup %3473 }
 0xa14   :  { %v1162_v17 = vmul.f32 %v3474_v26, %v1160_v7  ;;  %vm1167_vm8 = vweird.f32 %v3474_v26 }
 0xa15   :  { %vm1168_vm12 = vmor %vm1166_vm11, %vm1167_vm8 }
 0xa16   :  { %v1163_v33 = vsub.f32 1.0, %v1162_v17 }
 0xa18   :  { %v1164_v18 = vmul.f32 %v3474_v26, %v1163_v33 }
 0xa1a   :  { %v1165_v60 = vadd.f32 %v3474_v26, %v1164_v18 }
 0xa1c   :  { %v1169_v57 = vsel %vm1168_vm12, %v3474_v26, %v1165_v60 }
 0xa2b   :  { %v1255_v5 = vpop.permute.xlu0 %1254 }
 0xa2c   :  { %v1257_v22 = vmul.f32 %v1255_v5, %v1252_v3 }
 0xa2e   :  { %v4526_v23 = vadd.f32 %v1258_v20, %v1257_v22 }
 0xa30   :  { %v4532_v38 = vsel %vm59_vm6, %v4526_v23, %v4486_v44  ;;  %v1170_v44 = vand.u32 2147483647, %v1160_v7 }
 0xa31   :  { %3312 = vmatmul.msk.f32.vlgmr.msra.gmra.mxu3 %vm480_vm1, %v4532_v38 }
 0xa32   :  { %vm1171_vm13 = vcmp.eq.f32.partialorder %v1170_v44, 8.507059e+37 }
 0xa33   :  { %v1174_v37 = vsel %vm1171_vm13, %v1173_v52, %v1169_v57 }
 0xa34   :  { %v1194_v22 = vmul.f32 %v1174_v37, %v4509_v34 }
 0xa74   :  { %v1179_v56 = vpop.permute.xlu1 %1178 }
 0xa75   :  { %v1181_v41 = vmul.f32 %v1179_v56, %v1174_v37 }
 0xa77   :  { %1183 = vrot.lane.b32.xlu2 %v1181_v41, %s3669_s22 }
 0xab4   :  { %v1309_v55 = vpop.f32.mrf.mxu3 }
 0xab5   :  { %1353 = vrot.lane.b32.xlu0 %v1309_v55, %s3671_s4  ;;  %v1396_v6 = vadd.f32 %v1309_v55, %v4218_v13 }
 0xad1   :  { %v1184_v4 = vpop.permute.xlu2 %1183 }
 0xad2   :  { %v1186_v50 = vadd.f32 %v1184_v4, %v4196_v28  ;;  %v1188_v28 = vsub.f32 1.0, %v1174_v37 }
 0xad4   :  { %3475 = vtanh.f32 %v1186_v50 }
 0xada   :  { %v3476_v43 = vpop.eup %3475 }
 0xadb   :  { %1190 = vrot.lane.b32.xlu1 %v3476_v43, %s3671_s4 }
 0xae3   :  { %1398 = vrot.lane.b32.xlu1 %v1396_v6, %s3672_s13 }
 0xb27   :  { %v1354_v63 = vpop.permute.xlu0 %1353 }
 0xb28   :  { %v1356_v21 = vadd.f32 %v1354_v63, %v4190_v9  ;;  %v1357_v56 = vadd.f32 %v1354_v63, %v4225_v11 }
 0xb2a   :  { %v3314_v58 = vmul.f32 -1.442695, %v1356_v21  ;;  %v3315_v37 = vmul.f32 -1.442695, %v1357_v56 }
 0xb2c   :  { %3477 = vpow2.f32 %v3314_v58 }
 0xb32   :  { %v3478_v19 = vpop.eup %3477 }
 0xb33   :  { %v1364_v27 = vadd.f32 1.0, %v3478_v19 }
 0xb35   :  { %3479 = vrcp.f32 %v1364_v27  ;;  %v1377_v7 = vand.u32 2147483648, %v1364_v27  ;;  %vm1371_vm15 = vweird.f32 %v1364_v27  ;;  %v1375_v26 = vand.u32 2147483647, %v1364_v27 }
 0xb37   :  { %v1378_v33 = vor.u32 1.1754944e-38, %v1377_v7  ;;  %vm1376_vm8 = vcmp.eq.f32.partialorder %v1375_v26, 8.507059e+37 }
 0xb3b   :  { %v3480_v32 = vpop.eup %3479 }
 0xb3c   :  { %v1367_v24 = vmul.f32 %v3480_v32, %v1364_v27  ;;  %vm1372_vm14 = vweird.f32 %v3480_v32 }
 0xb3d   :  { %vm1373_vm7 = vmor %vm1371_vm15, %vm1372_vm14 }
 0xb3e   :  { %v1368_v3 = vsub.f32 1.0, %v1367_v24 }
 0xb40   :  { %v1369_v20 = vmul.f32 %v3480_v32, %v1368_v3 }
 0xb42   :  { %v1370_v29 = vadd.f32 %v3480_v32, %v1369_v20 }
 0xb44   :  { %v1374_v17 = vsel %vm1373_vm7, %v3480_v32, %v1370_v29 }
 0xb45   :  { %v1379_v60 = vsel %vm1376_vm8, %v1378_v33, %v1374_v17 }
 0xb4d   :  { %v1191_v5 = vpop.permute.xlu1 %1190 }
 0xb4e   :  { %v1193_v40 = vmul.f32 %v1191_v5, %v1188_v28 }
 0xb50   :  { %v4545_v31 = vadd.f32 %v1194_v22, %v1193_v40 }
 0xb52   :  { %v4551_v9 = vsel %vm65_vm3, %v4545_v31, %v4509_v34 }
 0xb53   :  { %1265 = vrot.lane.b32.xlu2 %v4551_v9, %s3671_s4 }
 0xb55   :  { %v1399_v18 = vpop.permute.xlu1 %1398 }
 0xb56   :  { %v1401_v59 = vmul.f32 %v1399_v18, %v1379_v60 }
 0xb5b   :  { %1403 = vrot.lane.b32.xlu2 %v1401_v59, %s3669_s22 }
 0xbad   :  { %v1266_v44 = vpop.permute.xlu2 %1265 }
 0xbae   :  { %3311 = vmatmul.msk.f32.vlgmr.msra.gmra.mxu1 %vm480_vm1, %v1266_v44 }
 0xbb5   :  { %v1404_v34 = vpop.permute.xlu2 %1403 }
 0xbb6   :  { %v1406_v57 = vadd.f32 %v1404_v34, %v4225_v11 }
 0xbb8   :  { %3481 = vtanh.f32 %v1406_v57 }
 0xbb9   :  { %3483 = vpow2.f32 %v3315_v37 }
 0xbbe   :  { %v3482_v52 = vpop.eup %3481 }
 0xbbf   :  { %1410 = vrot.lane.b32.xlu1 %v3482_v52, %s3671_s4  ;;  %v3484_v41 = vpop.eup %3483 }
 0xbc0   :  { %v1365_v55 = vadd.f32 1.0, %v3484_v41 }
 0xbc2   :  { %3485 = vrcp.f32 %v1365_v55  ;;  %v1392_v58 = vand.u32 2147483648, %v1365_v55  ;;  %vm1386_vm12 = vweird.f32 %v1365_v55  ;;  %v1390_v19 = vand.u32 2147483647, %v1365_v55 }
 0xbc4   :  { %v1393_v24 = vor.u32 1.1754944e-38, %v1392_v58  ;;  %vm1391_vm14 = vcmp.eq.f32.partialorder %v1390_v19, 8.507059e+37 }
 0xbc8   :  { %v3486_v4 = vpop.eup %3485 }
 0xbc9   :  { %v1382_v50 = vmul.f32 %v3486_v4, %v1365_v55  ;;  %vm1387_vm11 = vweird.f32 %v3486_v4 }
 0xbca   :  { %vm1388_vm13 = vmor %vm1386_vm12, %vm1387_vm11 }
 0xbcb   :  { %v1383_v43 = vsub.f32 1.0, %v1382_v50 }
 0xbcd   :  { %v1384_v6 = vmul.f32 %v3486_v4, %v1383_v43 }
 0xbcf   :  { %v1385_v21 = vadd.f32 %v3486_v4, %v1384_v6 }
 0xbd1   :  { %v1389_v27 = vsel %vm1388_vm13, %v3486_v4, %v1385_v21 }
 0xbd2   :  { %v1394_v63 = vsel %vm1391_vm14, %v1393_v24, %v1389_v27 }
 0xbd3   :  { %v1408_v3 = vsub.f32 1.0, %v1394_v63  ;;  %v1414_v5 = vmul.f32 %v1394_v63, %v4532_v38 }
 0xc2b   :  { %v1286_v32 = vpop.f32.mrf.mxu1 }
 0xc2c   :  { %v1332_v11 = vadd.f32 %v1286_v32, %v4210_v62  ;;  %v1312_v29 = vadd.f32 %v1286_v32, %v4201_v39 }
 0xc2e   :  { %1334 = vrot.lane.b32.xlu0 %v1332_v11, %s3669_s22  ;;  %v3313_v7 = vmul.f32 -1.442695, %v1312_v29 }
 0xc30   :  { %3487 = vpow2.f32 %v3313_v7 }
 0xc31   :  { %v1411_v28 = vpop.permute.xlu1 %1410 }
 0xc32   :  { %v1413_v20 = vmul.f32 %v1411_v28, %v1408_v3 }
 0xc34   :  { %v4563_v22 = vadd.f32 %v1414_v5, %v1413_v20 }
 0xc36   :  { %v4569_v40 = vsel %vm53_vm10, %v4563_v22, %v4532_v38  ;;  %v3488_v26 = vpop.eup %3487 }
 0xc37   :  { %3317 = vmatmul.msk.f32.vlgmr.msrb.gmra.mxu1 %vm480_vm1, %v4569_v40  ;;  %v1316_v17 = vadd.f32 1.0, %v3488_v26 }
 0xc39   :  { %3489 = vrcp.f32 %v1316_v17  ;;  %v1328_v34 = vand.u32 2147483648, %v1316_v17  ;;  %vm1322_vm7 = vweird.f32 %v1316_v17  ;;  %v1326_v38 = vand.u32 2147483647, %v1316_v17 }
 0xc3b   :  { %v1329_v52 = vor.u32 1.1754944e-38, %v1328_v34  ;;  %vm1327_vm11 = vcmp.eq.f32.partialorder %v1326_v38, 8.507059e+37 }
 0xc3f   :  { %v3490_v33 = vpop.eup %3489 }
 0xc40   :  { %v1318_v18 = vmul.f32 %v3490_v33, %v1316_v17  ;;  %vm1323_vm15 = vweird.f32 %v3490_v33 }
 0xc41   :  { %vm1324_vm8 = vmor %vm1322_vm7, %vm1323_vm15 }
 0xc42   :  { %v1319_v60 = vsub.f32 1.0, %v1318_v18 }
 0xc44   :  { %v1320_v59 = vmul.f32 %v3490_v33, %v1319_v60 }
 0xc46   :  { %v1321_v44 = vadd.f32 %v3490_v33, %v1320_v59 }
 0xc48   :  { %v1325_v57 = vsel %vm1324_vm8, %v3490_v33, %v1321_v44 }
 0xc49   :  { %v1330_v56 = vsel %vm1327_vm11, %v1329_v52, %v1325_v57 }
 0xc4a   :  { %v1350_v5 = vmul.f32 %v1330_v56, %v4551_v9 }
 0xca0   :  { %v1335_v37 = vpop.permute.xlu0 %1334 }
 0xca1   :  { %v1337_v41 = vmul.f32 %v1335_v37, %v1330_v56 }
 0xca3   :  { %1339 = vrot.lane.b32.xlu2 %v1337_v41, %s3669_s22 }
 0xcb4   :  { %v1465_v55 = vpop.f32.mrf.mxu1 }
 0xcb5   :  { %1509 = vrot.lane.b32.xlu2 %v1465_v55, %s3671_s4  ;;  %v1552_v6 = vadd.f32 %v1465_v55, %v4218_v13 }
 0xcfd   :  { %v1340_v4 = vpop.permute.xlu2 %1339 }
 0xcfe   :  { %v1342_v50 = vadd.f32 %v1340_v4, %v4201_v39  ;;  %v1344_v39 = vsub.f32 1.0, %v1330_v56 }
 0xd00   :  { %3491 = vtanh.f32 %v1342_v50 }
 0xd06   :  { %v3492_v43 = vpop.eup %3491 }
 0xd07   :  { %1346 = vrot.lane.b32.xlu0 %v3492_v43, %s3671_s4 }
 0xd0f   :  { %1554 = vrot.lane.b32.xlu0 %v1552_v6, %s3672_s13  ;;  %v1510_v21 = vpop.permute.xlu2 %1509 }
 0xd10   :  { %v1512_v58 = vadd.f32 %v1510_v21, %v4313_v53  ;;  %v1513_v52 = vadd.f32 %v1510_v21, %v4222_v15 }
 0xd12   :  { %v3319_v19 = vmul.f32 -1.442695, %v1512_v58  ;;  %v3320_v56 = vmul.f32 -1.442695, %v1513_v52 }
 0xd14   :  { %3493 = vpow2.f32 %v3319_v19 }
 0xd1a   :  { %v3494_v27 = vpop.eup %3493 }
 0xd1b   :  { %v1520_v32 = vadd.f32 1.0, %v3494_v27 }
 0xd1d   :  { %3495 = vrcp.f32 %v1520_v32  ;;  %v1533_v26 = vand.u32 2147483648, %v1520_v32  ;;  %vm1527_vm13 = vweird.f32 %v1520_v32  ;;  %v1531_v17 = vand.u32 2147483647, %v1520_v32 }
 0xd1f   :  { %v1534_v60 = vor.u32 1.1754944e-38, %v1533_v26  ;;  %vm1532_vm15 = vcmp.eq.f32.partialorder %v1531_v17, 8.507059e+37 }
 0xd23   :  { %v3496_v24 = vpop.eup %3495 }
 0xd24   :  { %v1523_v11 = vmul.f32 %v3496_v24, %v1520_v32  ;;  %vm1528_vm12 = vweird.f32 %v3496_v24 }
 0xd25   :  { %vm1529_vm14 = vmor %vm1527_vm13, %vm1528_vm12 }
 0xd26   :  { %v1524_v63 = vsub.f32 1.0, %v1523_v11 }
 0xd28   :  { %v1525_v28 = vmul.f32 %v3496_v24, %v1524_v63 }
 0xd2a   :  { %v1526_v7 = vadd.f32 %v3496_v24, %v1525_v28 }
 0xd2c   :  { %v1530_v33 = vsel %vm1529_vm14, %v3496_v24, %v1526_v7 }
 0xd2d   :  { %v1535_v59 = vsel %vm1532_vm15, %v1534_v60, %v1530_v33 }
 0xd79   :  { %v1347_v3 = vpop.permute.xlu0 %1346 }
 0xd7a   :  { %v1349_v20 = vmul.f32 %v1347_v3, %v1344_v39 }
 0xd7c   :  { %v4582_v29 = vadd.f32 %v1350_v5, %v1349_v20 }
 0xd7e   :  { %v4588_v53 = vsel %vm71_vm9, %v4582_v29, %v4551_v9 }
 0xd7f   :  { %1421 = vrot.lane.b32.xlu1 %v4588_v53, %s3671_s4 }
 0xd81   :  { %v1555_v18 = vpop.permute.xlu0 %1554 }
 0xd82   :  { %v1557_v44 = vmul.f32 %v1555_v18, %v1535_v59 }
 0xd87   :  { %1559 = vrot.lane.b32.xlu1 %v1557_v44, %s3669_s22 }
 0xdf1   :  { %v1422_v34 = vpop.permute.xlu1 %1421 }
 0xdf2   :  { %3316 = vmatmul.msk.f32.vlgmr.msra.gmra.mxu2 %vm480_vm1, %v1422_v34 }
 0xdf9   :  { %v1560_v9 = vpop.permute.xlu1 %1559 }
 0xdfa   :  { %v1562_v38 = vadd.f32 %v1560_v9, %v4222_v15 }
 0xdfc   :  { %3497 = vtanh.f32 %v1562_v38 }
 0xdfd   :  { %3499 = vpow2.f32 %v3320_v56 }
 0xe02   :  { %v3498_v57 = vpop.eup %3497 }
 0xe03   :  { %1566 = vrot.lane.b32.xlu0 %v3498_v57, %s3671_s4  ;;  %v3500_v37 = vpop.eup %3499 }
 0xe04   :  { %v1521_v41 = vadd.f32 1.0, %v3500_v37 }
 0xe06   :  { %3501 = vrcp.f32 %v1521_v41  ;;  %v1548_v58 = vand.u32 2147483648, %v1521_v41  ;;  %vm1542_vm8 = vweird.f32 %v1521_v41  ;;  %v1546_v19 = vand.u32 2147483647, %v1521_v41 }
 0xe08   :  { %v1549_v32 = vor.u32 1.1754944e-38, %v1548_v58  ;;  %vm1547_vm12 = vcmp.eq.f32.partialorder %v1546_v19, 8.507059e+37 }
 0xe0c   :  { %v3502_v55 = vpop.eup %3501 }
 0xe0d   :  { %v1538_v4 = vmul.f32 %v3502_v55, %v1521_v41  ;;  %vm1543_vm7 = vweird.f32 %v3502_v55 }
 0xe0e   :  { %vm1544_vm11 = vmor %vm1542_vm8, %vm1543_vm7 }
 0xe0f   :  { %v1539_v50 = vsub.f32 1.0, %v1538_v4 }
 0xe11   :  { %v1540_v43 = vmul.f32 %v3502_v55, %v1539_v50 }
 0xe13   :  { %v1541_v6 = vadd.f32 %v3502_v55, %v1540_v43 }
 0xe15   :  { %v1545_v27 = vsel %vm1544_vm11, %v3502_v55, %v1541_v6 }
 0xe16   :  { %v1550_v24 = vsel %vm1547_vm12, %v1549_v32, %v1545_v27 }
 0xe17   :  { %v1564_v15 = vsub.f32 1.0, %v1550_v24  ;;  %v1570_v39 = vmul.f32 %v1550_v24, %v4569_v40 }
 0xe75   :  { %v1442_v21 = vpop.f32.mrf.mxu2  ;;  %v1567_v11 = vpop.permute.xlu0 %1566 }
 0xe76   :  { %v1488_v63 = vadd.f32 %v1442_v21, %v4210_v62  ;;  %v1569_v3 = vmul.f32 %v1567_v11, %v1564_v15  ;;  %v1468_v20 = vadd.f32 %v1442_v21, %v4204_v51 }
 0xe78   :  { %v4599_v28 = vadd.f32 %v1570_v39, %v1569_v3  ;;  %1490 = vrot.lane.b32.xlu2 %v1488_v63, %s3669_s22  ;;  %v3318_v7 = vmul.f32 -1.442695, %v1468_v20 }
 0xe7a   :  { %v4606_v5 = vsel %vm47_vm5, %v4599_v28, %v4569_v40  ;;  %3503 = vpow2.f32 %v3318_v7 }
 0xe7b   :  { %3322 = vmatmul.msk.f32.vlgmr.msrb.gmra.mxu2 %vm480_vm1, %v4606_v5 }
 0xe80   :  { %v3504_v26 = vpop.eup %3503 }
 0xe81   :  { %v1472_v17 = vadd.f32 1.0, %v3504_v26 }
 0xe83   :  { %3505 = vrcp.f32 %v1472_v17  ;;  %v1484_v34 = vand.u32 2147483648, %v1472_v17  ;;  %vm1478_vm14 = vweird.f32 %v1472_v17  ;;  %v1482_v40 = vand.u32 2147483647, %v1472_v17 }
 0xe85   :  { %v1485_v38 = vor.u32 1.1754944e-38, %v1484_v34  ;;  %vm1483_vm7 = vcmp.eq.f32.partialorder %v1482_v40, 8.507059e+37  ;;  %v794_v40 = vsel %vm47_vm5, %v4349_v2, 0.0  ;;  %v795_v2 = vsel %vm77_vm4, %v4332_v1, 0.0  ;;  %v1813_v1 = vld [vmem:[%s5379_s6 + $0x78] sm:$0xff] }
 0xe86   :  { %1894 = vmatpush.msra.mxu1 %v1813_v1 }
 0xe89   :  { %v3506_v33 = vpop.eup %3505 }
 0xe8a   :  { %v1474_v18 = vmul.f32 %v3506_v33, %v1472_v17  ;;  %vm1479_vm13 = vweird.f32 %v3506_v33 }
 0xe8b   :  { %vm1480_vm15 = vmor %vm1478_vm14, %vm1479_vm13 }
 0xe8c   :  { %v1475_v60 = vsub.f32 1.0, %v1474_v18 }
 0xe8e   :  { %v1476_v59 = vmul.f32 %v3506_v33, %v1475_v60 }
 0xe90   :  { %v1477_v44 = vadd.f32 %v3506_v33, %v1476_v59 }
 0xe92   :  { %v1481_v9 = vsel %vm1480_vm15, %v3506_v33, %v1477_v44 }
 0xe93   :  { %v1486_v57 = vsel %vm1483_vm7, %v1485_v38, %v1481_v9  ;;  %v950_v9 = vsel %vm53_vm10, %v4427_v25, 0.0  ;;  %v1263_v38 = vsel %vm59_vm6, %v4526_v23, 0.0 }
 0xe94   :  { %v1506_v63 = vmul.f32 %v1486_v57, %v4588_v53 }
 0xed2   :  { %v1491_v52 = vpop.permute.xlu2 %1490 }
 0xed3   :  { %v1493_v56 = vmul.f32 %v1491_v52, %v1486_v57 }
 0xed5   :  { %1495 = vrot.lane.b32.xlu1 %v1493_v56, %s3669_s22 }
 0xefe   :  { %v1621_v37 = vpop.f32.mrf.mxu2 }
 0xeff   :  { %1665 = vrot.lane.b32.xlu1 %v1621_v37, %s3671_s4  ;;  %v1708_v50 = vadd.f32 %v1621_v37, %v4218_v13 }
 0xf47   :  { %v1496_v41 = vpop.permute.xlu1 %1495 }
 0xf48   :  { %v1498_v55 = vadd.f32 %v1496_v41, %v4204_v51  ;;  %v1500_v51 = vsub.f32 1.0, %v1486_v57  ;;  %v1418_v57 = vsel %vm71_vm9, %v4582_v29, 0.0  ;;  %v1812_v29 = vld [vmem:[%s5379_s6 + $0x70] sm:$0xff] }
 0xf49   :  { %1853 = vmatpush.msra.mxu0 %v1812_v29 }
 0xf4a   :  { %3507 = vtanh.f32 %v1498_v55 }
 0xf50   :  { %v3508_v4 = vpop.eup %3507 }
 0xf51   :  { %1502 = vrot.lane.b32.xlu2 %v3508_v4, %s3671_s4  ;;  %v1811_v4 = vld [vmem:[%s5379_s6 + $0x68] sm:$0xff] }
 0xf52   :  { %1895 = vmatpush.msra.mxu1 %v1811_v4 }
 0xf59   :  { %1710 = vrot.lane.b32.xlu2 %v1708_v50, %s3672_s13 }
 0xf71   :  { %v1666_v43 = vpop.permute.xlu1 %1665 }
 0xf72   :  { %v1668_v6 = vadd.f32 %v1666_v43, %v4237_v30  ;;  %v1669_v25 = vadd.f32 %v1666_v43, %v4214_v8  ;;  %v1808_v43 = vld [vmem:[%s5379_s6 + $0x50] sm:$0xff] }
 0xf74   :  { %v3324_v58 = vmul.f32 -1.442695, %v1668_v6  ;;  %v3325_v52 = vmul.f32 -1.442695, %v1669_v25  ;;  %v1809_v6 = vld [vmem:[%s5379_s6 + $0x58] sm:$0xff]  ;;  %v1798_v25 = vld [vmem:[%s5379_s6] sm:$0xff] }
 0xf75   :  { %1896 = vmatpush.msra.mxu1 %v1809_v6 }
 0xf76   :  { %3509 = vpow2.f32 %v3324_v58  ;;  %v4675_v58 = vld [vmem:[%s5380_s7 + $0x18] sm:$0xff] }
 0xf77   :  { %1951 = vmatpush.msra.mxu3 %v4675_v58 }
 0xf7c   :  { %v3510_v19 = vpop.eup %3509 }
 0xf7d   :  { %v1676_v27 = vadd.f32 1.0, %v3510_v19 }
 0xf7f   :  { %3511 = vrcp.f32 %v1676_v27  ;;  %v1689_v20 = vand.u32 2147483648, %v1676_v27  ;;  %vm1683_vm11 = vweird.f32 %v1676_v27  ;;  %v1687_v7 = vand.u32 2147483647, %v1676_v27 }
 0xf81   :  { %v1690_v33 = vor.u32 1.1754944e-38, %v1689_v20  ;;  %vm1688_vm13 = vcmp.eq.f32.partialorder %v1687_v7, 8.507059e+37 }
 0xf85   :  { %v3512_v32 = vpop.eup %3511 }
 0xf86   :  { %v1679_v24 = vmul.f32 %v3512_v32, %v1676_v27  ;;  %vm1684_vm8 = vweird.f32 %v3512_v32 }
 0xf87   :  { %vm1685_vm12 = vmor %vm1683_vm11, %vm1684_vm8 }
 0xf88   :  { %v1680_v15 = vsub.f32 1.0, %v1679_v24 }
 0xf8a   :  { %v1681_v11 = vmul.f32 %v3512_v32, %v1680_v15 }
 0xf8c   :  { %v1682_v3 = vadd.f32 %v3512_v32, %v1681_v11 }
 0xf8e   :  { %v1686_v26 = vsel %vm1685_vm12, %v3512_v32, %v1682_v3 }
 0xf8f   :  { %v1691_v18 = vsel %vm1688_vm13, %v1690_v33, %v1686_v26 }
 0xfab   :  { %v1503_v21 = vpop.permute.xlu2 %1502 }
 0xfac   :  { %v1505_v39 = vmul.f32 %v1503_v21, %v1500_v51 }
 0xfae   :  { %v4619_v13 = vadd.f32 %v1506_v63, %v1505_v39 }
 0xfb0   :  { %v4625_v30 = vsel %vm77_vm4, %v4619_v13, %v4588_v53 }
 0xfb1   :  { %1577 = vrot.lane.b32.xlu0 %v4625_v30, %s3671_s4 }
 0xfb3   :  { %v1711_v17 = vpop.permute.xlu2 %1710 }
 0xfb4   :  { %v1713_v60 = vmul.f32 %v1711_v17, %v1691_v18 }
 0xfb9   :  { %1715 = vrot.lane.b32.xlu0 %v1713_v60, %s3669_s22 }
0x1023   :  { %v1578_v59 = vpop.permute.xlu0 %1577 }
0x1024   :  { %3321 = vmatmul.msk.f32.vlgmr.msrb.gmra.mxu3 %vm480_vm1, %v1578_v59  ;;  %v4694_v59 = vld [vmem:[%s5380_s7 + $0x10] sm:$0xff] }
0x1025   :  { %1952 = vmatpush.msra.mxu3 %v4694_v59 }
0x102b   :  { %v1716_v53 = vpop.permute.xlu0 %1715 }
0x102c   :  { %v1718_v44 = vadd.f32 %v1716_v53, %v4214_v8  ;;  %v1810_v8 = vld [vmem:[%s5379_s6 + $0x60] sm:$0xff]  ;;  %v1804_v53 = vld [vmem:[%s5379_s6 + $0x30] sm:$0xff] }
0x102d   :  { %1854 = vmatpush.msra.mxu0 %v1810_v8 }
0x102e   :  { %3513 = vtanh.f32 %v1718_v44  ;;  %v1805_v44 = vld [vmem:[%s5379_s6 + $0x38] sm:$0xff] }
0x102f   :  { %3515 = vpow2.f32 %v3325_v52  ;;  %1855 = vmatpush.msra.mxu0 %v1808_v43  ;;  %v1799_v52 = vld [vmem:[%s5379_s6 + $0x8] sm:$0xff] }
0x1034   :  { %v3514_v34 = vpop.eup %3513 }
0x1035   :  { %1722 = vrot.lane.b32.xlu2 %v3514_v34, %s3671_s4  ;;  %v3516_v56 = vpop.eup %3515  ;;  %v4705_v34 = vld [vmem:[%s5380_s7 + $0x8] sm:$0xff] }
0x1036   :  { %v1677_v23 = vadd.f32 1.0, %v3516_v56  ;;  %1953 = vmatpush.msra.mxu3 %v4705_v34 }
0x1038   :  { %3517 = vrcp.f32 %v1677_v23  ;;  %v1704_v27 = vand.u32 2147483648, %v1677_v23  ;;  %vm1698_vm15 = vweird.f32 %v1677_v23  ;;  %v1702_v32 = vand.u32 2147483647, %v1677_v23 }
0x103a   :  { %v1705_v15 = vor.u32 1.1754944e-38, %v1704_v27  ;;  %vm1703_vm8 = vcmp.eq.f32.partialorder %v1702_v32, 8.507059e+37  ;;  %v1575_v32 = vsel %vm47_vm5, %v4599_v28, 0.0 }
0x103d   :  { %1737 = vrot.lane.b32.xlu2 %v794_v40, %s3671_s4  ;;  %v1802_v40 = vld [vmem:[%s5379_s6 + $0x20] sm:$0xff] }
0x103e   :  { %v3518_v37 = vpop.eup %3517 }
0x103f   :  { %v1694_v41 = vmul.f32 %v3518_v37, %v1677_v23  ;;  %vm1699_vm14 = vweird.f32 %v3518_v37 }
0x1040   :  { %vm1700_vm7 = vmor %vm1698_vm15, %vm1699_vm14  ;;  %vm1820_vm15 = vcmask 523264  }
0x1041   :  { %v1695_v55 = vsub.f32 1.0, %v1694_v41 }
0x1043   :  { %v1696_v50 = vmul.f32 %v3518_v37, %v1695_v55 }
0x1045   :  { %1746 = vrot.lane.b32.xlu2 %v950_v9, %s3671_s4  ;;  %v1697_v19 = vadd.f32 %v3518_v37, %v1696_v50  ;;  %v1803_v9 = vld [vmem:[%s5379_s6 + $0x28] sm:$0xff] }
0x1047   :  { %v1701_v24 = vsel %vm1700_vm7, %v3518_v37, %v1697_v19 }
0x1048   :  { %v1706_v51 = vsel %vm1703_vm8, %v1705_v15, %v1701_v24  ;;  %v1419_v24 = vsel %vm53_vm10, %v4563_v22, 0.0  ;;  %v951_v15 = vsel %vm71_vm9, %v4384_v47, 0.0  ;;  %v4776_v47 = vld [vmem:[%s5380_s7 + $0x38] sm:$0xff] }
0x1049   :  { %v1720_v11 = vsub.f32 1.0, %v1706_v51  ;;  %v1726_v20 = vmul.f32 %v1706_v51, %v4606_v5  ;;  %v1807_v5 = vld [vmem:[%s5379_s6 + $0x48] sm:$0xff]  ;;  %1971 = vmatpush.msra.mxu2 %v4776_v47 }
0x104a   :  { %1897 = vmatpush.msra.mxu1 %v1807_v5  ;;  %v3396_v5 = vld [vmem:[%s5381_s9 + $0x1] ss:$0 sm:$0xff] }
0x104c   :  { %1898 = vmatpush.msra.mxu1 %v1805_v44 }
0x104d   :  { %1759 = vrot.lane.b32.xlu2 %v1263_v38, %s3672_s13  ;;  %v4717_v38 = vld [vmem:[%s5380_s7] sm:$0xff] }
0x104e   :  { %1899 = vmatpush.msra.mxu1 %v1803_v9  ;;  %1954 = vmatpush.msra.mxu3 %v4717_v38 }
0x104f   :  { %1955 = vmatmul.f32.vlgmr.msra.gmra.mxu3 %v3670_v48 }
0x1050   :  { %2112 = vmatpush.msrb.mxu3 %v4675_v58 }
0x1052   :  { %2113 = vmatpush.msrb.mxu3 %v4694_v59 }
0x1054   :  { %2114 = vmatpush.msrb.mxu3 %v4705_v34 }
0x1055   :  { %1773 = vrot.lane.b32.xlu2 %v1418_v57, %s3671_s4  ;;  %v1800_v57 = vld [vmem:[%s5379_s6 + $0x10] sm:$0xff] }
0x1056   :  { %2115 = vmatpush.msrb.mxu3 %v4717_v38 }
0x1058   :  { %2268 = vmatpush.msra.mxu3 %v4675_v58 }
0x105a   :  { %2269 = vmatpush.msra.mxu3 %v4694_v59 }
0x105c   :  { %2270 = vmatpush.msra.mxu3 %v4705_v34 }
0x105d   :  { %1786 = vrot.lane.b32.xlu2 %v795_v2, %s3672_s13  ;;  %v1801_v2 = vld [vmem:[%s5379_s6 + $0x18] sm:$0xff] }
0x105e   :  { %1900 = vmatpush.msra.mxu1 %v1801_v2  ;;  %2271 = vmatpush.msra.mxu3 %v4717_v38 }
0x1060   :  { %1901 = vmatpush.msra.mxu1 %v1799_v52 }
0x108f   :  { %v1723_v21 = vpop.permute.xlu2 %1722 }
0x1090   :  { %v1725_v3 = vmul.f32 %v1723_v21, %v1720_v11 }
0x1092   :  { %v1727_v7 = vadd.f32 %v1726_v20, %v1725_v3 }
0x1094   :  { %v1729_v26 = vsel %vm41_vm2, %v1727_v7, 0.0  ;;  %v1106_v7 = vsel %vm59_vm6, %v4502_v35, 0.0  ;;  %v4813_v35 = vld [vmem:[%s5380_s7 + $0x20] sm:$0xff] }
0x1097   :  { %v1738_v21 = vpop.permute.xlu2 %1737 }
0x109f   :  { %v1747_v3 = vpop.permute.xlu2 %1746 }
0x10a7   :  { %v1598_v63 = vpop.f32.mrf.mxu3 }
0x10a8   :  { %v1644_v39 = vadd.f32 %v1598_v63, %v4210_v62  ;;  %v1624_v17 = vadd.f32 %v1598_v63, %v4250_v16  ;;  %v1806_v62 = vld [vmem:[%s5379_s6 + $0x40] sm:$0xff] }
0x10a9   :  { %1856 = vmatpush.msra.mxu0 %v1806_v62 }
0x10aa   :  { %1646 = vrot.lane.b32.xlu1 %v1644_v39, %s3669_s22  ;;  %v3323_v33 = vmul.f32 -1.442695, %v1624_v17  ;;  %v4789_v39 = vld [vmem:[%s5380_s7 + $0x28] sm:$0xff]  ;;  %v1107_v17 = vsel %vm65_vm3, %v4479_v0, 0.0  ;;  %v1760_v0 = vpop.permute.xlu2 %1759 }
0x10ab   :  { %1857 = vmatpush.msra.mxu0 %v1804_v53 }
0x10ac   :  { %3519 = vpow2.f32 %v3323_v33  ;;  %v1574_v33 = vsel %vm77_vm4, %v4619_v13, 0.0 }
0x10ad   :  { %1858 = vmatpush.msra.mxu0 %v1802_v40 }
0x10af   :  { %1859 = vmatpush.msra.mxu0 %v1800_v57 }
0x10b1   :  { %1860 = vmatpush.msra.mxu0 %v1798_v25 }
0x10b2   :  { %1732 = vrot.lane.b32.xlu1 %v1729_v26, %s3672_s13  ;;  %v3520_v18 = vpop.eup %3519 }
0x10b3   :  { %v1628_v60 = vadd.f32 1.0, %v3520_v18 }
0x10b5   :  { %3521 = vrcp.f32 %v1628_v60  ;;  %v1640_v29 = vand.u32 2147483648, %v1628_v60  ;;  %vm1634_vm12 = vweird.f32 %v1628_v60  ;;  %v1638_v1 = vand.u32 2147483647, %v1628_v60 }
0x10b7   :  { %v1641_v4 = vor.u32 1.1754944e-38, %v1640_v29  ;;  %vm1639_vm14 = vcmp.eq.f32.partialorder %v1638_v1, 8.507059e+37  ;;  %v4854_v29 = vld [vmem:[%s5382_s8] sm:$0x3] }
0x10b8   :  { %v4857_v1 = vperm.slane %v4854_v29, 0 }
0x10bb   :  { %v3522_v56 = vpop.eup %3521 }
0x10bc   :  { %v1630_v23 = vmul.f32 %v3522_v56, %v1628_v60  ;;  %vm1635_vm11 = vweird.f32 %v3522_v56 }
0x10bd   :  { %vm1636_vm13 = vmor %vm1634_vm12, %vm1635_vm11 }
0x10be   :  { %v1631_v37 = vsub.f32 1.0, %v1630_v23 }
0x10c0   :  { %v1632_v41 = vmul.f32 %v3522_v56, %v1631_v37 }
0x10c2   :  { %v1633_v55 = vadd.f32 %v3522_v56, %v1632_v41 }
0x10c4   :  { %v1637_v8 = vsel %vm1636_vm13, %v3522_v56, %v1633_v55 }
0x10c5   :  { %v4742_v50 = vsel %vm1639_vm14, %v1641_v4, %v1637_v8 }
0x10c6   :  { %v1662_v60 = vmul.f32 %v4742_v50, %v4625_v30 }
0x10d2   :  { %v1956_v57 = vpop.f32.mrf.mxu3 }
0x111c   :  { %v1647_v43 = vpop.permute.xlu1 %1646 }
0x111d   :  { %v1649_v6 = vmul.f32 %v1647_v43, %v4742_v50 }
0x111f   :  { %1651 = vrot.lane.b32.xlu0 %v1649_v6, %s3669_s22 }
0x1124   :  { %v1733_v19 = vpop.permute.xlu1 %1732 }
0x1125   :  { %v1735_v27 = vsel %vm480_vm1, %v4294_v12, %v1733_v19  ;;  %v1262_v12 = vsel %vm65_vm3, %v4545_v31, 0.0  ;;  %v3395_v31 = vld [vmem:[%s5381_s9] ss:$0 sm:$0xff] }
0x1126   :  { %3326 = vmatmul.msk.f32.vlgmr.msra.gmra.mxu0 %vm1820_vm15, %v1735_v27  ;;  %3334 = vmatmul.msk.f32.vlgmr.msra.gmra.mxu1 %vm1820_vm15, %v1735_v27 }
0x1127   :  { %1741 = vrot.lane.b32.xlu0 %v1575_v32, %s3672_s13  ;;  %2001 = vrot.lane.b32.xlu2 %v3395_v31, %s3669_s22 }
0x112f   :  { %1750 = vrot.lane.b32.xlu0 %v1419_v24, %s3672_s13 }
0x1137   :  { %1764 = vrot.lane.b32.xlu0 %v1262_v12, %s3671_s4 }
0x113f   :  { %1777 = vrot.lane.b32.xlu0 %v951_v15, %s3672_s13 }
0x1191   :  { %v1652_v28 = vpop.permute.xlu0 %1651 }
0x1192   :  { %v1654_v51 = vadd.f32 %v1652_v28, %v4250_v16  ;;  %v4781_v16 = vld [vmem:[%s5380_s7 + $0x30] sm:$0xff] }
0x1193   :  { %1972 = vmatpush.msra.mxu2 %v4781_v16 }
0x1194   :  { %3523 = vtanh.f32 %v1654_v51 }
0x1195   :  { %1973 = vmatpush.msra.mxu2 %v4789_v39 }
0x1197   :  { %1974 = vmatpush.msra.mxu2 %v4813_v35 }
0x1198   :  { %1975 = vmatmul.f32.vlgmr.msra.gmra.mxu2 %v3670_v48  ;;  %v1656_v48 = vsub.f32 1.0, %v4742_v50 }
0x1199   :  { %v1742_v22 = vpop.permute.xlu0 %1741  ;;  %2135 = vmatpush.msrb.mxu2 %v4776_v47 }
0x119a   :  { %v3524_v11 = vpop.eup %3523  ;;  %v1744_v63 = vsel %vm480_vm1, %v1738_v21, %v1742_v22 }
0x119b   :  { %1658 = vrot.lane.b32.xlu1 %v3524_v11, %s3671_s4  ;;  %3327 = vmatmul.msk.f32.gmra.mxu0 %vm1820_vm15, %v1744_v63 }
0x119c   :  { %3335 = vmatmul.msk.f32.gmra.mxu1 %vm1820_vm15, %v1744_v63  ;;  %2136 = vmatpush.msrb.mxu2 %v4781_v16 }
0x119e   :  { %2137 = vmatpush.msrb.mxu2 %v4789_v39 }
0x11a0   :  { %2138 = vmatpush.msrb.mxu2 %v4813_v35 }
0x11a1   :  { %v1751_v20 = vpop.permute.xlu0 %1750 }
0x11a2   :  { %v1753_v26 = vsel %vm480_vm1, %v1747_v3, %v1751_v20  ;;  %2291 = vmatpush.msra.mxu2 %v4776_v47 }
0x11a3   :  { %1755 = vrot.lane.b32.xlu1 %v1106_v7, %s3671_s4  ;;  %3328 = vmatmul.msk.f32.gmra.mxu0 %vm1820_vm15, %v1753_v26  ;;  %v1862_v8 = vpop.f32.mrf.mxu0 }
0x11a4   :  { %3336 = vmatmul.msk.f32.gmra.mxu1 %vm1820_vm15, %v1753_v26  ;;  %2292 = vmatpush.msra.mxu2 %v4781_v16  ;;  %v4860_v4 = vadd.f32 %v1862_v8, %v4857_v1 }
0x11a6   :  { %2293 = vmatpush.msra.mxu2 %v4789_v39  ;;  %v1979_v50 = vadd.f32 %v1956_v57, %v4860_v4 }
0x11a8   :  { %2294 = vmatpush.msra.mxu2 %v4813_v35  ;;  %v3347_v43 = vmul.f32 -1.442695, %v1979_v50 }
0x11a9   :  { %v1765_v25 = vpop.permute.xlu0 %1764 }
0x11aa   :  { %3525 = vpow2.f32 %v3347_v43 }
0x11ab   :  { %1768 = vrot.lane.b32.xlu1 %v1107_v17, %s3672_s13 }
0x11b0   :  { %v3526_v6 = vpop.eup %3525 }
0x11b1   :  { %v1778_v23 = vpop.permute.xlu0 %1777  ;;  %v1983_v19 = vadd.f32 1.0, %v3526_v6 }
0x11b3   :  { %1782 = vrot.lane.b32.xlu1 %v1574_v33, %s3671_s4  ;;  %3527 = vrcp.f32 %v1983_v19  ;;  %v1995_v11 = vand.u32 2147483648, %v1983_v19  ;;  %vm1989_vm8 = vweird.f32 %v1983_v19  ;;  %v1993_v63 = vand.u32 2147483647, %v1983_v19 }
0x11b5   :  { %v1996_v3 = vor.u32 1.1754944e-38, %v1995_v11  ;;  %vm1994_vm12 = vcmp.eq.f32.partialorder %v1993_v63, 8.507059e+37 }
0x11b9   :  { %v3528_v32 = vpop.eup %3527 }
0x11ba   :  { %v1985_v24 = vmul.f32 %v3528_v32, %v1983_v19  ;;  %vm1990_vm7 = vweird.f32 %v3528_v32 }
0x11bb   :  { %1794 = vrot.lane.b32.xlu1 %v4276_v46, %s3672_s13  ;;  %v1774_v46 = vpop.permute.xlu2 %1773  ;;  %vm1991_vm11 = vmor %vm1989_vm8, %vm1990_vm7 }
0x11bc   :  { %v1780_v37 = vsel %vm480_vm1, %v1774_v46, %v1778_v23  ;;  %v1986_v12 = vsub.f32 1.0, %v1985_v24 }
0x11be   :  { %v1987_v15 = vmul.f32 %v3528_v32, %v1986_v12 }
0x11c0   :  { %v1988_v22 = vadd.f32 %v3528_v32, %v1987_v15 }
0x11c2   :  { %v1992_v31 = vsel %vm1991_vm11, %v3528_v32, %v1988_v22  ;;  %v4897_v22 = vpop.f32.mrf.mxu1 }
0x11c3   :  { %v1787_v13 = vpop.permute.xlu2 %1786  ;;  %2070 = vrot.lane.b32.xlu1 %v3396_v5, %s3669_s22  ;;  %v1997_v20 = vsel %vm1994_vm12, %v1996_v3, %v1992_v31 }
0x11c4   :  { %v2016_v24 = vsub.f32 1.0, %v1997_v20  ;;  %v2022_v15 = vmul.f32 0.0, %v1997_v20 }
0x11cb   :  { %v4835_v40 = vpop.permute.xlu2 %2001 }
0x11cc   :  { %v2004_v30 = vadd.f32 %v4835_v40, %v1956_v57 }
0x120d   :  { %v1659_v18 = vpop.permute.xlu1 %1658 }
0x120e   :  { %v1661_v62 = vmul.f32 %v1659_v18, %v1656_v48 }
0x1210   :  { %v1663_v53 = vadd.f32 %v1662_v60, %v1661_v62 }
0x1212   :  { %v1728_v44 = vsel %vm5384_vm0, %v1663_v53, 0.0 }
0x1213   :  { %1791 = vrot.lane.b32.xlu0 %v1728_v44, %s3671_s4 }
0x1215   :  { %v1756_v9 = vpop.permute.xlu1 %1755 }
0x1216   :  { %v1762_v2 = vsel %vm480_vm1, %v1756_v9, %v1760_v0 }
0x1217   :  { %3329 = vmatmul.msk.f32.gmra.mxu0 %vm1820_vm15, %v1762_v2  ;;  %3337 = vmatmul.msk.f32.gmra.mxu1 %vm1820_vm15, %v1762_v2 }
0x1218   :  { %v4872_v0 = vpop.f32.mrf.mxu0 }
0x1219   :  { %v4899_v11 = vpop.f32.mrf.mxu1 }
0x121b   :  { %2006 = vrot.lane.b32.xlu0 %v2004_v30, %s3669_s22  ;;  %v1976_v27 = vpop.f32.mrf.mxu2 }
0x121d   :  { %v1769_v52 = vpop.permute.xlu1 %1768 }
0x121e   :  { %v1771_v56 = vsel %vm480_vm1, %v1765_v25, %v1769_v52 }
0x121f   :  { %3330 = vmatmul.msk.f32.gmra.mxu0 %vm1820_vm15, %v1771_v56  ;;  %3338 = vmatmul.msk.f32.gmra.mxu1 %vm1820_vm15, %v1771_v56 }
0x1220   :  { %v4874_v46 = vpop.f32.mrf.mxu0 }
0x1221   :  { %v4901_v63 = vpop.f32.mrf.mxu1 }
0x1223   :  { %2025 = vrot.lane.b32.xlu0 %v1976_v27, %s3671_s4 }
0x1225   :  { %v1783_v41 = vpop.permute.xlu1 %1782 }
0x1226   :  { %v1789_v55 = vsel %vm480_vm1, %v1783_v41, %v1787_v13 }
0x1227   :  { %3331 = vmatmul.msk.f32.gmra.mxu0 %vm1820_vm15, %v1780_v37  ;;  %3339 = vmatmul.msk.f32.gmra.mxu1 %vm1820_vm15, %v1780_v37 }
0x122d   :  { %v1795_v28 = vpop.permute.xlu1 %1794 }
0x122f   :  { %3332 = vmatmul.msk.f32.gmra.mxu0 %vm1820_vm15, %v1789_v55  ;;  %3340 = vmatmul.msk.f32.gmra.mxu1 %vm1820_vm15, %v1789_v55 }
0x1235   :  { %v4867_v26 = vpop.permute.xlu1 %2070 }
0x1236   :  { %v2073_v33 = vadd.f32 %v4867_v26, %v1976_v27 }
0x1238   :  { %2075 = vrot.lane.b32.xlu1 %v2073_v33, %s3672_s13  ;;  %v4912_v33 = vperm.slane %v4854_v29, 1 }
0x1285   :  { %v1792_v51 = vpop.permute.xlu0 %1791 }
0x1286   :  { %v1797_v21 = vsel %vm480_vm1, %v1792_v51, %v1795_v28 }
0x1287   :  { %3333 = vmatmul.msk.f32.gmra.mxu0 %vm1820_vm15, %v1797_v21  ;;  %3341 = vmatmul.msk.f32.gmra.mxu1 %vm1820_vm15, %v1797_v21 }
0x128d   :  { %v2007_v7 = vpop.permute.xlu0 %2006 }
0x128e   :  { %v2009_v17 = vmul.f32 %v2007_v7, %v1997_v20 }
0x1290   :  { %2011 = vrot.lane.b32.xlu2 %v2009_v17, %s3669_s22 }
0x1294   :  { %v4876_v13 = vpop.f32.mrf.mxu0  ;;  %v4903_v31 = vpop.f32.mrf.mxu1 }
0x1295   :  { %v2026_v9 = vpop.permute.xlu0 %2025 }
0x129c   :  { %v4878_v48 = vpop.f32.mrf.mxu0  ;;  %v4905_v3 = vpop.f32.mrf.mxu1 }
0x12a4   :  { %v4881_v62 = vpop.f32.mrf.mxu0  ;;  %v4907_v20 = vpop.f32.mrf.mxu1 }
0x12aa   :  { %v2076_v6 = vpop.permute.xlu1 %2075 }
0x12ac   :  { %v4884_v53 = vpop.f32.mrf.mxu0  ;;  %v4909_v7 = vpop.f32.mrf.mxu1 }
0x12ea   :  { %v2012_v18 = vpop.permute.xlu2 %2011 }
0x12eb   :  { %v2014_v60 = vadd.f32 %v2012_v18, %v4860_v4 }
0x12ed   :  { %3529 = vtanh.f32 %v2014_v60 }
0x12f3   :  { %v3530_v5 = vpop.eup %3529 }
0x12f4   :  { %2018 = vrot.lane.b32.xlu2 %v3530_v5, %s3671_s4 }
0x1304   :  { %v1883_v44 = vpop.f32.mrf.mxu0  ;;  %v1924_v17 = vpop.f32.mrf.mxu1 }
0x1305   :  { %v4887_v57 = vadd.f32 %v1883_v44, %v4857_v1  ;;  %v1925_v18 = vadd.f32 %v1924_v17, %v4912_v33 }
0x1307   :  { %v2028_v2 = vadd.f32 %v2026_v9, %v4887_v57 }
0x1309   :  { %v3348_v30 = vmul.f32 -1.442695, %v2028_v2 }
0x130b   :  { %3531 = vpow2.f32 %v3348_v30  ;;  %v2029_v30 = vadd.f32 %v2026_v9, %v1925_v18 }
0x130d   :  { %v3349_v29 = vmul.f32 -1.442695, %v2029_v30 }
0x1311   :  { %v3532_v25 = vpop.eup %3531 }
0x1312   :  { %v2036_v52 = vadd.f32 1.0, %v3532_v25 }
0x1314   :  { %3533 = vrcp.f32 %v2036_v52  ;;  %v2049_v41 = vand.u32 2147483648, %v2036_v52  ;;  %v2047_v8 = vand.u32 2147483647, %v2036_v52  ;;  %vm2043_vm14 = vweird.f32 %v2036_v52 }
0x1316   :  { %v2050_v43 = vor.u32 1.1754944e-38, %v2049_v41  ;;  %vm2048_vm8 = vcmp.eq.f32.partialorder %v2047_v8, 8.507059e+37 }
0x131a   :  { %v3534_v56 = vpop.eup %3533 }
0x131b   :  { %v2039_v23 = vmul.f32 %v3534_v56, %v2036_v52  ;;  %vm2044_vm13 = vweird.f32 %v3534_v56 }
0x131c   :  { %vm2045_vm7 = vmor %vm2043_vm14, %vm2044_vm13 }
0x131d   :  { %v2040_v37 = vsub.f32 1.0, %v2039_v23 }
0x131f   :  { %v2041_v55 = vmul.f32 %v3534_v56, %v2040_v37 }
0x1321   :  { %v2042_v50 = vadd.f32 %v3534_v56, %v2041_v55 }
0x1323   :  { %v2046_v19 = vsel %vm2045_vm7, %v3534_v56, %v2042_v50 }
0x1324   :  { %v2051_v27 = vsel %vm2048_vm8, %v2050_v43, %v2046_v19 }
0x1325   :  { %v2078_v32 = vmul.f32 %v2076_v6, %v2051_v27 }
0x1327   :  { %2080 = vrot.lane.b32.xlu0 %v2078_v32, %s3669_s22 }
0x134e   :  { %v2019_v12 = vpop.permute.xlu2 %2018 }
0x134f   :  { %v2021_v28 = vmul.f32 %v2019_v12, %v2016_v24 }
0x1351   :  { %v2023_v51 = vadd.f32 %v2022_v15, %v2021_v28 }
0x1353   :  { %v4893_v21 = vsel %vm41_vm2, %v2023_v51, 0.0 }
0x1354   :  { %2096 = vrot.lane.b32.xlu1 %v4893_v21, %s3671_s4 }
0x1399   :  { %v2081_v60 = vpop.permute.xlu0 %2080 }
0x139a   :  { %v2083_v5 = vadd.f32 %v2081_v60, %v1925_v18  ;;  %v4941_v60 = vadd.f32 %v4872_v0, %v4857_v1 }
0x139c   :  { %3535 = vtanh.f32 %v2083_v5 }
0x139d   :  { %3537 = vpow2.f32 %v3349_v29 }
0x13a2   :  { %v3536_v44 = vpop.eup %3535 }
0x13a3   :  { %2087 = vrot.lane.b32.xlu2 %v3536_v44, %s3671_s4  ;;  %v3538_v25 = vpop.eup %3537 }
0x13a4   :  { %v2037_v52 = vadd.f32 1.0, %v3538_v25 }
0x13a6   :  { %3539 = vrcp.f32 %v2037_v52  ;;  %v2064_v9 = vand.u32 2147483648, %v2037_v52  ;;  %vm2058_vm12 = vweird.f32 %v2037_v52  ;;  %v2062_v8 = vand.u32 2147483647, %v2037_v52 }
0x13a8   :  { %v2065_v43 = vor.u32 1.1754944e-38, %v2064_v9  ;;  %vm2063_vm14 = vcmp.eq.f32.partialorder %v2062_v8, 8.507059e+37 }
0x13ac   :  { %v3540_v56 = vpop.eup %3539 }
0x13ad   :  { %v2054_v23 = vmul.f32 %v3540_v56, %v2037_v52  ;;  %vm2059_vm11 = vweird.f32 %v3540_v56 }
0x13ae   :  { %vm2060_vm13 = vmor %vm2058_vm12, %vm2059_vm11 }
0x13af   :  { %v2055_v37 = vsub.f32 1.0, %v2054_v23 }
0x13b1   :  { %v2056_v41 = vmul.f32 %v3540_v56, %v2055_v37 }
0x13b3   :  { %v2057_v55 = vadd.f32 %v3540_v56, %v2056_v41 }
0x13b5   :  { %v2061_v50 = vsel %vm2060_vm13, %v3540_v56, %v2057_v55 }
0x13b6   :  { %v2066_v6 = vsel %vm2063_vm14, %v2065_v43, %v2061_v50 }
0x13b7   :  { %v2085_v19 = vsub.f32 1.0, %v2066_v6  ;;  %v2091_v32 = vmul.f32 0.0, %v2066_v6  ;;  %v4947_v6 = vadd.f32 %v4884_v53, %v4857_v1 }
0x13c6   :  { %v4916_v2 = vpop.permute.xlu1 %2096 }
0x13c7   :  { %3350 = vmatmul.msk.f32.vlgmr.msrb.gmra.mxu3 %vm480_vm1, %v4916_v2 }
0x13c8   :  { %2424 = vmatpush.msrb.mxu3 %v4675_v58 }
0x13ca   :  { %2425 = vmatpush.msrb.mxu3 %v4694_v59 }
0x13cc   :  { %2426 = vmatpush.msrb.mxu3 %v4705_v34 }
0x13ce   :  { %2427 = vmatpush.msrb.mxu3 %v4717_v38 }
0x13fd   :  { %v2088_v27 = vpop.permute.xlu2 %2087 }
0x13fe   :  { %v2090_v24 = vmul.f32 %v2088_v27, %v2085_v19 }
0x1400   :  { %v2092_v12 = vadd.f32 %v2091_v32, %v2090_v24 }
0x1402   :  { %v4926_v15 = vsel %vm5384_vm0, %v2092_v12, 0.0 }
0x1403   :  { %3351 = vmatmul.msk.f32.vlgmr.msrb.gmra.mxu2 %vm480_vm1, %v4926_v15 }
0x1404   :  { %2447 = vmatpush.msrb.mxu2 %v4776_v47 }
0x1406   :  { %2448 = vmatpush.msrb.mxu2 %v4781_v16 }
0x1408   :  { %2449 = vmatpush.msrb.mxu2 %v4789_v39 }
0x140a   :  { %2450 = vmatpush.msrb.mxu2 %v4813_v35 }
0x144a   :  { %v2117_v28 = vpop.f32.mrf.mxu3 }
0x144b   :  { %v2163_v51 = vadd.f32 %v2117_v28, %v4835_v40  ;;  %v2143_v5 = vadd.f32 %v2117_v28, %v4941_v60 }
0x144d   :  { %2165 = vrot.lane.b32.xlu0 %v2163_v51, %s3669_s22  ;;  %v3352_v44 = vmul.f32 -1.442695, %v2143_v5 }
0x144f   :  { %3541 = vpow2.f32 %v3352_v44 }
0x1455   :  { %v3542_v30 = vpop.eup %3541 }
0x1456   :  { %v2147_v29 = vadd.f32 1.0, %v3542_v30 }
0x1458   :  { %3543 = vrcp.f32 %v2147_v29  ;;  %v2159_v41 = vand.u32 2147483648, %v2147_v29  ;;  %vm2153_vm8 = vweird.f32 %v2147_v29  ;;  %v2157_v55 = vand.u32 2147483647, %v2147_v29 }
0x145a   :  { %v2160_v0 = vor.u32 1.1754944e-38, %v2159_v41  ;;  %vm2158_vm12 = vcmp.eq.f32.partialorder %v2157_v55, 8.507059e+37  ;;  %v1922_v55 = vadd.f32 %v4909_v7, %v4912_v33 }
0x145e   :  { %v3544_v25 = vpop.eup %3543 }
0x145f   :  { %v2149_v52 = vmul.f32 %v3544_v25, %v2147_v29  ;;  %vm2154_vm7 = vweird.f32 %v3544_v25 }
0x1460   :  { %vm2155_vm11 = vmor %vm2153_vm8, %vm2154_vm7 }
0x1461   :  { %v2150_v56 = vsub.f32 1.0, %v2149_v52 }
0x1463   :  { %v2151_v23 = vmul.f32 %v3544_v25, %v2150_v56 }
0x1465   :  { %v2152_v37 = vadd.f32 %v3544_v25, %v2151_v23 }
0x1467   :  { %v2156_v9 = vsel %vm2155_vm11, %v3544_v25, %v2152_v37 }
0x1468   :  { %v2161_v50 = vsel %vm2158_vm12, %v2160_v0, %v2156_v9 }
0x1486   :  { %v2140_v17 = vpop.f32.mrf.mxu2 }
0x1487   :  { %v2227_v18 = vadd.f32 %v2140_v17, %v4867_v26  ;;  %2184 = vrot.lane.b32.xlu1 %v2140_v17, %s3671_s4 }
0x1489   :  { %2229 = vrot.lane.b32.xlu0 %v2227_v18, %s3672_s13 }
0x14bf   :  { %v2166_v8 = vpop.permute.xlu0 %2165 }
0x14c0   :  { %v2168_v43 = vmul.f32 %v2166_v8, %v2161_v50 }
0x14c2   :  { %2170 = vrot.lane.b32.xlu2 %v2168_v43, %s3669_s22  ;;  %v2175_v43 = vsub.f32 1.0, %v2161_v50 }
0x14f9   :  { %v2185_v19 = vpop.permute.xlu1 %2184 }
0x14fa   :  { %v2187_v27 = vadd.f32 %v2185_v19, %v4947_v6  ;;  %v2188_v7 = vadd.f32 %v2185_v19, %v1922_v55 }
0x14fb   :  { %v2230_v25 = vpop.permute.xlu0 %2229 }
0x14fc   :  { %v3353_v32 = vmul.f32 -1.442695, %v2187_v27 }
0x14fe   :  { %3545 = vpow2.f32 %v3353_v32  ;;  %v2181_v32 = vmul.f32 %v2161_v50, %v4893_v21 }
0x1504   :  { %v3546_v24 = vpop.eup %3545 }
0x1505   :  { %v2195_v12 = vadd.f32 1.0, %v3546_v24 }
0x1507   :  { %3547 = vrcp.f32 %v2195_v12  ;;  %v2208_v18 = vand.u32 2147483648, %v2195_v12  ;;  %v2206_v44 = vand.u32 2147483647, %v2195_v12  ;;  %vm2202_vm14 = vweird.f32 %v2195_v12 }
0x1509   :  { %v2209_v53 = vor.u32 1.1754944e-38, %v2208_v18  ;;  %vm2207_vm8 = vcmp.eq.f32.partialorder %v2206_v44, 8.507059e+37 }
0x150d   :  { %v3548_v28 = vpop.eup %3547 }
0x150e   :  { %v2198_v51 = vmul.f32 %v3548_v28, %v2195_v12  ;;  %vm2203_vm13 = vweird.f32 %v3548_v28 }
0x150f   :  { %vm2204_vm7 = vmor %vm2202_vm14, %vm2203_vm13 }
0x1510   :  { %v2199_v17 = vsub.f32 1.0, %v2198_v51  ;;  %v3354_v51 = vmul.f32 -1.442695, %v2188_v7 }
0x1512   :  { %v2200_v5 = vmul.f32 %v3548_v28, %v2199_v17 }
0x1514   :  { %v2201_v30 = vadd.f32 %v3548_v28, %v2200_v5 }
0x1516   :  { %v2205_v29 = vsel %vm2204_vm7, %v3548_v28, %v2201_v30 }
0x1517   :  { %v2210_v52 = vsel %vm2207_vm8, %v2209_v53, %v2205_v29 }
0x1518   :  { %v2232_v56 = vmul.f32 %v2230_v25, %v2210_v52 }
0x151a   :  { %2234 = vrot.lane.b32.xlu2 %v2232_v56, %s3669_s22 }
0x151c   :  { %v2171_v23 = vpop.permute.xlu2 %2170 }
0x151d   :  { %v2173_v37 = vadd.f32 %v2171_v23, %v4941_v60 }
0x151f   :  { %3549 = vtanh.f32 %v2173_v37 }
0x1525   :  { %v3550_v41 = vpop.eup %3549 }
0x1526   :  { %2177 = vrot.lane.b32.xlu1 %v3550_v41, %s3671_s4 }
0x1574   :  { %v2235_v9 = vpop.permute.xlu2 %2234 }
0x1575   :  { %v2237_v0 = vadd.f32 %v2235_v9, %v1922_v55 }
0x1577   :  { %3551 = vtanh.f32 %v2237_v0 }
0x1578   :  { %3553 = vpow2.f32 %v3354_v51 }
0x157d   :  { %v3552_v8 = vpop.eup %3551 }
0x157e   :  { %2241 = vrot.lane.b32.xlu1 %v3552_v8, %s3671_s4  ;;  %v3554_v17 = vpop.eup %3553 }
0x157f   :  { %v2196_v18 = vadd.f32 1.0, %v3554_v17 }
0x1581   :  { %3555 = vrcp.f32 %v2196_v18  ;;  %v2223_v29 = vand.u32 2147483648, %v2196_v18  ;;  %vm2217_vm12 = vweird.f32 %v2196_v18  ;;  %v2221_v25 = vand.u32 2147483647, %v2196_v18 }
0x1583   :  { %v2224_v52 = vor.u32 1.1754944e-38, %v2223_v29  ;;  %vm2222_vm14 = vcmp.eq.f32.partialorder %v2221_v25, 8.507059e+37 }
0x1587   :  { %v3556_v5 = vpop.eup %3555 }
0x1588   :  { %v2213_v50 = vmul.f32 %v3556_v5, %v2196_v18  ;;  %vm2218_vm11 = vweird.f32 %v3556_v5 }
0x1589   :  { %vm2219_vm13 = vmor %vm2217_vm12, %vm2218_vm11 }
0x158a   :  { %v2214_v44 = vsub.f32 1.0, %v2213_v50 }
0x158c   :  { %v2215_v30 = vmul.f32 %v3556_v5, %v2214_v44 }
0x158e   :  { %v2216_v53 = vadd.f32 %v3556_v5, %v2215_v30 }
0x1598   :  { %v2178_v27 = vpop.permute.xlu1 %2177 }
0x1599   :  { %v2180_v24 = vmul.f32 %v2178_v27, %v2175_v43 }
0x159b   :  { %v4957_v12 = vadd.f32 %v2181_v32, %v2180_v24 }
0x159d   :  { %v4963_v28 = vsel %vm47_vm5, %v4957_v12, %v4893_v21  ;;  %v2220_v21 = vsel %vm2219_vm13, %v3556_v5, %v2216_v53  ;;  %v4999_v53 = vadd.f32 %v4881_v62, %v4857_v1 }
0x159e   :  { %2252 = vrot.lane.b32.xlu0 %v4963_v28, %s3671_s4  ;;  %v2225_v56 = vsel %vm2222_vm14, %v2224_v52, %v2220_v21 }
0x159f   :  { %v2239_v19 = vsub.f32 1.0, %v2225_v56  ;;  %v2245_v37 = vmul.f32 %v2225_v56, %v4926_v15 }
0x15f0   :  { %v2242_v23 = vpop.permute.xlu1 %2241 }
0x15f1   :  { %v2244_v41 = vmul.f32 %v2242_v23, %v2239_v19 }
0x15f3   :  { %v4968_v55 = vadd.f32 %v2245_v37, %v2244_v41 }
0x15f5   :  { %v4974_v9 = vsel %vm77_vm4, %v4968_v55, %v4926_v15  ;;  %v2250_v14 = vsel %vm77_vm4, %v4968_v55, 0.0 }
0x15f6   :  { %3356 = vmatmul.msk.f32.vlgmr.msra.gmra.mxu2 %vm480_vm1, %v4974_v9 }
0x15f7   :  { %2603 = vmatpush.msra.mxu2 %v4776_v47 }
0x15f9   :  { %2604 = vmatpush.msra.mxu2 %v4781_v16 }
0x15fb   :  { %2605 = vmatpush.msra.mxu2 %v4789_v39 }
0x15fd   :  { %2606 = vmatpush.msra.mxu2 %v4813_v35 }
0x1610   :  { %v2253_v0 = vpop.permute.xlu0 %2252 }
0x1611   :  { %3355 = vmatmul.msk.f32.vlgmr.msra.gmra.mxu3 %vm480_vm1, %v2253_v0 }
0x1612   :  { %2580 = vmatpush.msra.mxu3 %v4675_v58  ;;  %v4994_v58 = vadd.f32 %v4874_v46, %v4857_v1 }
0x1614   :  { %2581 = vmatpush.msra.mxu3 %v4694_v59 }
0x1616   :  { %2582 = vmatpush.msra.mxu3 %v4705_v34 }
0x1618   :  { %2583 = vmatpush.msra.mxu3 %v4717_v38 }
0x1679   :  { %v2296_v8 = vpop.f32.mrf.mxu2 }
0x167a   :  { %2340 = vrot.lane.b32.xlu0 %v2296_v8, %s3671_s4  ;;  %v2383_v32 = vadd.f32 %v2296_v8, %v4867_v26 }
0x1694   :  { %v2273_v43 = vpop.f32.mrf.mxu3 }
0x1695   :  { %v2319_v27 = vadd.f32 %v2273_v43, %v4835_v40  ;;  %v2299_v24 = vadd.f32 %v2273_v43, %v4994_v58 }
0x1697   :  { %2321 = vrot.lane.b32.xlu2 %v2319_v27, %s3669_s22  ;;  %v3357_v7 = vmul.f32 -1.442695, %v2299_v24 }
0x1699   :  { %3557 = vpow2.f32 %v3357_v7 }
0x169f   :  { %2385 = vrot.lane.b32.xlu2 %v2383_v32, %s3672_s13  ;;  %v3558_v51 = vpop.eup %3557 }
0x16a0   :  { %v2303_v17 = vadd.f32 1.0, %v3558_v51 }
0x16a2   :  { %3559 = vrcp.f32 %v2303_v17  ;;  %v2315_v29 = vand.u32 2147483648, %v2303_v17  ;;  %vm2309_vm8 = vweird.f32 %v2303_v17  ;;  %v2313_v25 = vand.u32 2147483647, %v2303_v17 }
0x16a4   :  { %v2316_v19 = vor.u32 1.1754944e-38, %v2315_v29  ;;  %vm2314_vm12 = vcmp.eq.f32.partialorder %v2313_v25, 8.507059e+37 }
0x16a8   :  { %v3560_v18 = vpop.eup %3559 }
0x16a9   :  { %v2305_v5 = vmul.f32 %v3560_v18, %v2303_v17  ;;  %vm2310_vm7 = vweird.f32 %v3560_v18 }
0x16aa   :  { %vm2311_vm11 = vmor %vm2309_vm8, %vm2310_vm7 }
0x16ab   :  { %v2306_v50 = vsub.f32 1.0, %v2305_v5 }
0x16ad   :  { %v2307_v44 = vmul.f32 %v3560_v18, %v2306_v50 }
0x16af   :  { %v2308_v30 = vadd.f32 %v3560_v18, %v2307_v44 }
0x16b1   :  { %v2312_v52 = vsel %vm2311_vm11, %v3560_v18, %v2308_v30 }
0x16b2   :  { %v2317_v37 = vsel %vm2314_vm12, %v2316_v19, %v2312_v52 }
0x16ec   :  { %v2341_v46 = vpop.permute.xlu0 %2340 }
0x16ed   :  { %v2343_v21 = vadd.f32 %v2341_v46, %v4999_v53 }
0x16ef   :  { %v3358_v56 = vmul.f32 -1.442695, %v2343_v21  ;;  %v1919_v21 = vadd.f32 %v4907_v20, %v4912_v33 }
0x16f1   :  { %3561 = vpow2.f32 %v3358_v56  ;;  %v2322_v23 = vpop.permute.xlu2 %2321 }
0x16f2   :  { %v2324_v41 = vmul.f32 %v2322_v23, %v2317_v37  ;;  %v2344_v23 = vadd.f32 %v2341_v46, %v1919_v21 }
0x16f4   :  { %2326 = vrot.lane.b32.xlu1 %v2324_v41, %s3669_s22  ;;  %v3359_v41 = vmul.f32 -1.442695, %v2344_v23  ;;  %v5039_v23 = vld [vmem:[%s5380_s7 + $0x18] sm:$0xff] }
0x16f7   :  { %v3562_v0 = vpop.eup %3561 }
0x16f8   :  { %v2351_v62 = vadd.f32 1.0, %v3562_v0 }
0x16f9   :  { %v2386_v50 = vpop.permute.xlu2 %2385 }
0x16fa   :  { %3563 = vrcp.f32 %v2351_v62  ;;  %v2364_v32 = vand.u32 2147483648, %v2351_v62  ;;  %v2362_v7 = vand.u32 2147483647, %v2351_v62  ;;  %vm2358_vm14 = vweird.f32 %v2351_v62 }
0x16fc   :  { %v2365_v17 = vor.u32 1.1754944e-38, %v2364_v32  ;;  %vm2363_vm8 = vcmp.eq.f32.partialorder %v2362_v7, 8.507059e+37  ;;  %v2337_v32 = vmul.f32 %v2317_v37, %v4963_v28 }
0x1700   :  { %v3564_v8 = vpop.eup %3563 }
0x1701   :  { %v2354_v43 = vmul.f32 %v3564_v8, %v2351_v62  ;;  %vm2359_vm13 = vweird.f32 %v3564_v8 }
0x1702   :  { %vm2360_vm7 = vmor %vm2358_vm14, %vm2359_vm13 }
0x1703   :  { %v2355_v27 = vsub.f32 1.0, %v2354_v43  ;;  %v2331_v43 = vsub.f32 1.0, %v2317_v37 }
0x1705   :  { %v2356_v24 = vmul.f32 %v3564_v8, %v2355_v27 }
0x1707   :  { %v2357_v51 = vadd.f32 %v3564_v8, %v2356_v24 }
0x1709   :  { %v2361_v18 = vsel %vm2360_vm7, %v3564_v8, %v2357_v51 }
0x170a   :  { %v2366_v5 = vsel %vm2363_vm8, %v2365_v17, %v2361_v18 }
0x170b   :  { %v2388_v44 = vmul.f32 %v2386_v50, %v2366_v5 }
0x170d   :  { %2390 = vrot.lane.b32.xlu1 %v2388_v44, %s3669_s22 }
0x1766   :  { %v2327_v30 = vpop.permute.xlu1 %2326 }
0x1767   :  { %v2329_v29 = vadd.f32 %v2327_v30, %v4994_v58 }
0x1769   :  { %3565 = vtanh.f32 %v2329_v29 }
0x176f   :  { %v3566_v25 = vpop.eup %3565 }
0x1770   :  { %2333 = vrot.lane.b32.xlu0 %v3566_v25, %s3671_s4 }
0x177f   :  { %v2391_v52 = vpop.permute.xlu1 %2390 }
0x1780   :  { %v2393_v56 = vadd.f32 %v2391_v52, %v1919_v21 }
0x1782   :  { %3567 = vtanh.f32 %v2393_v56 }
0x1783   :  { %3569 = vpow2.f32 %v3359_v41 }
0x1788   :  { %v3568_v19 = vpop.eup %3567 }
0x1789   :  { %2397 = vrot.lane.b32.xlu0 %v3568_v19, %s3671_s4  ;;  %v3570_v0 = vpop.eup %3569 }
0x178a   :  { %v2352_v62 = vadd.f32 1.0, %v3570_v0  ;;  %v5052_v0 = vadd.f32 %v4876_v13, %v4857_v1 }
0x178c   :  { %3571 = vrcp.f32 %v2352_v62  ;;  %v2379_v5 = vand.u32 2147483648, %v2352_v62  ;;  %vm2373_vm12 = vweird.f32 %v2352_v62  ;;  %v2377_v37 = vand.u32 2147483647, %v2352_v62 }
0x178e   :  { %v2380_v44 = vor.u32 1.1754944e-38, %v2379_v5  ;;  %vm2378_vm14 = vcmp.eq.f32.partialorder %v2377_v37, 8.507059e+37 }
0x1792   :  { %v3572_v8 = vpop.eup %3571 }
0x1793   :  { %v2369_v7 = vmul.f32 %v3572_v8, %v2352_v62  ;;  %vm2374_vm11 = vweird.f32 %v3572_v8  ;;  %v5057_v62 = vadd.f32 %v4878_v48, %v4857_v1 }
0x1794   :  { %vm2375_vm13 = vmor %vm2373_vm12, %vm2374_vm11 }
0x1795   :  { %v2370_v46 = vsub.f32 1.0, %v2369_v7 }
0x1797   :  { %v2371_v17 = vmul.f32 %v3572_v8, %v2370_v46 }
0x1799   :  { %v2372_v18 = vadd.f32 %v3572_v8, %v2371_v17 }
0x179b   :  { %v2376_v50 = vsel %vm2375_vm13, %v3572_v8, %v2372_v18 }
0x179c   :  { %v2381_v30 = vsel %vm2378_vm14, %v2380_v44, %v2376_v50 }
0x179d   :  { %v2395_v29 = vsub.f32 1.0, %v2381_v30 }
0x17e2   :  { %v2334_v27 = vpop.permute.xlu0 %2333 }
0x17e3   :  { %v2336_v24 = vmul.f32 %v2334_v27, %v2331_v43 }
0x17e5   :  { %v5010_v20 = vadd.f32 %v2337_v32, %v2336_v24 }
0x17e7   :  { %v5016_v51 = vsel %vm53_vm10, %v5010_v20, %v4963_v28  ;;  %v2401_v28 = vmul.f32 %v2381_v30, %v4974_v9 }
0x17e8   :  { %2408 = vrot.lane.b32.xlu2 %v5016_v51, %s3671_s4 }
0x17fb   :  { %v2398_v25 = vpop.permute.xlu0 %2397 }
0x17fc   :  { %v2400_v21 = vmul.f32 %v2398_v25, %v2395_v29 }
0x17fe   :  { %v5021_v52 = vadd.f32 %v2401_v28, %v2400_v21 }
0x1800   :  { %v5027_v56 = vsel %vm71_vm9, %v5021_v52, %v4974_v9  ;;  %v2406_v45 = vsel %vm71_vm9, %v5021_v52, 0.0 }
0x1801   :  { %3361 = vmatmul.msk.f32.vlgmr.msrb.gmra.mxu2 %vm480_vm1, %v5027_v56 }
0x1802   :  { %2759 = vmatpush.msrb.mxu2 %v4776_v47 }
0x1804   :  { %2760 = vmatpush.msrb.mxu2 %v4781_v16 }
0x1806   :  { %2761 = vmatpush.msrb.mxu2 %v4789_v39 }
0x1808   :  { %2762 = vmatpush.msrb.mxu2 %v4813_v35 }
0x1842   :  { %v2409_v19 = vpop.permute.xlu2 %2408 }
0x1843   :  { %3360 = vmatmul.msk.f32.vlgmr.msrb.gmra.mxu3 %vm480_vm1, %v2409_v19 }
0x1844   :  { %2736 = vmatpush.msrb.mxu3 %v5039_v23 }
0x1846   :  { %2737 = vmatpush.msrb.mxu3 %v4694_v59 }
0x1848   :  { %2738 = vmatpush.msrb.mxu3 %v4705_v34 }
0x184a   :  { %2739 = vmatpush.msrb.mxu3 %v4717_v38 }
0x1884   :  { %v2452_v47 = vpop.f32.mrf.mxu2 }
0x1885   :  { %2496 = vrot.lane.b32.xlu2 %v2452_v47, %s3671_s4  ;;  %v2539_v41 = vadd.f32 %v2452_v47, %v4867_v26 }
0x18c6   :  { %v2429_v16 = vpop.f32.mrf.mxu3 }
0x18c7   :  { %v2475_v9 = vadd.f32 %v2429_v16, %v4835_v40  ;;  %v2455_v59 = vadd.f32 %v2429_v16, %v5052_v0 }
0x18c9   :  { %2477 = vrot.lane.b32.xlu1 %v2475_v9, %s3669_s22  ;;  %v3362_v34 = vmul.f32 -1.442695, %v2455_v59 }
0x18cb   :  { %3573 = vpow2.f32 %v3362_v34 }
0x18d1   :  { %2541 = vrot.lane.b32.xlu1 %v2539_v41, %s3672_s13  ;;  %v3574_v27 = vpop.eup %3573 }
0x18d2   :  { %v2459_v32 = vadd.f32 1.0, %v3574_v27  ;;  %v1916_v27 = vadd.f32 %v4905_v3, %v4912_v33 }
0x18d4   :  { %v2471_v48 = vand.u32 2147483648, %v2459_v32  ;;  %vm2465_vm8 = vweird.f32 %v2459_v32  ;;  %v2469_v44 = vand.u32 2147483647, %v2459_v32 }
0x18d6   :  { %v2472_v25 = vor.u32 1.1754944e-38, %v2471_v48  ;;  %vm2470_vm12 = vcmp.eq.f32.partialorder %v2469_v44, 8.507059e+37 }
0x18df   :  { %v2497_v38 = vpop.permute.xlu2 %2496 }
0x18e0   :  { %v2499_v8 = vadd.f32 %v2497_v38, %v5057_v62 }
0x18e2   :  { %v3363_v43 = vmul.f32 -1.442695, %v2499_v8 }
0x18e4   :  { %3575 = vpow2.f32 %v3363_v43 }
0x18e5   :  { %3577 = vrcp.f32 %v2459_v32 }
0x18ea   :  { %v3576_v24 = vpop.eup %3575 }
0x18eb   :  { %v2507_v7 = vadd.f32 1.0, %v3576_v24  ;;  %v3578_v13 = vpop.eup %3577 }
0x18ec   :  { %v2461_v46 = vmul.f32 %v3578_v13, %v2459_v32  ;;  %vm2466_vm7 = vweird.f32 %v3578_v13 }
0x18ed   :  { %3579 = vrcp.f32 %v2507_v7  ;;  %vm2467_vm11 = vmor %vm2465_vm8, %vm2466_vm7  ;;  %v2520_v16 = vand.u32 2147483648, %v2507_v7  ;;  %vm2514_vm14 = vweird.f32 %v2507_v7  ;;  %v2518_v9 = vand.u32 2147483647, %v2507_v7 }
0x18ee   :  { %v2462_v17 = vsub.f32 1.0, %v2461_v46 }
0x18ef   :  { %v2521_v59 = vor.u32 1.1754944e-38, %v2520_v16  ;;  %vm2519_vm7 = vcmp.eq.f32.partialorder %v2518_v9, 8.507059e+37 }
0x18f0   :  { %v2463_v5 = vmul.f32 %v3578_v13, %v2462_v17 }
0x18f2   :  { %v2464_v50 = vadd.f32 %v3578_v13, %v2463_v5 }
0x18f3   :  { %v3580_v18 = vpop.eup %3579 }
0x18f4   :  { %v2510_v37 = vmul.f32 %v3580_v18, %v2507_v7  ;;  %v2468_v30 = vsel %vm2467_vm11, %v3578_v13, %v2464_v50  ;;  %vm2515_vm13 = vweird.f32 %v3580_v18 }
0x18f5   :  { %v5060_v28 = vsel %vm2470_vm12, %v2472_v25, %v2468_v30  ;;  %vm2516_vm0 = vmor %vm2514_vm14, %vm2515_vm13 }
0x18f6   :  { %v2511_v1 = vsub.f32 1.0, %v2510_v37 }
0x18f8   :  { %v2512_v29 = vmul.f32 %v3580_v18, %v2511_v1 }
0x18fa   :  { %v2513_v47 = vadd.f32 %v3580_v18, %v2512_v29 }
0x18fc   :  { %v2517_v41 = vsel %vm2516_vm0, %v3580_v18, %v2513_v47  ;;  %v2500_v18 = vadd.f32 %v2497_v38, %v1916_v27 }
0x18fd   :  { %v2522_v34 = vsel %vm2519_vm7, %v2521_v59, %v2517_v41 }
0x18fe   :  { %v3364_v5 = vmul.f32 -1.442695, %v2500_v18 }
0x193b   :  { %v2478_v21 = vpop.permute.xlu1 %2477 }
0x193c   :  { %v2480_v19 = vmul.f32 %v2478_v21, %v5060_v28 }
0x193e   :  { %2482 = vrot.lane.b32.xlu0 %v2480_v19, %s3669_s22 }
0x1943   :  { %v2542_v8 = vpop.permute.xlu1 %2541 }
0x1944   :  { %v2544_v43 = vmul.f32 %v2542_v8, %v2522_v34  ;;  %v5084_v8 = vld [vmem:[%s5380_s7 + $0x38] sm:$0xff] }
0x1946   :  { %2546 = vrot.lane.b32.xlu2 %v2544_v43, %s3669_s22  ;;  %v5090_v43 = vld [vmem:[%s5380_s7 + $0x30] sm:$0xff] }
0x19a0   :  { %v2547_v32 = vpop.permute.xlu2 %2546 }
0x19a1   :  { %v2549_v24 = vadd.f32 %v2547_v32, %v1916_v27  ;;  %v2493_v32 = vmul.f32 %v5060_v28, %v5016_v51 }
0x19a3   :  { %3581 = vtanh.f32 %v2549_v24 }
0x19a9   :  { %v3582_v13 = vpop.eup %3581 }
0x19aa   :  { %2553 = vrot.lane.b32.xlu1 %v3582_v13, %s3671_s4 }
0x19b0   :  { %v2483_v46 = vpop.permute.xlu0 %2482 }
0x19b1   :  { %v2485_v7 = vadd.f32 %v2483_v46, %v5052_v0 }
0x19b3   :  { %3583 = vtanh.f32 %v2485_v7 }
0x19b4   :  { %3585 = vpow2.f32 %v3364_v5 }
0x19b9   :  { %v3584_v17 = vpop.eup %3583 }
0x19ba   :  { %2489 = vrot.lane.b32.xlu0 %v3584_v17, %s3671_s4  ;;  %v3586_v37 = vpop.eup %3585 }
0x19bb   :  { %v2508_v50 = vadd.f32 1.0, %v3586_v37 }
0x19bd   :  { %3587 = vrcp.f32 %v2508_v50  ;;  %v2535_v29 = vand.u32 2147483648, %v2508_v50  ;;  %vm2529_vm8 = vweird.f32 %v2508_v50  ;;  %v2533_v25 = vand.u32 2147483647, %v2508_v50 }
0x19bf   :  { %v2536_v19 = vor.u32 1.1754944e-38, %v2535_v29  ;;  %vm2534_vm12 = vcmp.eq.f32.partialorder %v2533_v25, 8.507059e+37 }
0x19c3   :  { %v3588_v3 = vpop.eup %3587 }
0x19c4   :  { %v2525_v1 = vmul.f32 %v3588_v3, %v2508_v50  ;;  %vm2530_vm0 = vweird.f32 %v3588_v3 }
0x19c5   :  { %vm2531_vm11 = vmor %vm2529_vm8, %vm2530_vm0 }
0x19c6   :  { %v2526_v48 = vsub.f32 1.0, %v2525_v1 }
0x19c8   :  { %v2527_v44 = vmul.f32 %v3588_v3, %v2526_v48 }
0x19ca   :  { %v2528_v30 = vadd.f32 %v3588_v3, %v2527_v44 }
0x19cc   :  { %v2532_v21 = vsel %vm2531_vm11, %v3588_v3, %v2528_v30 }
0x19cd   :  { %v2537_v47 = vsel %vm2534_vm12, %v2536_v19, %v2532_v21 }
0x19ce   :  { %v2551_v38 = vsub.f32 1.0, %v2537_v47  ;;  %v2557_v9 = vmul.f32 %v2537_v47, %v5027_v56 }
0x1a1c   :  { %v2554_v16 = vpop.permute.xlu1 %2553 }
0x1a1d   :  { %v2556_v41 = vmul.f32 %v2554_v16, %v2551_v38 }
0x1a1f   :  { %v5071_v59 = vadd.f32 %v2557_v9, %v2556_v41 }
0x1a21   :  { %v5077_v34 = vsel %vm65_vm3, %v5071_v59, %v5027_v56  ;;  %v2487_v56 = vsub.f32 1.0, %v5060_v28  ;;  %v5125_v28 = vld [vmem:[%s5380_s7] sm:$0xff] }
0x1a22   :  { %3366 = vmatmul.msk.f32.vlgmr.msra.gmra.mxu2 %vm480_vm1, %v5077_v34 }
0x1a23   :  { %2915 = vmatpush.msra.mxu2 %v5084_v8 }
0x1a25   :  { %2916 = vmatpush.msra.mxu2 %v5090_v43 }
0x1a27   :  { %2917 = vmatpush.msra.mxu2 %v4789_v39 }
0x1a29   :  { %2918 = vmatpush.msra.mxu2 %v4813_v35  ;;  %v5113_v35 = vld [vmem:[%s5380_s7 + $0x10] sm:$0xff] }
0x1a2c   :  { %v2490_v27 = vpop.permute.xlu0 %2489 }
0x1a2d   :  { %v2492_v24 = vmul.f32 %v2490_v27, %v2487_v56 }
0x1a2f   :  { %v5098_v13 = vadd.f32 %v2493_v32, %v2492_v24 }
0x1a31   :  { %v5104_v46 = vsel %vm59_vm6, %v5098_v13, %v5016_v51  ;;  %v5119_v51 = vld [vmem:[%s5380_s7 + $0x8] sm:$0xff] }
0x1a32   :  { %2564 = vrot.lane.b32.xlu2 %v5104_v46, %s3671_s4 }
0x1a8c   :  { %v2565_v39 = vpop.permute.xlu2 %2564 }
0x1a8d   :  { %3365 = vmatmul.msk.f32.vlgmr.msra.gmra.mxu3 %vm480_vm1, %v2565_v39 }
0x1a8e   :  { %2892 = vmatpush.msra.mxu3 %v5039_v23 }
0x1a90   :  { %2893 = vmatpush.msra.mxu3 %v5113_v35 }
0x1a92   :  { %2894 = vmatpush.msra.mxu3 %v5119_v51 }
0x1a94   :  { %2895 = vmatpush.msra.mxu3 %v5125_v28 }
0x1aa5   :  { %v2608_v7 = vpop.f32.mrf.mxu2 }
0x1aa6   :  { %v2695_v17 = vadd.f32 %v2608_v7, %v4867_v26  ;;  %2652 = vrot.lane.b32.xlu1 %v2608_v7, %s3671_s4 }
0x1aa8   :  { %2697 = vrot.lane.b32.xlu2 %v2695_v17, %s3672_s13 }
0x1b02   :  { %v2698_v9 = vpop.permute.xlu2 %2697 }
0x1b10   :  { %v2585_v18 = vpop.f32.mrf.mxu3 }
0x1b11   :  { %v2631_v5 = vadd.f32 %v2585_v18, %v4835_v40  ;;  %v2611_v56 = vadd.f32 %v2585_v18, %v5057_v62 }
0x1b13   :  { %2633 = vrot.lane.b32.xlu0 %v2631_v5, %s3669_s22  ;;  %v3367_v27 = vmul.f32 -1.442695, %v2611_v56 }
0x1b18   :  { %v2653_v37 = vpop.permute.xlu1 %2652 }
0x1b19   :  { %v2655_v50 = vadd.f32 %v2653_v37, %v5052_v0 }
0x1b1b   :  { %v3368_v3 = vmul.f32 -1.442695, %v2655_v50 }
0x1b1d   :  { %3589 = vpow2.f32 %v3368_v3 }
0x1b23   :  { %v3590_v1 = vpop.eup %3589 }
0x1b24   :  { %v2663_v48 = vadd.f32 1.0, %v3590_v1 }
0x1b26   :  { %3591 = vrcp.f32 %v2663_v48  ;;  %v2676_v25 = vand.u32 2147483648, %v2663_v48  ;;  %v2674_v19 = vand.u32 2147483647, %v2663_v48  ;;  %vm2670_vm14 = vweird.f32 %v2663_v48 }
0x1b27   :  { %3593 = vpow2.f32 %v3367_v27 }
0x1b28   :  { %v2677_v38 = vor.u32 1.1754944e-38, %v2676_v25  ;;  %vm2675_vm0 = vcmp.eq.f32.partialorder %v2674_v19, 8.507059e+37  ;;  %v1913_v25 = vadd.f32 %v4903_v31, %v4912_v33 }
0x1b2c   :  { %v3592_v44 = vpop.eup %3591 }
0x1b2d   :  { %v2666_v30 = vmul.f32 %v3592_v44, %v2663_v48  ;;  %vm2671_vm13 = vweird.f32 %v3592_v44  ;;  %v3594_v32 = vpop.eup %3593 }
0x1b2e   :  { %vm2672_vm7 = vmor %vm2670_vm14, %vm2671_vm13  ;;  %v2615_v24 = vadd.f32 1.0, %v3594_v32 }
0x1b2f   :  { %v2667_v29 = vsub.f32 1.0, %v2666_v30 }
0x1b30   :  { %3595 = vrcp.f32 %v2615_v24  ;;  %v2627_v3 = vand.u32 2147483648, %v2615_v24  ;;  %vm2621_vm11 = vweird.f32 %v2615_v24  ;;  %v2625_v1 = vand.u32 2147483647, %v2615_v24 }
0x1b31   :  { %v2668_v21 = vmul.f32 %v3592_v44, %v2667_v29 }
0x1b32   :  { %vm2626_vm13 = vcmp.eq.f32.partialorder %v2625_v1, 8.507059e+37 }
0x1b33   :  { %v2669_v47 = vadd.f32 %v3592_v44, %v2668_v21 }
0x1b35   :  { %v2673_v16 = vsel %vm2672_vm7, %v3592_v44, %v2669_v47  ;;  %v2628_v44 = vor.u32 1.1754944e-38, %v2627_v3 }
0x1b36   :  { %v2678_v0 = vsel %vm2675_vm0, %v2677_v38, %v2673_v16  ;;  %v3596_v39 = vpop.eup %3595  ;;  %v2656_v38 = vadd.f32 %v2653_v37, %v1913_v25 }
0x1b37   :  { %v2700_v41 = vmul.f32 %v2698_v9, %v2678_v0  ;;  %v2617_v7 = vmul.f32 %v3596_v39, %v2615_v24  ;;  %vm2622_vm8 = vweird.f32 %v3596_v39 }
0x1b38   :  { %vm2623_vm12 = vmor %vm2621_vm11, %vm2622_vm8  ;;  %v3369_v16 = vmul.f32 -1.442695, %v2656_v38 }
0x1b39   :  { %2702 = vrot.lane.b32.xlu1 %v2700_v41, %s3669_s22  ;;  %v2618_v17 = vsub.f32 1.0, %v2617_v7 }
0x1b3b   :  { %v2619_v5 = vmul.f32 %v3596_v39, %v2618_v17 }
0x1b3d   :  { %v2620_v50 = vadd.f32 %v3596_v39, %v2619_v5 }
0x1b3f   :  { %v2624_v48 = vsel %vm2623_vm12, %v3596_v39, %v2620_v50 }
0x1b40   :  { %v2629_v18 = vsel %vm2626_vm13, %v2628_v44, %v2624_v48 }
0x1b85   :  { %v2634_v30 = vpop.permute.xlu0 %2633 }
0x1b86   :  { %v2636_v29 = vmul.f32 %v2634_v30, %v2629_v18 }
0x1b88   :  { %2638 = vrot.lane.b32.xlu0 %v2636_v29, %s3669_s22 }
0x1bab   :  { %v2703_v21 = vpop.permute.xlu1 %2702 }
0x1bac   :  { %v2705_v19 = vadd.f32 %v2703_v21, %v1913_v25  ;;  %v3667_v25 = vld [vmem:[%s5380_s7 + $0x28] sm:$0xff]  ;;  %v3668_v21 = vld [vmem:[%s5380_s7 + $0x20] sm:$0xff] }
0x1bae   :  { %3597 = vtanh.f32 %v2705_v19  ;;  %v2643_v19 = vsub.f32 1.0, %v2629_v18 }
0x1baf   :  { %3599 = vpow2.f32 %v3369_v16 }
0x1bb4   :  { %v3598_v47 = vpop.eup %3597 }
0x1bb5   :  { %2709 = vrot.lane.b32.xlu0 %v3598_v47, %s3671_s4  ;;  %v3600_v41 = vpop.eup %3599  ;;  %v2649_v47 = vmul.f32 %v2629_v18, %v5104_v46 }
0x1bb6   :  { %v2664_v27 = vadd.f32 1.0, %v3600_v41 }
0x1bb8   :  { %v2691_v17 = vand.u32 2147483648, %v2664_v27  ;;  %vm2685_vm7 = vweird.f32 %v2664_v27  ;;  %v2689_v37 = vand.u32 2147483647, %v2664_v27 }
0x1bba   :  { %v2692_v50 = vor.u32 1.1754944e-38, %v2691_v17  ;;  %vm2690_vm8 = vcmp.eq.f32.partialorder %v2689_v37, 8.507059e+37 }
0x1bfa   :  { %v2639_v9 = vpop.permute.xlu0 %2638 }
0x1bfb   :  { %v2641_v0 = vadd.f32 %v2639_v9, %v5057_v62 }
0x1bfd   :  { %3601 = vtanh.f32 %v2641_v0 }
0x1bfe   :  { %3603 = vrcp.f32 %v2664_v27 }
0x1c03   :  { %v3602_v56 = vpop.eup %3601 }
0x1c04   :  { %2645 = vrot.lane.b32.xlu2 %v3602_v56, %s3671_s4  ;;  %v3604_v31 = vpop.eup %3603 }
0x1c05   :  { %v2681_v32 = vmul.f32 %v3604_v31, %v2664_v27  ;;  %vm2686_vm14 = vweird.f32 %v3604_v31 }
0x1c06   :  { %vm2687_vm0 = vmor %vm2685_vm7, %vm2686_vm14 }
0x1c07   :  { %v2682_v24 = vsub.f32 1.0, %v2681_v32 }
0x1c09   :  { %v2683_v39 = vmul.f32 %v3604_v31, %v2682_v24 }
0x1c0b   :  { %v2684_v7 = vadd.f32 %v3604_v31, %v2683_v39 }
0x1c0d   :  { %v2688_v5 = vsel %vm2687_vm0, %v3604_v31, %v2684_v7 }
0x1c0e   :  { %v2693_v62 = vsel %vm2690_vm8, %v2692_v50, %v2688_v5 }
0x1c0f   :  { %v2707_v3 = vsub.f32 1.0, %v2693_v62  ;;  %v2713_v48 = vmul.f32 %v2693_v62, %v5077_v34 }
0x1c27   :  { %v2710_v1 = vpop.permute.xlu0 %2709 }
0x1c28   :  { %v2712_v44 = vmul.f32 %v2710_v1, %v2707_v3 }
0x1c2a   :  { %v5143_v30 = vadd.f32 %v2713_v48, %v2712_v44 }
0x1c2c   :  { %v5149_v29 = vsel %vm59_vm6, %v5143_v30, %v5077_v34 }
0x1c2d   :  { %3371 = vmatmul.msk.f32.vlgmr.msrb.gmra.mxu2 %vm480_vm1, %v5149_v29 }
0x1c2e   :  { %3071 = vmatpush.msrb.mxu2 %v5084_v8 }
0x1c30   :  { %3072 = vmatpush.msrb.mxu2 %v5090_v43 }
0x1c32   :  { %3073 = vmatpush.msrb.mxu2 %v3667_v25 }
0x1c34   :  { %3074 = vmatpush.msrb.mxu2 %v3668_v21 }
0x1c5e   :  { %v2646_v34 = vpop.permute.xlu2 %2645 }
0x1c5f   :  { %v2648_v38 = vmul.f32 %v2646_v34, %v2643_v19 }
0x1c61   :  { %v5162_v16 = vadd.f32 %v2649_v47, %v2648_v38 }
0x1c63   :  { %v5168_v8 = vsel %vm65_vm3, %v5162_v16, %v5104_v46  ;;  %v2717_v10 = vsel %vm65_vm3, %v5162_v16, 0.0 }
0x1c64   :  { %2720 = vrot.lane.b32.xlu1 %v5168_v8, %s3671_s4 }
0x1cb0   :  { %v2764_v43 = vpop.f32.mrf.mxu2 }
0x1cb1   :  { %v2851_v9 = vadd.f32 %v2764_v43, %v4867_v26  ;;  %2808 = vrot.lane.b32.xlu2 %v2764_v43, %s3671_s4 }
0x1cb3   :  { %2853 = vrot.lane.b32.xlu1 %v2851_v9, %s3672_s13 }
0x1cd6   :  { %v2721_v18 = vpop.permute.xlu1 %2720 }
0x1cd7   :  { %3370 = vmatmul.msk.f32.vlgmr.msrb.gmra.mxu3 %vm480_vm1, %v2721_v18 }
0x1cd8   :  { %3048 = vmatpush.msrb.mxu3 %v5039_v23 }
0x1cda   :  { %3049 = vmatpush.msrb.mxu3 %v5113_v35 }
0x1cdc   :  { %3050 = vmatpush.msrb.mxu3 %v5119_v51 }
0x1cde   :  { %3051 = vmatpush.msrb.mxu3 %v5125_v28 }
0x1d0b   :  { %v2809_v46 = vpop.permute.xlu2 %2808 }
0x1d0c   :  { %v2811_v0 = vadd.f32 %v2809_v46, %v4994_v58 }
0x1d0e   :  { %v3373_v41 = vmul.f32 -1.442695, %v2811_v0 }
0x1d10   :  { %3605 = vpow2.f32 %v3373_v41 }
0x1d16   :  { %v3606_v56 = vpop.eup %3605 }
0x1d17   :  { %v2819_v27 = vadd.f32 1.0, %v3606_v56  ;;  %v1910_v56 = vadd.f32 %v4901_v63, %v4912_v33 }
0x1d19   :  { %3607 = vrcp.f32 %v2819_v27  ;;  %v2832_v23 = vand.u32 2147483648, %v2819_v27  ;;  %vm2826_vm12 = vweird.f32 %v2819_v27  ;;  %v2830_v51 = vand.u32 2147483647, %v2819_v27 }
0x1d1b   :  { %v2833_v58 = vor.u32 1.1754944e-38, %v2832_v23  ;;  %vm2831_vm14 = vcmp.eq.f32.partialorder %v2830_v51, 8.507059e+37 }
0x1d1f   :  { %v3608_v31 = vpop.eup %3607 }
0x1d20   :  { %v2822_v32 = vmul.f32 %v3608_v31, %v2819_v27  ;;  %vm2827_vm11 = vweird.f32 %v3608_v31 }
0x1d21   :  { %vm2828_vm13 = vmor %vm2826_vm12, %vm2827_vm11 }
0x1d22   :  { %v2823_v24 = vsub.f32 1.0, %v2822_v32 }
0x1d24   :  { %v2824_v39 = vmul.f32 %v3608_v31, %v2823_v24  ;;  %v2812_v24 = vadd.f32 %v2809_v46, %v1910_v56 }
0x1d25   :  { %v2854_v5 = vpop.permute.xlu1 %2853 }
0x1d26   :  { %v2825_v7 = vadd.f32 %v3608_v31, %v2824_v39  ;;  %v3374_v39 = vmul.f32 -1.442695, %v2812_v24 }
0x1d28   :  { %v2829_v17 = vsel %vm2828_vm13, %v3608_v31, %v2825_v7 }
0x1d29   :  { %v2834_v37 = vsel %vm2831_vm14, %v2833_v58, %v2829_v17 }
0x1d2a   :  { %v2856_v50 = vmul.f32 %v2854_v5, %v2834_v37 }
0x1d5a   :  { %v2741_v35 = vpop.f32.mrf.mxu3 }
0x1d5b   :  { %v2787_v28 = vadd.f32 %v2741_v35, %v4835_v40  ;;  %v2767_v62 = vadd.f32 %v2741_v35, %v4999_v53 }
0x1d5d   :  { %2789 = vrot.lane.b32.xlu0 %v2787_v28, %s3669_s22  ;;  %v3372_v3 = vmul.f32 -1.442695, %v2767_v62 }
0x1d5f   :  { %3609 = vpow2.f32 %v3372_v3 }
0x1d65   :  { %2858 = vrot.lane.b32.xlu0 %v2856_v50, %s3669_s22  ;;  %v3610_v1 = vpop.eup %3609 }
0x1d66   :  { %v2771_v48 = vadd.f32 1.0, %v3610_v1 }
0x1d68   :  { %3611 = vrcp.f32 %v2771_v48  ;;  %v2783_v47 = vand.u32 2147483648, %v2771_v48  ;;  %vm2777_vm0 = vweird.f32 %v2771_v48  ;;  %v2781_v38 = vand.u32 2147483647, %v2771_v48 }
0x1d6a   :  { %v2784_v9 = vor.u32 1.1754944e-38, %v2783_v47  ;;  %vm2782_vm11 = vcmp.eq.f32.partialorder %v2781_v38, 8.507059e+37 }
0x1d6e   :  { %v3612_v44 = vpop.eup %3611 }
0x1d6f   :  { %v2773_v25 = vmul.f32 %v3612_v44, %v2771_v48  ;;  %vm2778_vm7 = vweird.f32 %v3612_v44 }
0x1d70   :  { %vm2779_vm8 = vmor %vm2777_vm0, %vm2778_vm7 }
0x1d71   :  { %v2774_v21 = vsub.f32 1.0, %v2773_v25 }
0x1d73   :  { %v2775_v19 = vmul.f32 %v3612_v44, %v2774_v21 }
0x1d75   :  { %v2776_v34 = vadd.f32 %v3612_v44, %v2775_v19 }
0x1d77   :  { %v2780_v43 = vsel %vm2779_vm8, %v3612_v44, %v2776_v34 }
0x1d78   :  { %v2785_v0 = vsel %vm2782_vm11, %v2784_v9, %v2780_v43 }
0x1d79   :  { %v2799_v34 = vsub.f32 1.0, %v2785_v0  ;;  %v2805_v38 = vmul.f32 %v2785_v0, %v5168_v8 }
0x1dcf   :  { %v2790_v18 = vpop.permute.xlu0 %2789 }
0x1dd0   :  { %v2792_v41 = vmul.f32 %v2790_v18, %v2785_v0 }
0x1dd2   :  { %2794 = vrot.lane.b32.xlu2 %v2792_v41, %s3669_s22 }
0x1dd7   :  { %v2859_v27 = vpop.permute.xlu0 %2858 }
0x1dd8   :  { %v2861_v31 = vadd.f32 %v2859_v27, %v1910_v56 }
0x1dda   :  { %3613 = vtanh.f32 %v2861_v31 }
0x1ddb   :  { %3615 = vpow2.f32 %v3374_v39 }
0x1de0   :  { %v3614_v32 = vpop.eup %3613 }
0x1de1   :  { %2865 = vrot.lane.b32.xlu2 %v3614_v32, %s3671_s4  ;;  %v3616_v7 = vpop.eup %3615 }
0x1de2   :  { %v2820_v23 = vadd.f32 1.0, %v3616_v7 }
0x1de4   :  { %3617 = vrcp.f32 %v2820_v23  ;;  %v2847_v5 = vand.u32 2147483648, %v2820_v23  ;;  %vm2841_vm13 = vweird.f32 %v2820_v23  ;;  %v2845_v50 = vand.u32 2147483647, %v2820_v23 }
0x1de6   :  { %v2848_v3 = vor.u32 1.1754944e-38, %v2847_v5  ;;  %vm2846_vm7 = vcmp.eq.f32.partialorder %v2845_v50, 8.507059e+37 }
0x1dea   :  { %v3618_v35 = vpop.eup %3617 }
0x1deb   :  { %v2837_v51 = vmul.f32 %v3618_v35, %v2820_v23  ;;  %vm2842_vm12 = vweird.f32 %v3618_v35 }
0x1dec   :  { %vm2843_vm14 = vmor %vm2841_vm13, %vm2842_vm12 }
0x1ded   :  { %v2838_v28 = vsub.f32 1.0, %v2837_v51 }
0x1def   :  { %v2839_v58 = vmul.f32 %v3618_v35, %v2838_v28 }
0x1df1   :  { %v2840_v63 = vadd.f32 %v3618_v35, %v2839_v58 }
0x1df3   :  { %v2844_v46 = vsel %vm2843_vm14, %v3618_v35, %v2840_v63 }
0x1df4   :  { %v2849_v1 = vsel %vm2846_vm7, %v2848_v3, %v2844_v46 }
0x1df5   :  { %v2863_v48 = vsub.f32 1.0, %v2849_v1  ;;  %v2869_v25 = vmul.f32 %v2849_v1, %v5149_v29 }
0x1e2c   :  { %v2795_v17 = vpop.permute.xlu2 %2794 }
0x1e2d   :  { %v2797_v37 = vadd.f32 %v2795_v17, %v4999_v53 }
0x1e2f   :  { %3619 = vtanh.f32 %v2797_v37 }
0x1e35   :  { %v3620_v62 = vpop.eup %3619 }
0x1e36   :  { %2801 = vrot.lane.b32.xlu1 %v3620_v62, %s3671_s4 }
0x1e3b   :  { %v2866_v44 = vpop.permute.xlu2 %2865 }
0x1e3c   :  { %v2868_v21 = vmul.f32 %v2866_v44, %v2863_v48 }
0x1e3e   :  { %v5192_v53 = vadd.f32 %v2869_v25, %v2868_v21 }
0x1e40   :  { %v5198_v19 = vsel %vm53_vm10, %v5192_v53, %v5149_v29 }
0x1e41   :  { %3376 = vmatmul.msk.f32.vlgmr.msra.gmra.mxu2 %vm480_vm1, %v5198_v19 }
0x1ea8   :  { %v2802_v47 = vpop.permute.xlu1 %2801 }
0x1ea9   :  { %v2804_v43 = vmul.f32 %v2802_v47, %v2799_v34 }
0x1eab   :  { %v5203_v9 = vadd.f32 %v2805_v38, %v2804_v43 }
0x1ead   :  { %v5209_v18 = vsel %vm71_vm9, %v5203_v9, %v5168_v8 }
0x1eae   :  { %2876 = vrot.lane.b32.xlu0 %v5209_v18, %s3671_s4 }
0x1ec4   :  { %v2920_v29 = vpop.f32.mrf.mxu2 }
0x1ec5   :  { %v3007_v41 = vadd.f32 %v2920_v29, %v4867_v26  ;;  %2964 = vrot.lane.b32.xlu1 %v2920_v29, %s3671_s4 }
0x1ec7   :  { %3009 = vrot.lane.b32.xlu0 %v3007_v41, %s3672_s13 }
0x1f20   :  { %v2877_v0 = vpop.permute.xlu0 %2876 }
0x1f21   :  { %3375 = vmatmul.msk.f32.vlgmr.msra.gmra.mxu3 %vm480_vm1, %v2877_v0 }
0x1f37   :  { %v2965_v56 = vpop.permute.xlu1 %2964 }
0x1f38   :  { %v2967_v27 = vadd.f32 %v2965_v56, %v4941_v60 }
0x1f39   :  { %v3010_v5 = vpop.permute.xlu0 %3009 }
0x1f3a   :  { %v3378_v31 = vmul.f32 -1.442695, %v2967_v27 }
0x1f3c   :  { %3621 = vpow2.f32 %v3378_v31  ;;  %v1907_v31 = vadd.f32 %v4899_v11, %v4912_v33 }
0x1f42   :  { %v3622_v8 = vpop.eup %3621 }
0x1f43   :  { %v2975_v32 = vadd.f32 1.0, %v3622_v8 }
0x1f45   :  { %3623 = vrcp.f32 %v2975_v32  ;;  %v2988_v51 = vand.u32 2147483648, %v2975_v32  ;;  %vm2982_vm8 = vweird.f32 %v2975_v32  ;;  %v2986_v17 = vand.u32 2147483647, %v2975_v32 }
0x1f47   :  { %v2989_v60 = vor.u32 1.1754944e-38, %v2988_v51  ;;  %vm2987_vm12 = vcmp.eq.f32.partialorder %v2986_v17, 8.507059e+37 }
0x1f4b   :  { %v3624_v24 = vpop.eup %3623 }
0x1f4c   :  { %v2978_v39 = vmul.f32 %v3624_v24, %v2975_v32  ;;  %vm2983_vm0 = vweird.f32 %v3624_v24 }
0x1f4d   :  { %vm2984_vm11 = vmor %vm2982_vm8, %vm2983_vm0 }
0x1f4e   :  { %v2979_v7 = vsub.f32 1.0, %v2978_v39  ;;  %v2968_v39 = vadd.f32 %v2965_v56, %v1907_v31 }
0x1f50   :  { %v2980_v23 = vmul.f32 %v3624_v24, %v2979_v7  ;;  %v3379_v7 = vmul.f32 -1.442695, %v2968_v39 }
0x1f52   :  { %v2981_v35 = vadd.f32 %v3624_v24, %v2980_v23 }
0x1f54   :  { %v2985_v37 = vsel %vm2984_vm11, %v3624_v24, %v2981_v35 }
0x1f55   :  { %v2990_v63 = vsel %vm2987_vm12, %v2989_v60, %v2985_v37 }
0x1f56   :  { %v3012_v50 = vmul.f32 %v3010_v5, %v2990_v63 }
0x1fa4   :  { %v2897_v28 = vpop.f32.mrf.mxu3 }
0x1fa5   :  { %v2943_v58 = vadd.f32 %v2897_v28, %v4835_v40  ;;  %v2923_v46 = vadd.f32 %v2897_v28, %v4947_v6 }
0x1fa7   :  { %2945 = vrot.lane.b32.xlu2 %v2943_v58, %s3669_s22  ;;  %v3377_v62 = vmul.f32 -1.442695, %v2923_v46 }
0x1fa9   :  { %3625 = vpow2.f32 %v3377_v62 }
0x1faf   :  { %3014 = vrot.lane.b32.xlu2 %v3012_v50, %s3669_s22  ;;  %v3626_v3 = vpop.eup %3625 }
0x1fb0   :  { %v2927_v1 = vadd.f32 1.0, %v3626_v3 }
0x1fb2   :  { %3627 = vrcp.f32 %v2927_v1  ;;  %v2939_v47 = vand.u32 2147483648, %v2927_v1  ;;  %vm2933_vm14 = vweird.f32 %v2927_v1  ;;  %v2937_v38 = vand.u32 2147483647, %v2927_v1 }
0x1fb4   :  { %v2940_v29 = vor.u32 1.1754944e-38, %v2939_v47  ;;  %vm2938_vm0 = vcmp.eq.f32.partialorder %v2937_v38, 8.507059e+37 }
0x1fb8   :  { %v3628_v48 = vpop.eup %3627 }
0x1fb9   :  { %v2929_v44 = vmul.f32 %v3628_v48, %v2927_v1  ;;  %vm2934_vm13 = vweird.f32 %v3628_v48 }
0x1fba   :  { %vm2935_vm7 = vmor %vm2933_vm14, %vm2934_vm13 }
0x1fbb   :  { %v2930_v25 = vsub.f32 1.0, %v2929_v44 }
0x1fbd   :  { %v2931_v21 = vmul.f32 %v3628_v48, %v2930_v25 }
0x1fbf   :  { %v2932_v34 = vadd.f32 %v3628_v48, %v2931_v21 }
0x1fc1   :  { %v2936_v43 = vsel %vm2935_vm7, %v3628_v48, %v2932_v34 }
0x1fc2   :  { %v2941_v41 = vsel %vm2938_vm0, %v2940_v29, %v2936_v43 }
0x1fc3   :  { %v2955_v21 = vsub.f32 1.0, %v2941_v41  ;;  %v2961_v47 = vmul.f32 %v2941_v41, %v5209_v18 }
0x2001   :  { %v2946_v0 = vpop.permute.xlu2 %2945 }
0x2002   :  { %v2948_v27 = vmul.f32 %v2946_v0, %v2941_v41 }
0x2004   :  { %2950 = vrot.lane.b32.xlu1 %v2948_v27, %s3669_s22 }
0x2009   :  { %v3015_v8 = vpop.permute.xlu2 %3014 }
0x200a   :  { %v3017_v32 = vadd.f32 %v3015_v8, %v1907_v31 }
0x200c   :  { %3629 = vtanh.f32 %v3017_v32 }
0x200d   :  { %3631 = vpow2.f32 %v3379_v7 }
0x2012   :  { %v3630_v24 = vpop.eup %3629 }
0x2013   :  { %3021 = vrot.lane.b32.xlu1 %v3630_v24, %s3671_s4  ;;  %v3632_v23 = vpop.eup %3631 }
0x2014   :  { %v2976_v35 = vadd.f32 1.0, %v3632_v23 }
0x2016   :  { %3633 = vrcp.f32 %v2976_v35  ;;  %v3003_v63 = vand.u32 2147483648, %v2976_v35  ;;  %vm2997_vm11 = vweird.f32 %v2976_v35  ;;  %v3001_v5 = vand.u32 2147483647, %v2976_v35 }
0x2018   :  { %v3004_v46 = vor.u32 1.1754944e-38, %v3003_v63  ;;  %vm3002_vm13 = vcmp.eq.f32.partialorder %v3001_v5, 8.507059e+37  ;;  %v2405_v63 = vsel %vm53_vm10, %v5010_v20, 0.0  ;;  %v2873_v5 = vsel %vm71_vm9, %v5203_v9, 0.0 }
0x201c   :  { %v3634_v51 = vpop.eup %3633 }
0x201d   :  { %v2993_v28 = vmul.f32 %v3634_v51, %v2976_v35  ;;  %vm2998_vm8 = vweird.f32 %v3634_v51 }
0x201e   :  { %vm2999_vm12 = vmor %vm2997_vm11, %vm2998_vm8 }
0x201f   :  { %v2994_v17 = vsub.f32 1.0, %v2993_v28 }
0x2021   :  { %v2995_v37 = vmul.f32 %v3634_v51, %v2994_v17 }
0x2023   :  { %v2996_v11 = vadd.f32 %v3634_v51, %v2995_v37 }
0x2025   :  { %v3000_v56 = vsel %vm2999_vm12, %v3634_v51, %v2996_v11 }
0x2026   :  { %v3005_v62 = vsel %vm3002_vm13, %v3004_v46, %v3000_v56 }
0x2027   :  { %v3019_v3 = vsub.f32 1.0, %v3005_v62  ;;  %v3025_v48 = vmul.f32 %v3005_v62, %v5198_v19 }
0x2076   :  { %v2951_v58 = vpop.permute.xlu1 %2950 }
0x2077   :  { %v2953_v60 = vadd.f32 %v2951_v58, %v4947_v6 }
0x2079   :  { %3635 = vtanh.f32 %v2953_v60 }
0x207f   :  { %v3636_v50 = vpop.eup %3635 }
0x2080   :  { %2957 = vrot.lane.b32.xlu0 %v3636_v50, %s3671_s4 }
0x2085   :  { %v3022_v1 = vpop.permute.xlu1 %3021 }
0x2086   :  { %v3024_v44 = vmul.f32 %v3022_v1, %v3019_v3 }
0x2088   :  { %v5229_v6 = vadd.f32 %v3025_v48, %v3024_v44 }
0x208a   :  { %v5235_v25 = vsel %vm47_vm5, %v5229_v6, %v5198_v19 }
0x208b   :  { %3381 = vmatmul.msk.f32.vlgmr.msrb.gmra.mxu2 %vm480_vm1, %v5235_v25 }
0x20f2   :  { %v2958_v34 = vpop.permute.xlu0 %2957 }
0x20f3   :  { %v2960_v38 = vmul.f32 %v2958_v34, %v2955_v21 }
0x20f5   :  { %v5240_v43 = vadd.f32 %v2961_v47, %v2960_v38 }
0x20f7   :  { %v5246_v29 = vsel %vm77_vm4, %v5240_v43, %v5209_v18 }
0x20f8   :  { %3032 = vrot.lane.b32.xlu2 %v5246_v29, %s3671_s4 }
0x210e   :  { %v3076_v19 = vpop.f32.mrf.mxu2 }
0x210f   :  { %v3163_v0 = vadd.f32 %v3076_v19, %v4867_v26  ;;  %3120 = vrot.lane.b32.xlu0 %v3076_v19, %s3671_s4 }
0x2111   :  { %3165 = vrot.lane.b32.xlu2 %v3163_v0, %s3672_s13  ;;  %v1904_v0 = vadd.f32 %v4897_v22, %v4912_v33  ;;  %v2562_v22 = vsel %vm65_vm3, %v5071_v59, 0.0  ;;  %v3029_v33 = vsel %vm77_vm4, %v5240_v43, 0.0 }
0x2152   :  { %v3033_v41 = vpop.permute.xlu2 %3032 }
0x2153   :  { %3380 = vmatmul.msk.f32.vlgmr.msrb.gmra.mxu3 %vm480_vm1, %v3033_v41 }
0x216b   :  { %v3166_v60 = vpop.permute.xlu2 %3165 }
0x2181   :  { %v5254_v27 = vpop.permute.xlu0 %3120 }
0x2182   :  { %v3123_v31 = vadd.f32 %v5254_v27, %v4860_v4  ;;  %v3124_v61 = vadd.f32 %v5254_v27, %v1904_v0 }
0x2184   :  { %v3383_v18 = vmul.f32 -1.442695, %v3123_v31 }
0x2186   :  { %3637 = vpow2.f32 %v3383_v18 }
0x218c   :  { %v3638_v8 = vpop.eup %3637 }
0x218d   :  { %v3131_v32 = vadd.f32 1.0, %v3638_v8  ;;  %v3030_v8 = vsel %vm47_vm5, %v5229_v6, 0.0 }
0x218f   :  { %3639 = vrcp.f32 %v3131_v32  ;;  %v3144_v51 = vand.u32 2147483648, %v3131_v32  ;;  %vm3138_vm7 = vweird.f32 %v3131_v32  ;;  %v3142_v17 = vand.u32 2147483647, %v3131_v32 }
0x2191   :  { %v3145_v58 = vor.u32 1.1754944e-38, %v3144_v51  ;;  %vm3143_vm8 = vcmp.eq.f32.partialorder %v3142_v17, 8.507059e+37 }
0x2195   :  { %v3640_v24 = vpop.eup %3639 }
0x2196   :  { %v3134_v39 = vmul.f32 %v3640_v24, %v3131_v32  ;;  %vm3139_vm14 = vweird.f32 %v3640_v24  ;;  %v2561_v32 = vsel %vm59_vm6, %v5098_v13, 0.0  ;;  %v3384_v13 = vmul.f32 -1.442695, %v3124_v61 }
0x2197   :  { %vm3140_vm0 = vmor %vm3138_vm7, %vm3139_vm14 }
0x2198   :  { %v3135_v26 = vsub.f32 1.0, %v3134_v39 }
0x219a   :  { %v3136_v7 = vmul.f32 %v3640_v24, %v3135_v26 }
0x219c   :  { %v3137_v23 = vadd.f32 %v3640_v24, %v3136_v7 }
0x219e   :  { %v3141_v4 = vsel %vm3140_vm0, %v3640_v24, %v3137_v23 }
0x219f   :  { %v3146_v37 = vsel %vm3143_vm8, %v3145_v58, %v3141_v4 }
0x21a0   :  { %v3168_v11 = vmul.f32 %v3166_v60, %v3146_v37 }
0x21d6   :  { %v3053_v35 = vpop.f32.mrf.mxu3 }
0x21d7   :  { %v3099_v28 = vadd.f32 %v3053_v35, %v4835_v40  ;;  %v2718_v40 = vsel %vm59_vm6, %v5143_v30, 0.0  ;;  %v3079_v56 = vadd.f32 %v3053_v35, %v4887_v57 }
0x21d9   :  { %3101 = vrot.lane.b32.xlu1 %v3099_v28, %s3669_s22  ;;  %v3382_v50 = vmul.f32 -1.442695, %v3079_v56 }
0x21db   :  { %3641 = vpow2.f32 %v3382_v50  ;;  %v2874_v50 = vsel %vm53_vm10, %v5192_v53, 0.0 }
0x21e1   :  { %3170 = vrot.lane.b32.xlu1 %v3168_v11, %s3669_s22  ;;  %v3642_v46 = vpop.eup %3641 }
0x21e2   :  { %v3083_v20 = vadd.f32 1.0, %v3642_v46 }
0x21e4   :  { %3643 = vrcp.f32 %v3083_v20  ;;  %v3095_v44 = vand.u32 2147483648, %v3083_v20  ;;  %vm3089_vm12 = vweird.f32 %v3083_v20  ;;  %v3093_v21 = vand.u32 2147483647, %v3083_v20 }
0x21e6   :  { %v3096_v34 = vor.u32 1.1754944e-38, %v3095_v44  ;;  %vm3094_vm14 = vcmp.eq.f32.partialorder %v3093_v21, 8.507059e+37 }
0x21e9   :  { %3201 = vrot.lane.b32.xlu1 %v2405_v63, %s3671_s4 }
0x21ea   :  { %v3644_v62 = vpop.eup %3643 }
0x21eb   :  { %v3085_v3 = vmul.f32 %v3644_v62, %v3083_v20  ;;  %vm3090_vm11 = vweird.f32 %v3644_v62 }
0x21ec   :  { %vm3091_vm13 = vmor %vm3089_vm12, %vm3090_vm11 }
0x21ed   :  { %v3086_v1 = vsub.f32 1.0, %v3085_v3 }
0x21ef   :  { %v3087_v48 = vmul.f32 %v3644_v62, %v3086_v1 }
0x21f1   :  { %3214 = vrot.lane.b32.xlu1 %v2718_v40, %s3672_s13  ;;  %v3088_v30 = vadd.f32 %v3644_v62, %v3087_v48 }
0x21f3   :  { %v3092_v9 = vsel %vm3091_vm13, %v3644_v62, %v3088_v30 }
0x21f4   :  { %v5274_v38 = vsel %vm3094_vm14, %v3096_v34, %v3092_v9 }
0x21f5   :  { %v3111_v55 = vsub.f32 1.0, %v5274_v38  ;;  %v3117_v46 = vmul.f32 %v5274_v38, %v5246_v29 }
0x21f9   :  { %3228 = vrot.lane.b32.xlu1 %v2873_v5, %s3671_s4 }
0x224b   :  { %v3102_v47 = vpop.permute.xlu1 %3101 }
0x224c   :  { %v3104_v19 = vmul.f32 %v3102_v47, %v5274_v38 }
0x224e   :  { %3106 = vrot.lane.b32.xlu0 %v3104_v19, %s3669_s22 }
0x2253   :  { %v3171_v41 = vpop.permute.xlu1 %3170 }
0x2254   :  { %v3173_v31 = vadd.f32 %v3171_v41, %v1904_v0 }
0x2256   :  { %3645 = vtanh.f32 %v3173_v31 }
0x2257   :  { %3647 = vpow2.f32 %v3384_v13 }
0x225b   :  { %v3202_v5 = vpop.permute.xlu1 %3201 }
0x225c   :  { %v3646_v18 = vpop.eup %3645 }
0x225d   :  { %3177 = vrot.lane.b32.xlu0 %v3646_v18, %s3671_s4  ;;  %v3648_v6 = vpop.eup %3647 }
0x225e   :  { %v3132_v24 = vadd.f32 1.0, %v3648_v6 }
0x2260   :  { %3649 = vrcp.f32 %v3132_v24  ;;  %v3159_v51 = vand.u32 2147483648, %v3132_v24  ;;  %vm3153_vm7 = vweird.f32 %v3132_v24 }
0x2262   :  { %v3160_v17 = vor.u32 1.1754944e-38, %v3159_v51 }
0x2265   :  { %3196 = vrot.lane.b32.xlu0 %v3030_v8, %s3672_s13 }
0x2266   :  { %v3650_v39 = vpop.eup %3649 }
0x2267   :  { %v3149_v59 = vmul.f32 %v3650_v39, %v3132_v24  ;;  %vm3154_vm6 = vweird.f32 %v3650_v39 }
0x2268   :  { %vm3155_vm0 = vmor %vm3153_vm7, %vm3154_vm6 }
0x2269   :  { %v3150_v26 = vsub.f32 1.0, %v3149_v59 }
0x226b   :  { %v3151_v23 = vmul.f32 %v3650_v39, %v3150_v26 }
0x226d   :  { %3210 = vrot.lane.b32.xlu0 %v2561_v32, %s3671_s4  ;;  %v3152_v43 = vadd.f32 %v3650_v39, %v3151_v23 }
0x226f   :  { %v3156_v27 = vsel %vm3155_vm0, %v3650_v39, %v3152_v43 }
0x2275   :  { %3223 = vrot.lane.b32.xlu0 %v2562_v22, %s3672_s13 }
0x227d   :  { %3237 = vrot.lane.b32.xlu0 %v3029_v33, %s3671_s4 }
0x2285   :  { %3249 = vrot.lane.b32.xlu0 %v4926_v15, %s3672_s13  ;;  %v3157_v15 = vand.u32 2147483647, %v3132_v24 }
0x2287   :  { %vm3158_vm8 = vcmp.eq.f32.partialorder %v3157_v15, 8.507059e+37 }
0x2288   :  { %v3161_v4 = vsel %vm3158_vm8, %v3160_v17, %v3156_v27 }
0x2289   :  { %v3175_v58 = vsub.f32 1.0, %v3161_v4  ;;  %v3181_v60 = vmul.f32 %v3161_v4, %v5235_v25 }
0x22c0   :  { %v3107_v7 = vpop.permute.xlu0 %3106 }
0x22c1   :  { %v3109_v35 = vadd.f32 %v3107_v7, %v4887_v57  ;;  %v2249_v57 = vsel %vm47_vm5, %v4957_v12, 0.0  ;;  %v3215_v12 = vpop.permute.xlu1 %3214 }
0x22c3   :  { %3651 = vtanh.f32 %v3109_v35 }
0x22c9   :  { %v3652_v28 = vpop.eup %3651  ;;  %v3229_v48 = vpop.permute.xlu1 %3228 }
0x22ca   :  { %3113 = vrot.lane.b32.xlu2 %v3652_v28, %s3671_s4 }
0x22cf   :  { %v3178_v37 = vpop.permute.xlu0 %3177 }
0x22d0   :  { %v3180_v11 = vmul.f32 %v3178_v37, %v3175_v58 }
0x22d2   :  { %v3182_v63 = vadd.f32 %v3181_v60, %v3180_v11  ;;  %3192 = vrot.lane.b32.xlu2 %v2249_v57, %s3671_s4 }
0x22d4   :  { %v3184_v40 = vsel %vm41_vm2, %v3182_v63, 0.0  ;;  %vm5385_vm2 = vcmp.eq.s32.totalorder %v4270_v54, 1 }
0x22d5   :  { %3187 = vrot.lane.b32.xlu1 %v3184_v40, %s3672_s13 }
0x22d7   :  { %v3197_v56 = vpop.permute.xlu0 %3196 }
0x22da   :  { %3205 = vrot.lane.b32.xlu2 %v2874_v50, %s3672_s13 }
0x22dd   :  { %3241 = vrot.lane.b32.xlu1 %v2250_v14, %s3672_s13 }
0x22df   :  { %v3211_v25 = vpop.permute.xlu0 %3210 }
0x22e0   :  { %v3217_v49 = vsel %vm480_vm1, %v3211_v25, %v3215_v12 }
0x22e1   :  { %3256 = vst.msk [vmem:[%s5383_s10 + $0x18] sm:$0xff] %vm1820_vm15, %v3217_v49 }
0x22e2   :  { %3219 = vrot.lane.b32.xlu2 %v2717_v10, %s3671_s4 }
0x22e7   :  { %v3224_v54 = vpop.permute.xlu0 %3223 }
0x22ea   :  { %3232 = vrot.lane.b32.xlu2 %v2406_v45, %s3672_s13 }
0x22ef   :  { %v3238_v34 = vpop.permute.xlu0 %3237 }
0x22f7   :  { %v3250_v19 = vpop.permute.xlu0 %3249 }
0x2324   :  { %v3114_v53 = vpop.permute.xlu2 %3113 }
0x2325   :  { %v3116_v20 = vmul.f32 %v3114_v53, %v3111_v55 }
0x2327   :  { %v3118_v62 = vadd.f32 %v3117_v46, %v3116_v20 }
0x2329   :  { %v3183_v36 = vsel %vm5385_vm2, %v3118_v62, 0.0 }
0x232a   :  { %3246 = vrot.lane.b32.xlu2 %v3183_v36, %s3671_s4 }
0x232c   :  { %v3193_v16 = vpop.permute.xlu2 %3192 }
0x232d   :  { %v3199_v3 = vsel %vm480_vm1, %v3193_v16, %v3197_v56 }
0x232e   :  { %3254 = vst.msk [vmem:[%s5383_s10 + $0x8] sm:$0xff] %vm1820_vm15, %v3199_v3 }
0x2334   :  { %v3206_v42 = vpop.permute.xlu2 %3205 }
0x2335   :  { %v3208_v52 = vsel %vm480_vm1, %v3202_v5, %v3206_v42 }
0x2336   :  { %3255 = vst.msk [vmem:[%s5383_s10 + $0x10] sm:$0xff] %vm1820_vm15, %v3208_v52 }
0x233c   :  { %v3220_v29 = vpop.permute.xlu2 %3219 }
0x233d   :  { %v3226_v1 = vsel %vm480_vm1, %v3220_v29, %v3224_v54 }
0x233e   :  { %3257 = vst.msk [vmem:[%s5383_s10 + $0x20] sm:$0xff] %vm1820_vm15, %v3226_v1 }
0x2344   :  { %v3233_v30 = vpop.permute.xlu2 %3232 }
0x2345   :  { %v3235_v44 = vsel %vm480_vm1, %v3229_v48, %v3233_v30 }
0x2346   :  { %3258 = vst.msk [vmem:[%s5383_s10 + $0x28] sm:$0xff] %vm1820_vm15, %v3235_v44 }
0x2347   :  { %v3188_v21 = vpop.permute.xlu1 %3187 }
0x2348   :  { %v3190_v9 = vsel %vm480_vm1, %v4916_v2, %v3188_v21 }
0x2349   :  { %3253 = vst.msk [vmem:[%s5383_s10] sm:$0xff] %vm1820_vm15, %v3190_v9 }
0x234f   :  { %v3242_v47 = vpop.permute.xlu1 %3241 }
0x2350   :  { %v3244_v38 = vsel %vm480_vm1, %v3238_v34, %v3242_v47 }
0x2351   :  { %3259 = vst.msk [vmem:[%s5383_s10 + $0x30] sm:$0xff] %vm1820_vm15, %v3244_v38 }
0x2384   :  { %v3247_v0 = vpop.permute.xlu2 %3246 }
0x2385   :  { %v3252_v41 = vsel %vm480_vm1, %v3247_v0, %v3250_v19 }
0x2386   :  { %3260 = vst.msk [vmem:[%s5383_s10 + $0x38] sm:$0xff] %vm1820_vm15, %v3252_v41 }

</bundles_post_ra>
